<compile_context>
chip_gen: v7x
topology: tpu7x:2x2x1
jax: 0.10.0
libtpu: 0.0.40
codegen_flags: <defaults>
</compile_context>

<pallas_src>
import functools

import jax
import jax.numpy as jnp
from jax.experimental import pallas as pl
from jax.experimental.pallas import tpu as pltpu


def _round_up(n, m):
    return ((n + m - 1) // m) * m


# ---------------------------------------------------------------------------
# Fused per-layer kernel: grid=(num_layers,).  Layer 0 builds a one-hot token
# matrix (its input-projection weight already contains the folded embedding);
# every layer runs the full-T recurrence; the last layer applies LayerNorm +
# the Linear head.
# ---------------------------------------------------------------------------
def _fused_forward_kernel(tok_ref, w_in_ref, w_hh_ref, b_ref,
                          gamma_ref, beta_ref, wout_ref, bout_ref,
                          logits_ref, hn_ref, cn_ref,
                          seq_ref, *, T, B, H, L, IN):
    l = pl.program_id(0)
    TB = T * B

    # ---- Layer 0 input: padded one-hot tokens (embedding is folded into W_in0).
    @pl.when(l == 0)
    def _():
        tok = tok_ref[...]                                         # (TB, 1) int32
        col = jax.lax.broadcasted_iota(jnp.int32, (TB, IN), 1)
        seq_ref[...] = (col == tok).astype(jnp.bfloat16)

    x_in = seq_ref[...]                                            # (TB, IN) bf16
    w_in = w_in_ref[0]                                             # (IN, 4H) bf16
    w_hh = w_hh_ref[0]                                             # (H, 4H)  bf16
    b = b_ref[0]                                                   # (1, 4H)  f32

    # Input projection for all timesteps in a single MXU matmul.
    gx = jnp.dot(x_in, w_in, preferred_element_type=jnp.float32) + b   # (TB, 4H)

    h = jnp.zeros((B, H), jnp.float32)
    c = jnp.zeros((B, H), jnp.float32)
    hs = []
    for t in range(T):                                             # unrolled serial recurrence
        g = gx[t * B:(t + 1) * B, :] + jnp.dot(
            h.astype(jnp.bfloat16), w_hh, preferred_element_type=jnp.float32)
        s = jax.nn.sigmoid(g[:, :3 * H])                           # [i, f, o] slab
        gg = jnp.tanh(g[:, 3 * H:])                                # g slab
        c = s[:, H:2 * H] * c + s[:, 0:H] * gg
        h = s[:, 2 * H:3 * H] * jnp.tanh(c)
        hs.append(h)

    # Final (h, c) of this layer, one dense block write each.
    hn_ref[0] = h
    cn_ref[0] = c

    # Hand the full sequence to the next layer with ONE dense (TB, H) store.
    @pl.when(l < L - 1)
    def _():
        seq_ref[...] = jnp.concatenate(hs, axis=0).astype(jnp.bfloat16)

    # ---- LayerNorm (eps=1e-5) on the last timestep + Linear head (last layer).
    @pl.when(l == L - 1)
    def _():
        mean = jnp.mean(h, axis=-1, keepdims=True)
        var = jnp.mean((h - mean) ** 2, axis=-1, keepdims=True)
        hnorm = (h - mean) * jax.lax.rsqrt(var + 1e-5)
        hnorm = hnorm * gamma_ref[...] + beta_ref[...]
        logits_ref[...] = (jnp.dot(hnorm, wout_ref[...],
                                   preferred_element_type=jnp.float32)
                           + bout_ref[...])


# ---------------------------------------------------------------------------
# Weight preparation: fold embedding into layer-0 W_ih, reorder gates
# [i,f,g,o] -> [i,f,o,g], stack per-layer weights, cast LSTM weights to bf16,
# pad vocab to a lane-dense width.
# ---------------------------------------------------------------------------
def prepare_params(params, hidden_size):
    H = hidden_size
    V, _E = params["embedding"].shape
    Vp = _round_up(V, 128)
    assert Vp <= H, "kernel assumes padded vocab width <= hidden size"
    IN = H  # common input-projection row dim for all layers

    def reorder(w):   # last-dim gate order [i, f, g, o] -> [i, f, o, g]
        return jnp.concatenate(
            [w[..., :2 * H], w[..., 3 * H:4 * H], w[..., 2 * H:3 * H]], axis=-1)

    w_in_list, w_hh_list, b_list = [], [], []
    for layer, (w_ih, w_hh, b) in enumerate(params["lstm"]):
        if layer == 0:
            # Fold the embedding lookup into the input projection (host-side, f32).
            w_ih = params["embedding"].astype(jnp.float32) @ w_ih   # (V, 4H)
        w_ih = reorder(w_ih)
        rows = w_ih.shape[0]
        if rows < IN:
            w_ih = jnp.zeros((IN, 4 * H), w_ih.dtype).at[:rows].set(w_ih)
        w_in_list.append(w_ih)
        w_hh_list.append(reorder(w_hh))
        b_list.append(reorder(b))

    return {
        "w_in": jnp.stack(w_in_list).astype(jnp.bfloat16),    # (L, IN, 4H)
        "w_hh": jnp.stack(w_hh_list).astype(jnp.bfloat16),    # (L, H, 4H)
        "b": jnp.stack(b_list).astype(jnp.float32),           # (L, 1, 4H)
        "gamma": params["ln_gamma"].astype(jnp.float32),      # (1, H)
        "beta": params["ln_beta"].astype(jnp.float32),        # (1, H)
        "w_out": jnp.zeros((H, Vp), jnp.float32).at[:, :V].set(params["w_out"]),
        "b_out": jnp.zeros((1, Vp), jnp.float32).at[:, :V].set(params["b_out"]),
    }


# ---------------------------------------------------------------------------
# Wrapper: one pallas_call, grid over layers so weight DMA overlaps compute.
# ---------------------------------------------------------------------------
def fused_forward(kp, x, *, hidden_size, vocab_size):
    B, T = x.shape
    H = hidden_size
    L, IN, _ = kp["w_in"].shape
    Vp = kp["w_out"].shape[1]

    tok = x.T.reshape(T * B, 1).astype(jnp.int32)          # time-major token ids

    in_specs = [
        pl.BlockSpec((T * B, 1), lambda l: (0, 0)),         # tok
        pl.BlockSpec((1, IN, 4 * H), lambda l: (l, 0, 0)),  # stacked W_in (bf16)
        pl.BlockSpec((1, H, 4 * H), lambda l: (l, 0, 0)),   # stacked W_hh (bf16)
        pl.BlockSpec((1, 1, 4 * H), lambda l: (l, 0, 0)),   # stacked bias
        pl.BlockSpec((1, H), lambda l: (0, 0)),             # gamma
        pl.BlockSpec((1, H), lambda l: (0, 0)),             # beta
        pl.BlockSpec((H, Vp), lambda l: (0, 0)),            # W_out
        pl.BlockSpec((1, Vp), lambda l: (0, 0)),            # b_out
    ]
    out_shape = (
        jax.ShapeDtypeStruct((B, Vp), jnp.float32),          # padded logits
        jax.ShapeDtypeStruct((L, B, H), jnp.float32),        # h_n
        jax.ShapeDtypeStruct((L, B, H), jnp.float32),        # c_n
    )
    out_specs = (
        pl.BlockSpec((B, Vp), lambda l: (0, 0)),
        pl.BlockSpec((1, B, H), lambda l: (l, 0, 0)),
        pl.BlockSpec((1, B, H), lambda l: (l, 0, 0)),
    )

    kernel = functools.partial(_fused_forward_kernel, T=T, B=B, H=H, L=L, IN=IN)

    logits_pad, h_n, c_n = pl.pallas_call(
        kernel,
        out_shape=out_shape,
        grid=(L,),
        in_specs=in_specs,
        out_specs=out_specs,
        scratch_shapes=[pltpu.VMEM((T * B, IN), jnp.bfloat16)],  # inter-layer sequence
        compiler_params=pltpu.CompilerParams(
            dimension_semantics=("arbitrary",)),
    )(tok, kp["w_in"], kp["w_hh"], kp["b"], kp["gamma"], kp["beta"],
      kp["w_out"], kp["b_out"])

    return logits_pad[:, :vocab_size], (h_n, c_n)


# ---------------------------------------------------------------------------
# Parameter init (PyTorch-style layout: gates [i, f, g, o], combined biases).
# ---------------------------------------------------------------------------
def init_params(key, vocab_size, embed_size, hidden_size, num_layers):
    keys = jax.random.split(key, 4 + 4 * num_layers)
    k = iter(keys)
    s = 1.0 / jnp.sqrt(hidden_size)
    params = {
        "embedding": jax.random.normal(next(k), (vocab_size, embed_size),
                                       jnp.float32),
        "ln_gamma": (1.0 + 0.01 * jax.random.normal(
            next(k), (1, hidden_size), jnp.float32)),
        "ln_beta": 0.01 * jax.random.normal(next(k), (1, hidden_size),
                                            jnp.float32),
        "lstm": [],
    }
    for layer in range(num_layers):
        e_in = embed_size if layer == 0 else hidden_size
        w_ih = jax.random.uniform(next(k), (e_in, 4 * hidden_size),
                                  jnp.float32, -s, s)
        w_hh = jax.random.uniform(next(k), (hidden_size, 4 * hidden_size),
                                  jnp.float32, -s, s)
        b_ih = jax.random.uniform(next(k), (1, 4 * hidden_size),
                                  jnp.float32, -s, s)
        b_hh = jax.random.uniform(next(k), (1, 4 * hidden_size),
                                  jnp.float32, -s, s)
        params["lstm"].append((w_ih, w_hh, b_ih + b_hh))
    kw = jax.random.split(keys[-1], 2)
    sl = 1.0 / jnp.sqrt(hidden_size)
    params["w_out"] = jax.random.uniform(kw[0], (hidden_size, vocab_size),
                                         jnp.float32, -sl, sl)
    params["b_out"] = jax.random.uniform(kw[1], (1, vocab_size),
                                         jnp.float32, -sl, sl)
    return params


# ---------------------------------------------------------------------------
# Pure-JAX f32 reference for validation (PyTorch gate order [i, f, g, o]).
# ---------------------------------------------------------------------------
def reference_forward(params, x, hidden_size):
    emb = jnp.take(params["embedding"], x, axis=0)
    B = x.shape[0]
    H = hidden_size
    seq = jnp.transpose(emb, (1, 0, 2))
    h_finals, c_finals = [], []
    for (w_ih, w_hh, b) in params["lstm"]:
        def step(carry, xt):
            h, c = carry
            g = xt @ w_ih + h @ w_hh + b[0]
            i = jax.nn.sigmoid(g[:, 0 * H:1 * H])
            f = jax.nn.sigmoid(g[:, 1 * H:2 * H])
            gg = jnp.tanh(g[:, 2 * H:3 * H])
            o = jax.nn.sigmoid(g[:, 3 * H:4 * H])
            c = f * c + i * gg
            h = o * jnp.tanh(c)
            return (h, c), h
        (h_l, c_l), seq = jax.lax.scan(
            step, (jnp.zeros((B, H)), jnp.zeros((B, H))), seq)
        h_finals.append(h_l)
        c_finals.append(c_l)
    h_last = seq[-1]
    mean = jnp.mean(h_last, axis=-1, keepdims=True)
    var = jnp.mean((h_last - mean) ** 2, axis=-1, keepdims=True)
    hn = (h_last - mean) * jax.lax.rsqrt(var + 1e-5)
    hn = hn * params["ln_gamma"] + params["ln_beta"]
    logits = hn @ params["w_out"] + params["b_out"]
    return logits, (jnp.stack(h_finals, 0), jnp.stack(c_finals, 0))


if __name__ == "__main__":
    VOCAB, EMBED, HIDDEN, LAYERS = 50, 126, 256, 3
    B, T = 2, 8

    key = jax.random.PRNGKey(0)
    kp, kx = jax.random.split(key)
    params = init_params(kp, VOCAB, EMBED, HIDDEN, LAYERS)
    kparams = prepare_params(params, HIDDEN)
    x = jax.random.randint(kx, (B, T), 0, VOCAB, dtype=jnp.int32)

    fwd = jax.jit(functools.partial(fused_forward,
                                    hidden_size=HIDDEN, vocab_size=VOCAB))
    logits, (h_n, c_n) = fwd(kparams, x)
    jax.block_until_ready((logits, h_n, c_n))

    ref_logits, (ref_h, ref_c) = reference_forward(params, x, HIDDEN)
    assert logits.shape == (B, VOCAB)
    assert h_n.shape == (LAYERS, B, HIDDEN) and c_n.shape == (LAYERS, B, HIDDEN)
    # Tolerances loosened for bf16 LSTM weights (f32 accumulation everywhere).
    assert jnp.allclose(logits, ref_logits, atol=5e-2, rtol=5e-2)
    assert jnp.allclose(h_n, ref_h, atol=5e-2, rtol=5e-2)
    assert jnp.allclose(c_n, ref_c, atol=5e-2, rtol=5e-2)

    print("KERNEL_OK")
</pallas_src>

<mosaic_0001>
module attributes {stable_mosaic.version = 11 : i64} {
  func.func @_fused_forward_kernel(%arg0: i32, %arg1: memref<16x1xi32, #tpu.memory_space<vmem>>, %arg2: memref<1x256x1024xbf16, #tpu.memory_space<vmem>>, %arg3: memref<1x256x1024xbf16, #tpu.memory_space<vmem>>, %arg4: memref<1x1x1024xf32, #tpu.memory_space<vmem>>, %arg5: memref<1x256xf32, #tpu.memory_space<vmem>>, %arg6: memref<1x256xf32, #tpu.memory_space<vmem>>, %arg7: memref<256x128xf32, #tpu.memory_space<vmem>>, %arg8: memref<1x128xf32, #tpu.memory_space<vmem>>, %arg9: memref<2x128xf32, #tpu.memory_space<vmem>>, %arg10: memref<1x2x256xf32, #tpu.memory_space<vmem>>, %arg11: memref<1x2x256xf32, #tpu.memory_space<vmem>>, %arg12: memref<16x256xbf16, #tpu.memory_space<vmem>>) attributes {dimension_semantics = [#tpu.dimension_semantics<arbitrary>], iteration_bounds = array<i64: 3>, scalar_prefetch = 0 : i64, scratch_operands = 1 : i64, tpu.core_type = #tpu.core_type<tc>, window_params = [{pipeline_mode = #tpu.pipeline_mode<synchronous>, transform_indices = @transform_0, window_bounds = array<i64: 16, 1>}, {transform_indices = @transform_1, window_bounds = array<i64: 1, 256, 1024>}, {transform_indices = @transform_2, window_bounds = array<i64: 1, 256, 1024>}, {transform_indices = @transform_3, window_bounds = array<i64: 1, 1, 1024>}, {pipeline_mode = #tpu.pipeline_mode<synchronous>, transform_indices = @transform_4, window_bounds = array<i64: 1, 256>}, {pipeline_mode = #tpu.pipeline_mode<synchronous>, transform_indices = @transform_5, window_bounds = array<i64: 1, 256>}, {pipeline_mode = #tpu.pipeline_mode<synchronous>, transform_indices = @transform_6, window_bounds = array<i64: 256, 128>}, {pipeline_mode = #tpu.pipeline_mode<synchronous>, transform_indices = @transform_7, window_bounds = array<i64: 1, 128>}, {pipeline_mode = #tpu.pipeline_mode<synchronous>, transform_indices = @transform_8, window_bounds = array<i64: 2, 128>}, {transform_indices = @transform_9, window_bounds = array<i64: 1, 2, 256>}, {transform_indices = @transform_10, window_bounds = array<i64: 1, 2, 256>}]} {
    %c0_i32 = arith.constant 0 : i32
    %0 = arith.cmpi eq, %arg0, %c0_i32 : i32
    %1 = arith.extui %0 : i1 to i32
    %c0_i32_0 = arith.constant 0 : i32
    %2 = arith.cmpi ne, %1, %c0_i32_0 : i32
    scf.if %2 {
      %c0_38 = arith.constant 0 : index
      %c0_39 = arith.constant 0 : index
      %187 = vector.load %arg1[%c0_38, %c0_39] : memref<16x1xi32, #tpu.memory_space<vmem>>, vector<16x1xi32>
      %188 = tpu.iota {dimensions = array<i32: 1>} : vector<16x256xi32>
      %189 = vector.broadcast %187 : vector<16x1xi32> to vector<16x256xi32>
      %190 = arith.cmpi eq, %188, %189 : vector<16x256xi32>
      %191 = arith.extui %190 : vector<16x256xi1> to vector<16x256xi32>
      %192 = arith.sitofp %191 : vector<16x256xi32> to vector<16x256xf32>
      %193 = arith.truncf %192 : vector<16x256xf32> to vector<16x256xbf16>
      %c0_40 = arith.constant 0 : index
      %c0_41 = arith.constant 0 : index
      %194 = vector.load %arg12[%c0_40, %c0_41] : memref<16x256xbf16, #tpu.memory_space<vmem>>, vector<16x256xbf16>
      tpu.vector_store %arg12[%c0_40, %c0_41], %193 {strides = array<i32>} : memref<16x256xbf16, #tpu.memory_space<vmem>>, vector<16x256xbf16>,
    } else {
    }
    %c0 = arith.constant 0 : index
    %c0_1 = arith.constant 0 : index
    %3 = vector.load %arg12[%c0, %c0_1] : memref<16x256xbf16, #tpu.memory_space<vmem>>, vector<16x256xbf16>
    %c0_2 = arith.constant 0 : index
    %c0_3 = arith.constant 0 : index
    %c0_4 = arith.constant 0 : index
    %4 = vector.load %arg2[%c0_2, %c0_3, %c0_4] : memref<1x256x1024xbf16, #tpu.memory_space<vmem>>, vector<1x256x1024xbf16>
    %5 = vector.shape_cast %4 : vector<1x256x1024xbf16> to vector<256x1024xbf16>
    %c0_5 = arith.constant 0 : index
    %c0_6 = arith.constant 0 : index
    %c0_7 = arith.constant 0 : index
    %6 = vector.load %arg3[%c0_5, %c0_6, %c0_7] : memref<1x256x1024xbf16, #tpu.memory_space<vmem>>, vector<1x256x1024xbf16>
    %7 = vector.shape_cast %6 : vector<1x256x1024xbf16> to vector<256x1024xbf16>
    %c0_8 = arith.constant 0 : index
    %c0_9 = arith.constant 0 : index
    %c0_10 = arith.constant 0 : index
    %8 = vector.load %arg4[%c0_8, %c0_9, %c0_10] : memref<1x1x1024xf32, #tpu.memory_space<vmem>>, vector<1x1x1024xf32>
    %9 = vector.shape_cast %8 : vector<1x1x1024xf32> to vector<1x1024xf32>
    %cst = arith.constant dense<0.000000e+00> : vector<16x1024xf32>
    %10 = tpu.matmul %3, %5, %cst {dimension_numbers = #tpu.dot_dimension_numbers<[1], [0], [0], [1], [0, 0, 1, 1], [], []>} : vector<16x256xbf16>, vector<256x1024xbf16>, vector<16x1024xf32> -> vector<16x1024xf32>
    %11 = vector.broadcast %9 : vector<1x1024xf32> to vector<16x1024xf32>
    %12 = arith.addf %10, %11 : vector<16x1024xf32>
    %cst_11 = arith.constant 0.000000e+00 : f32
    %13 = vector.broadcast %cst_11 : f32 to vector<2x256xf32>
    %cst_12 = arith.constant 0.000000e+00 : f32
    %14 = vector.broadcast %cst_12 : f32 to vector<2x256xf32>
    %15 = vector.extract_strided_slice %12 {offsets = [0, 0], sizes = [2, 1024], strides = [1, 1]} : vector<16x1024xf32> to vector<2x1024xf32>
    %16 = arith.truncf %13 : vector<2x256xf32> to vector<2x256xbf16>
    %cst_13 = arith.constant dense<0.000000e+00> : vector<2x1024xf32>
    %17 = tpu.matmul %16, %7, %cst_13 {dimension_numbers = #tpu.dot_dimension_numbers<[1], [0], [0], [1], [0, 0, 1, 1], [], []>} : vector<2x256xbf16>, vector<256x1024xbf16>, vector<2x1024xf32> -> vector<2x1024xf32>
    %18 = arith.addf %15, %17 : vector<2x1024xf32>
    %19 = vector.extract_strided_slice %18 {offsets = [0, 0], sizes = [2, 768], strides = [1, 1]} : vector<2x1024xf32> to vector<2x768xf32>
    %20 = arith.negf %19 : vector<2x768xf32>
    %21 = math.exp %20 : vector<2x768xf32>
    %cst_14 = arith.constant 1.000000e+00 : f32
    %22 = vector.broadcast %cst_14 : f32 to vector<2x768xf32>
    %23 = arith.addf %22, %21 : vector<2x768xf32>
    %24 = arith.divf %22, %23 : vector<2x768xf32>
    %25 = vector.extract_strided_slice %18 {offsets = [0, 768], sizes = [2, 256], strides = [1, 1]} : vector<2x1024xf32> to vector<2x256xf32>
    %26 = math.tanh %25 : vector<2x256xf32>
    %27 = vector.extract_strided_slice %24 {offsets = [0, 256], sizes = [2, 256], strides = [1, 1]} : vector<2x768xf32> to vector<2x256xf32>
    %28 = arith.mulf %27, %14 : vector<2x256xf32>
    %29 = vector.extract_strided_slice %24 {offsets = [0, 0], sizes = [2, 256], strides = [1, 1]} : vector<2x768xf32> to vector<2x256xf32>
    %30 = arith.mulf %29, %26 : vector<2x256xf32>
    %31 = arith.addf %28, %30 : vector<2x256xf32>
    %32 = vector.extract_strided_slice %24 {offsets = [0, 512], sizes = [2, 256], strides = [1, 1]} : vector<2x768xf32> to vector<2x256xf32>
    %33 = math.tanh %31 : vector<2x256xf32>
    %34 = arith.mulf %32, %33 : vector<2x256xf32>
    %35 = vector.extract_strided_slice %12 {offsets = [2, 0], sizes = [2, 1024], strides = [1, 1]} : vector<16x1024xf32> to vector<2x1024xf32>
    %36 = arith.truncf %34 : vector<2x256xf32> to vector<2x256xbf16>
    %cst_15 = arith.constant dense<0.000000e+00> : vector<2x1024xf32>
    %37 = tpu.matmul %36, %7, %cst_15 {dimension_numbers = #tpu.dot_dimension_numbers<[1], [0], [0], [1], [0, 0, 1, 1], [], []>} : vector<2x256xbf16>, vector<256x1024xbf16>, vector<2x1024xf32> -> vector<2x1024xf32>
    %38 = arith.addf %35, %37 : vector<2x1024xf32>
    %39 = vector.extract_strided_slice %38 {offsets = [0, 0], sizes = [2, 768], strides = [1, 1]} : vector<2x1024xf32> to vector<2x768xf32>
    %40 = arith.negf %39 : vector<2x768xf32>
    %41 = math.exp %40 : vector<2x768xf32>
    %cst_16 = arith.constant 1.000000e+00 : f32
    %42 = vector.broadcast %cst_16 : f32 to vector<2x768xf32>
    %43 = arith.addf %42, %41 : vector<2x768xf32>
    %44 = arith.divf %42, %43 : vector<2x768xf32>
    %45 = vector.extract_strided_slice %38 {offsets = [0, 768], sizes = [2, 256], strides = [1, 1]} : vector<2x1024xf32> to vector<2x256xf32>
    %46 = math.tanh %45 : vector<2x256xf32>
    %47 = vector.extract_strided_slice %44 {offsets = [0, 256], sizes = [2, 256], strides = [1, 1]} : vector<2x768xf32> to vector<2x256xf32>
    %48 = arith.mulf %47, %31 : vector<2x256xf32>
    %49 = vector.extract_strided_slice %44 {offsets = [0, 0], sizes = [2, 256], strides = [1, 1]} : vector<2x768xf32> to vector<2x256xf32>
    %50 = arith.mulf %49, %46 : vector<2x256xf32>
    %51 = arith.addf %48, %50 : vector<2x256xf32>
    %52 = vector.extract_strided_slice %44 {offsets = [0, 512], sizes = [2, 256], strides = [1, 1]} : vector<2x768xf32> to vector<2x256xf32>
    %53 = math.tanh %51 : vector<2x256xf32>
    %54 = arith.mulf %52, %53 : vector<2x256xf32>
    %55 = vector.extract_strided_slice %12 {offsets = [4, 0], sizes = [2, 1024], strides = [1, 1]} : vector<16x1024xf32> to vector<2x1024xf32>
    %56 = arith.truncf %54 : vector<2x256xf32> to vector<2x256xbf16>
    %cst_17 = arith.constant dense<0.000000e+00> : vector<2x1024xf32>
    %57 = tpu.matmul %56, %7, %cst_17 {dimension_numbers = #tpu.dot_dimension_numbers<[1], [0], [0], [1], [0, 0, 1, 1], [], []>} : vector<2x256xbf16>, vector<256x1024xbf16>, vector<2x1024xf32> -> vector<2x1024xf32>
    %58 = arith.addf %55, %57 : vector<2x1024xf32>
    %59 = vector.extract_strided_slice %58 {offsets = [0, 0], sizes = [2, 768], strides = [1, 1]} : vector<2x1024xf32> to vector<2x768xf32>
    %60 = arith.negf %59 : vector<2x768xf32>
    %61 = math.exp %60 : vector<2x768xf32>
    %cst_18 = arith.constant 1.000000e+00 : f32
    %62 = vector.broadcast %cst_18 : f32 to vector<2x768xf32>
    %63 = arith.addf %62, %61 : vector<2x768xf32>
    %64 = arith.divf %62, %63 : vector<2x768xf32>
    %65 = vector.extract_strided_slice %58 {offsets = [0, 768], sizes = [2, 256], strides = [1, 1]} : vector<2x1024xf32> to vector<2x256xf32>
    %66 = math.tanh %65 : vector<2x256xf32>
    %67 = vector.extract_strided_slice %64 {offsets = [0, 256], sizes = [2, 256], strides = [1, 1]} : vector<2x768xf32> to vector<2x256xf32>
    %68 = arith.mulf %67, %51 : vector<2x256xf32>
    %69 = vector.extract_strided_slice %64 {offsets = [0, 0], sizes = [2, 256], strides = [1, 1]} : vector<2x768xf32> to vector<2x256xf32>
    %70 = arith.mulf %69, %66 : vector<2x256xf32>
    %71 = arith.addf %68, %70 : vector<2x256xf32>
    %72 = vector.extract_strided_slice %64 {offsets = [0, 512], sizes = [2, 256], strides = [1, 1]} : vector<2x768xf32> to vector<2x256xf32>
    %73 = math.tanh %71 : vector<2x256xf32>
    %74 = arith.mulf %72, %73 : vector<2x256xf32>
    %75 = vector.extract_strided_slice %12 {offsets = [6, 0], sizes = [2, 1024], strides = [1, 1]} : vector<16x1024xf32> to vector<2x1024xf32>
    %76 = arith.truncf %74 : vector<2x256xf32> to vector<2x256xbf16>
    %cst_19 = arith.constant dense<0.000000e+00> : vector<2x1024xf32>
    %77 = tpu.matmul %76, %7, %cst_19 {dimension_numbers = #tpu.dot_dimension_numbers<[1], [0], [0], [1], [0, 0, 1, 1], [], []>} : vector<2x256xbf16>, vector<256x1024xbf16>, vector<2x1024xf32> -> vector<2x1024xf32>
    %78 = arith.addf %75, %77 : vector<2x1024xf32>
    %79 = vector.extract_strided_slice %78 {offsets = [0, 0], sizes = [2, 768], strides = [1, 1]} : vector<2x1024xf32> to vector<2x768xf32>
    %80 = arith.negf %79 : vector<2x768xf32>
    %81 = math.exp %80 : vector<2x768xf32>
    %cst_20 = arith.constant 1.000000e+00 : f32
    %82 = vector.broadcast %cst_20 : f32 to vector<2x768xf32>
    %83 = arith.addf %82, %81 : vector<2x768xf32>
    %84 = arith.divf %82, %83 : vector<2x768xf32>
    %85 = vector.extract_strided_slice %78 {offsets = [0, 768], sizes = [2, 256], strides = [1, 1]} : vector<2x1024xf32> to vector<2x256xf32>
    %86 = math.tanh %85 : vector<2x256xf32>
    %87 = vector.extract_strided_slice %84 {offsets = [0, 256], sizes = [2, 256], strides = [1, 1]} : vector<2x768xf32> to vector<2x256xf32>
    %88 = arith.mulf %87, %71 : vector<2x256xf32>
    %89 = vector.extract_strided_slice %84 {offsets = [0, 0], sizes = [2, 256], strides = [1, 1]} : vector<2x768xf32> to vector<2x256xf32>
    %90 = arith.mulf %89, %86 : vector<2x256xf32>
    %91 = arith.addf %88, %90 : vector<2x256xf32>
    %92 = vector.extract_strided_slice %84 {offsets = [0, 512], sizes = [2, 256], strides = [1, 1]} : vector<2x768xf32> to vector<2x256xf32>
    %93 = math.tanh %91 : vector<2x256xf32>
    %94 = arith.mulf %92, %93 : vector<2x256xf32>
    %95 = vector.extract_strided_slice %12 {offsets = [8, 0], sizes = [2, 1024], strides = [1, 1]} : vector<16x1024xf32> to vector<2x1024xf32>
    %96 = arith.truncf %94 : vector<2x256xf32> to vector<2x256xbf16>
    %cst_21 = arith.constant dense<0.000000e+00> : vector<2x1024xf32>
    %97 = tpu.matmul %96, %7, %cst_21 {dimension_numbers = #tpu.dot_dimension_numbers<[1], [0], [0], [1], [0, 0, 1, 1], [], []>} : vector<2x256xbf16>, vector<256x1024xbf16>, vector<2x1024xf32> -> vector<2x1024xf32>
    %98 = arith.addf %95, %97 : vector<2x1024xf32>
    %99 = vector.extract_strided_slice %98 {offsets = [0, 0], sizes = [2, 768], strides = [1, 1]} : vector<2x1024xf32> to vector<2x768xf32>
    %100 = arith.negf %99 : vector<2x768xf32>
    %101 = math.exp %100 : vector<2x768xf32>
    %cst_22 = arith.constant 1.000000e+00 : f32
    %102 = vector.broadcast %cst_22 : f32 to vector<2x768xf32>
    %103 = arith.addf %102, %101 : vector<2x768xf32>
    %104 = arith.divf %102, %103 : vector<2x768xf32>
    %105 = vector.extract_strided_slice %98 {offsets = [0, 768], sizes = [2, 256], strides = [1, 1]} : vector<2x1024xf32> to vector<2x256xf32>
    %106 = math.tanh %105 : vector<2x256xf32>
    %107 = vector.extract_strided_slice %104 {offsets = [0, 256], sizes = [2, 256], strides = [1, 1]} : vector<2x768xf32> to vector<2x256xf32>
    %108 = arith.mulf %107, %91 : vector<2x256xf32>
    %109 = vector.extract_strided_slice %104 {offsets = [0, 0], sizes = [2, 256], strides = [1, 1]} : vector<2x768xf32> to vector<2x256xf32>
    %110 = arith.mulf %109, %106 : vector<2x256xf32>
    %111 = arith.addf %108, %110 : vector<2x256xf32>
    %112 = vector.extract_strided_slice %104 {offsets = [0, 512], sizes = [2, 256], strides = [1, 1]} : vector<2x768xf32> to vector<2x256xf32>
    %113 = math.tanh %111 : vector<2x256xf32>
    %114 = arith.mulf %112, %113 : vector<2x256xf32>
    %115 = vector.extract_strided_slice %12 {offsets = [10, 0], sizes = [2, 1024], strides = [1, 1]} : vector<16x1024xf32> to vector<2x1024xf32>
    %116 = arith.truncf %114 : vector<2x256xf32> to vector<2x256xbf16>
    %cst_23 = arith.constant dense<0.000000e+00> : vector<2x1024xf32>
    %117 = tpu.matmul %116, %7, %cst_23 {dimension_numbers = #tpu.dot_dimension_numbers<[1], [0], [0], [1], [0, 0, 1, 1], [], []>} : vector<2x256xbf16>, vector<256x1024xbf16>, vector<2x1024xf32> -> vector<2x1024xf32>
    %118 = arith.addf %115, %117 : vector<2x1024xf32>
    %119 = vector.extract_strided_slice %118 {offsets = [0, 0], sizes = [2, 768], strides = [1, 1]} : vector<2x1024xf32> to vector<2x768xf32>
    %120 = arith.negf %119 : vector<2x768xf32>
    %121 = math.exp %120 : vector<2x768xf32>
    %cst_24 = arith.constant 1.000000e+00 : f32
    %122 = vector.broadcast %cst_24 : f32 to vector<2x768xf32>
    %123 = arith.addf %122, %121 : vector<2x768xf32>
    %124 = arith.divf %122, %123 : vector<2x768xf32>
    %125 = vector.extract_strided_slice %118 {offsets = [0, 768], sizes = [2, 256], strides = [1, 1]} : vector<2x1024xf32> to vector<2x256xf32>
    %126 = math.tanh %125 : vector<2x256xf32>
    %127 = vector.extract_strided_slice %124 {offsets = [0, 256], sizes = [2, 256], strides = [1, 1]} : vector<2x768xf32> to vector<2x256xf32>
    %128 = arith.mulf %127, %111 : vector<2x256xf32>
    %129 = vector.extract_strided_slice %124 {offsets = [0, 0], sizes = [2, 256], strides = [1, 1]} : vector<2x768xf32> to vector<2x256xf32>
    %130 = arith.mulf %129, %126 : vector<2x256xf32>
    %131 = arith.addf %128, %130 : vector<2x256xf32>
    %132 = vector.extract_strided_slice %124 {offsets = [0, 512], sizes = [2, 256], strides = [1, 1]} : vector<2x768xf32> to vector<2x256xf32>
    %133 = math.tanh %131 : vector<2x256xf32>
    %134 = arith.mulf %132, %133 : vector<2x256xf32>
    %135 = vector.extract_strided_slice %12 {offsets = [12, 0], sizes = [2, 1024], strides = [1, 1]} : vector<16x1024xf32> to vector<2x1024xf32>
    %136 = arith.truncf %134 : vector<2x256xf32> to vector<2x256xbf16>
    %cst_25 = arith.constant dense<0.000000e+00> : vector<2x1024xf32>
    %137 = tpu.matmul %136, %7, %cst_25 {dimension_numbers = #tpu.dot_dimension_numbers<[1], [0], [0], [1], [0, 0, 1, 1], [], []>} : vector<2x256xbf16>, vector<256x1024xbf16>, vector<2x1024xf32> -> vector<2x1024xf32>
    %138 = arith.addf %135, %137 : vector<2x1024xf32>
    %139 = vector.extract_strided_slice %138 {offsets = [0, 0], sizes = [2, 768], strides = [1, 1]} : vector<2x1024xf32> to vector<2x768xf32>
    %140 = arith.negf %139 : vector<2x768xf32>
    %141 = math.exp %140 : vector<2x768xf32>
    %cst_26 = arith.constant 1.000000e+00 : f32
    %142 = vector.broadcast %cst_26 : f32 to vector<2x768xf32>
    %143 = arith.addf %142, %141 : vector<2x768xf32>
    %144 = arith.divf %142, %143 : vector<2x768xf32>
    %145 = vector.extract_strided_slice %138 {offsets = [0, 768], sizes = [2, 256], strides = [1, 1]} : vector<2x1024xf32> to vector<2x256xf32>
    %146 = math.tanh %145 : vector<2x256xf32>
    %147 = vector.extract_strided_slice %144 {offsets = [0, 256], sizes = [2, 256], strides = [1, 1]} : vector<2x768xf32> to vector<2x256xf32>
    %148 = arith.mulf %147, %131 : vector<2x256xf32>
    %149 = vector.extract_strided_slice %144 {offsets = [0, 0], sizes = [2, 256], strides = [1, 1]} : vector<2x768xf32> to vector<2x256xf32>
    %150 = arith.mulf %149, %146 : vector<2x256xf32>
    %151 = arith.addf %148, %150 : vector<2x256xf32>
    %152 = vector.extract_strided_slice %144 {offsets = [0, 512], sizes = [2, 256], strides = [1, 1]} : vector<2x768xf32> to vector<2x256xf32>
    %153 = math.tanh %151 : vector<2x256xf32>
    %154 = arith.mulf %152, %153 : vector<2x256xf32>
    %155 = vector.extract_strided_slice %12 {offsets = [14, 0], sizes = [2, 1024], strides = [1, 1]} : vector<16x1024xf32> to vector<2x1024xf32>
    %156 = arith.truncf %154 : vector<2x256xf32> to vector<2x256xbf16>
    %cst_27 = arith.constant dense<0.000000e+00> : vector<2x1024xf32>
    %157 = tpu.matmul %156, %7, %cst_27 {dimension_numbers = #tpu.dot_dimension_numbers<[1], [0], [0], [1], [0, 0, 1, 1], [], []>} : vector<2x256xbf16>, vector<256x1024xbf16>, vector<2x1024xf32> -> vector<2x1024xf32>
    %158 = arith.addf %155, %157 : vector<2x1024xf32>
    %159 = vector.extract_strided_slice %158 {offsets = [0, 0], sizes = [2, 768], strides = [1, 1]} : vector<2x1024xf32> to vector<2x768xf32>
    %160 = arith.negf %159 : vector<2x768xf32>
    %161 = math.exp %160 : vector<2x768xf32>
    %cst_28 = arith.constant 1.000000e+00 : f32
    %162 = vector.broadcast %cst_28 : f32 to vector<2x768xf32>
    %163 = arith.addf %162, %161 : vector<2x768xf32>
    %164 = arith.divf %162, %163 : vector<2x768xf32>
    %165 = vector.extract_strided_slice %158 {offsets = [0, 768], sizes = [2, 256], strides = [1, 1]} : vector<2x1024xf32> to vector<2x256xf32>
    %166 = math.tanh %165 : vector<2x256xf32>
    %167 = vector.extract_strided_slice %164 {offsets = [0, 256], sizes = [2, 256], strides = [1, 1]} : vector<2x768xf32> to vector<2x256xf32>
    %168 = arith.mulf %167, %151 : vector<2x256xf32>
    %169 = vector.extract_strided_slice %164 {offsets = [0, 0], sizes = [2, 256], strides = [1, 1]} : vector<2x768xf32> to vector<2x256xf32>
    %170 = arith.mulf %169, %166 : vector<2x256xf32>
    %171 = arith.addf %168, %170 : vector<2x256xf32>
    %172 = vector.extract_strided_slice %164 {offsets = [0, 512], sizes = [2, 256], strides = [1, 1]} : vector<2x768xf32> to vector<2x256xf32>
    %173 = math.tanh %171 : vector<2x256xf32>
    %174 = arith.mulf %172, %173 : vector<2x256xf32>
    %c0_29 = arith.constant 0 : index
    %c0_30 = arith.constant 0 : index
    %c0_31 = arith.constant 0 : index
    %175 = vector.load %arg10[%c0_29, %c0_30, %c0_31] : memref<1x2x256xf32, #tpu.memory_space<vmem>>, vector<1x2x256xf32>
    %176 = vector.shape_cast %175 : vector<1x2x256xf32> to vector<2x256xf32>
    %177 = vector.shape_cast %174 : vector<2x256xf32> to vector<1x2x256xf32>
    tpu.vector_store %arg10[%c0_29, %c0_30, %c0_31], %177 {strides = array<i32>} : memref<1x2x256xf32, #tpu.memory_space<vmem>>, vector<1x2x256xf32>,
    %c0_32 = arith.constant 0 : index
    %c0_33 = arith.constant 0 : index
    %c0_34 = arith.constant 0 : index
    %178 = vector.load %arg11[%c0_32, %c0_33, %c0_34] : memref<1x2x256xf32, #tpu.memory_space<vmem>>, vector<1x2x256xf32>
    %179 = vector.shape_cast %178 : vector<1x2x256xf32> to vector<2x256xf32>
    %180 = vector.shape_cast %171 : vector<2x256xf32> to vector<1x2x256xf32>
    tpu.vector_store %arg11[%c0_32, %c0_33, %c0_34], %180 {strides = array<i32>} : memref<1x2x256xf32, #tpu.memory_space<vmem>>, vector<1x2x256xf32>,
    %c2_i32 = arith.constant 2 : i32
    %181 = arith.cmpi slt, %arg0, %c2_i32 : i32
    %182 = arith.extui %181 : i1 to i32
    %c0_i32_35 = arith.constant 0 : i32
    %183 = arith.cmpi ne, %182, %c0_i32_35 : i32
    scf.if %183 {
      %187 = tpu.concatenate %34, %54, %74, %94, %114, %134, %154, %174 in 0 : vector<2x256xf32>, vector<2x256xf32>, vector<2x256xf32>, vector<2x256xf32>, vector<2x256xf32>, vector<2x256xf32>, vector<2x256xf32>, vector<2x256xf32> -> vector<16x256xf32>
      %188 = arith.truncf %187 : vector<16x256xf32> to vector<16x256xbf16>
      %c0_38 = arith.constant 0 : index
      %c0_39 = arith.constant 0 : index
      %189 = vector.load %arg12[%c0_38, %c0_39] : memref<16x256xbf16, #tpu.memory_space<vmem>>, vector<16x256xbf16>
      tpu.vector_store %arg12[%c0_38, %c0_39], %188 {strides = array<i32>} : memref<16x256xbf16, #tpu.memory_space<vmem>>, vector<16x256xbf16>,
    } else {
    }
    %c2_i32_36 = arith.constant 2 : i32
    %184 = arith.cmpi eq, %arg0, %c2_i32_36 : i32
    %185 = arith.extui %184 : i1 to i32
    %c0_i32_37 = arith.constant 0 : i32
    %186 = arith.cmpi ne, %185, %c0_i32_37 : i32
    scf.if %186 {
      %cst_38 = arith.constant dense<0.000000e+00> : vector<2xf32>
      %187 = vector.multi_reduction <add>, %174, %cst_38 [1] : vector<2x256xf32> to vector<2xf32>
      %188 = vector.shape_cast %187 : vector<2xf32> to vector<2x1xf32>
      %cst_39 = arith.constant 2.560000e+02 : f32
      %189 = vector.broadcast %cst_39 : f32 to vector<2x1xf32>
      %190 = arith.divf %188, %189 : vector<2x1xf32>
      %191 = vector.broadcast %190 : vector<2x1xf32> to vector<2x256xf32>
      %192 = arith.subf %174, %191 : vector<2x256xf32>
      %193 = arith.mulf %192, %192 : vector<2x256xf32>
      %cst_40 = arith.constant dense<0.000000e+00> : vector<2xf32>
      %194 = vector.multi_reduction <add>, %193, %cst_40 [1] : vector<2x256xf32> to vector<2xf32>
      %195 = vector.shape_cast %194 : vector<2xf32> to vector<2x1xf32>
      %cst_41 = arith.constant 2.560000e+02 : f32
      %196 = vector.broadcast %cst_41 : f32 to vector<2x1xf32>
      %197 = arith.divf %195, %196 : vector<2x1xf32>
      %198 = vector.broadcast %190 : vector<2x1xf32> to vector<2x256xf32>
      %199 = arith.subf %174, %198 : vector<2x256xf32>
      %cst_42 = arith.constant 9.99999974E-6 : f32
      %200 = vector.broadcast %cst_42 : f32 to vector<2x1xf32>
      %201 = arith.addf %197, %200 : vector<2x1xf32>
      %202 = math.rsqrt %201 : vector<2x1xf32>
      %203 = vector.broadcast %202 : vector<2x1xf32> to vector<2x256xf32>
      %204 = arith.mulf %199, %203 : vector<2x256xf32>
      %c0_43 = arith.constant 0 : index
      %c0_44 = arith.constant 0 : index
      %205 = vector.load %arg5[%c0_43, %c0_44] : memref<1x256xf32, #tpu.memory_space<vmem>>, vector<1x256xf32>
      %206 = vector.broadcast %205 : vector<1x256xf32> to vector<2x256xf32>
      %207 = arith.mulf %204, %206 : vector<2x256xf32>
      %c0_45 = arith.constant 0 : index
      %c0_46 = arith.constant 0 : index
      %208 = vector.load %arg6[%c0_45, %c0_46] : memref<1x256xf32, #tpu.memory_space<vmem>>, vector<1x256xf32>
      %209 = vector.broadcast %208 : vector<1x256xf32> to vector<2x256xf32>
      %210 = arith.addf %207, %209 : vector<2x256xf32>
      %c0_47 = arith.constant 0 : index
      %c0_48 = arith.constant 0 : index
      %211 = vector.load %arg7[%c0_47, %c0_48] : memref<256x128xf32, #tpu.memory_space<vmem>>, vector<256x128xf32>
      %cst_49 = arith.constant dense<0.000000e+00> : vector<2x128xf32>
      %212 = tpu.matmul %210, %211, %cst_49 {dimension_numbers = #tpu.dot_dimension_numbers<[1], [0], [0], [1], [0, 0, 1, 1], [], []>} : vector<2x256xf32>, vector<256x128xf32>, vector<2x128xf32> -> vector<2x128xf32>
      %c0_50 = arith.constant 0 : index
      %c0_51 = arith.constant 0 : index
      %213 = vector.load %arg8[%c0_50, %c0_51] : memref<1x128xf32, #tpu.memory_space<vmem>>, vector<1x128xf32>
      %214 = vector.broadcast %213 : vector<1x128xf32> to vector<2x128xf32>
      %215 = arith.addf %212, %214 : vector<2x128xf32>
      %c0_52 = arith.constant 0 : index
      %c0_53 = arith.constant 0 : index
      %216 = vector.load %arg9[%c0_52, %c0_53] : memref<2x128xf32, #tpu.memory_space<vmem>>, vector<2x128xf32>
      tpu.vector_store %arg9[%c0_52, %c0_53], %215 {strides = array<i32>} : memref<2x128xf32, #tpu.memory_space<vmem>>, vector<2x128xf32>,
    } else {
    }
    return
  }
  func.func @transform_0(%arg0: i32) -> (i32, i32) {
    %c0_i32 = arith.constant 0 : i32
    %c0_i32_0 = arith.constant 0 : i32
    %c0_i32_1 = arith.constant 0 : i32
    return %c0_i32, %c0_i32_0 : i32, i32
  }
  func.func @transform_1(%arg0: i32) -> (i32, i32, i32) {
    %c0_i32 = arith.constant 0 : i32
    %c0_i32_0 = arith.constant 0 : i32
    %c0_i32_1 = arith.constant 0 : i32
    return %arg0, %c0_i32, %c0_i32_0 : i32, i32, i32
  }
  func.func @transform_2(%arg0: i32) -> (i32, i32, i32) {
    %c0_i32 = arith.constant 0 : i32
    %c0_i32_0 = arith.constant 0 : i32
    %c0_i32_1 = arith.constant 0 : i32
    return %arg0, %c0_i32, %c0_i32_0 : i32, i32, i32
  }
  func.func @transform_3(%arg0: i32) -> (i32, i32, i32) {
    %c0_i32 = arith.constant 0 : i32
    %c0_i32_0 = arith.constant 0 : i32
    %c0_i32_1 = arith.constant 0 : i32
    return %arg0, %c0_i32, %c0_i32_0 : i32, i32, i32
  }
  func.func @transform_4(%arg0: i32) -> (i32, i32) {
    %c0_i32 = arith.constant 0 : i32
    %c0_i32_0 = arith.constant 0 : i32
    %c0_i32_1 = arith.constant 0 : i32
    return %c0_i32, %c0_i32_0 : i32, i32
  }
  func.func @transform_5(%arg0: i32) -> (i32, i32) {
    %c0_i32 = arith.constant 0 : i32
    %c0_i32_0 = arith.constant 0 : i32
    %c0_i32_1 = arith.constant 0 : i32
    return %c0_i32, %c0_i32_0 : i32, i32
  }
  func.func @transform_6(%arg0: i32) -> (i32, i32) {
    %c0_i32 = arith.constant 0 : i32
    %c0_i32_0 = arith.constant 0 : i32
    %c0_i32_1 = arith.constant 0 : i32
    return %c0_i32, %c0_i32_0 : i32, i32
  }
  func.func @transform_7(%arg0: i32) -> (i32, i32) {
    %c0_i32 = arith.constant 0 : i32
    %c0_i32_0 = arith.constant 0 : i32
    %c0_i32_1 = arith.constant 0 : i32
    return %c0_i32, %c0_i32_0 : i32, i32
  }
  func.func @transform_8(%arg0: i32) -> (i32, i32) {
    %c0_i32 = arith.constant 0 : i32
    %c0_i32_0 = arith.constant 0 : i32
    %c0_i32_1 = arith.constant 0 : i32
    return %c0_i32, %c0_i32_0 : i32, i32
  }
  func.func @transform_9(%arg0: i32) -> (i32, i32, i32) {
    %c0_i32 = arith.constant 0 : i32
    %c0_i32_0 = arith.constant 0 : i32
    %c0_i32_1 = arith.constant 0 : i32
    return %arg0, %c0_i32, %c0_i32_0 : i32, i32, i32
  }
  func.func @transform_10(%arg0: i32) -> (i32, i32, i32) {
    %c0_i32 = arith.constant 0 : i32
    %c0_i32_0 = arith.constant 0 : i32
    %c0_i32_1 = arith.constant 0 : i32
    return %arg0, %c0_i32, %c0_i32_0 : i32, i32, i32
  }
}

</mosaic_0001>

<bundles_post_ra>
// kernel: fused_forward.1
= control target key start
LH: loop header
LB: loop body
LE: loop exit
PB: predicated region body
PF: predicated region fallthrough
CT: control target
= control target key end

     0   :  { %s8264_s0 = inlined_call_operand.vmem [shape: s32[16,1], index: 0, kind: input, shape index: {}]   ;;  %s8265_s1 = inlined_call_operand.hbm [shape: bf16[3,256,1024], index: 1, kind: input, shape index: {}]   ;;  %s8266_s2 = inlined_call_operand.hbm [shape: bf16[3,256,1024], index: 2, kind: input, shape index: {}]   ;;  %s8267_s3 = inlined_call_operand.hbm [shape: f32[3,1,1024], index: 3, kind: input, shape index: {}]   ;;  %s8268_s4 = inlined_call_operand.hbm [shape: f32[1,256], index: 4, kind: input, shape index: {}]   ;;  %s8269_s5 = inlined_call_operand.hbm [shape: f32[1,256], index: 5, kind: input, shape index: {}]   ;;  %s8270_s6 = inlined_call_operand.hbm [shape: f32[256,128], index: 6, kind: input, shape index: {}]   ;;  %s8271_s7 = inlined_call_operand.hbm [shape: f32[1,128], index: 7, kind: input, shape index: {}]   ;;  %s8272_s8 = inlined_call_operand.hbm [shape: f32[2,128], index: 8, kind: output, shape index: {0}]   ;;  %s8273_s9 = inlined_call_operand.hbm [shape: f32[3,2,256], index: 9, kind: output, shape index: {1}]   ;;  %s8274_s10 = inlined_call_operand.hbm [shape: f32[3,2,256], index: 10, kind: output, shape index: {2}]  }
   0x1   :  { %8599 = sst [smem:[#allocation172_spill]] %s8266_s2 }
   0x2   :  { %8600 = sst [smem:[#allocation173_spill]] %s8268_s4 }
   0x3   :  { %8601 = sst [smem:[#allocation174_spill]] %s8270_s6 }
   0x4   :  { %8602 = sst [smem:[#allocation175_spill]] %s8272_s8 }
   0x5   :  { %8603 = sst [smem:[#allocation176_spill]] %s8274_s10 }
   0x6   :  { %16 = vsyncpa [#allocation4], 0 }
   0x7   :  { %18 = vsyncpa [#allocation4 + $0x1], 0 }
   0x8   :  { %19 = vsyncpa [#allocation7], 0 }
   0x9   :  { %21 = vsyncpa [#allocation7 + $0x1], 0 }
   0xa   :  { %22 = vsyncpa [#allocation10], 0 }
   0xb   :  { %23 = vsyncpa [#allocation13], 0 }
   0xc   :  { %24 = vsyncpa [#allocation5], 0 }
   0xd   :  { %25 = vsyncpa [#allocation17], 0 }
   0xe   :  { %27 = vsyncpa [#allocation17 + $0x1], 0  ;;  %s5951_s13 = smov 0   ;;  %s5953_s14 = smov 0  }
   0xf   :  { %s5955_s15 = smov 0   ;;  %s5957_s16 = smov 0  }
  0x10 LB: > { %8604 = sst [smem:[#allocation25_spill]] %s5872_s15  ;;  %s5970_s17 = sadd.s32 4294967295, %s5876_s16   ;;  %s5876_s16 = sphi %s5957_s16, %s9434_s16   ;;  %s5872_s15 = sphi %s5955_s15, %s9436_s15   ;;  %s5868_s14 = sphi %s5953_s14, %s9438_s14   ;;  %s5864_s13 = sphi %s5951_s13, %s9437_s13  }
  0x11   : > { %s8278_s18 = sadd.s32 4294967294, %s5876_s16   ;;  %p74_p0 = scmp.ne.s32.totalorder %s5868_s14, %s5864_s13 }
  0x12   : > { %p8275_p1 = scmp.eq.s32.totalorder %s5970_s17, 0  ;;  %p261_p3 = scmp.eq.s32.totalorder %s8278_s18, 2 }
  0x13   : > { %p4743_p5 = scmp.ge.s32.totalorder %s5876_s16, 1  ;;  %p294_p7 = scmp.lt.s32.totalorder %s5876_s16, 4 }
  0x14   : > { %p5980_p4 = por %p8275_p1, %p74_p0  ;;  %p5985_p6 = por %p261_p3, %p74_p0 }
  0x15   : > { %p5991_p9 = pnand %p4743_p5, %p294_p7  ;;  %s5878_s22 = smov [#allocation9]  }
  0x16   : > { %s8605_s19 = scalar_select %p5980_p4, 1, 0 }
  0x17   : > { %s8606_s20 = scalar_select %p5985_p6, 1, 0 }
  0x18   : > { %s8608_s21 = scalar_select %p5991_p9, 1, 0 }
  0x19   : > { %8607 = sst [smem:[#allocation26_spill]] %s8606_s20  ;;  %s310_s23 = sshll.u32 %s5878_s22, 4  ;;  %s311_s23 = int_to_ptr.vmem [resolvable:$true] %s310_s23 }
  0x1a   : > { %p5192_p10 = pneg %p5991_p9  ;;  %s5879_s24 = smov [#allocation12]  }
  0x1b   : > { %s331_s25 = sshll.u32 %s5879_s24, 4  ;;  %s8610_s4 = sld [smem:[#allocation173_spill]]  ;;  %s6003_s25 = int_to_ptr.vmem [resolvable:$true] %s331_s25 }
  0x1c   : > { %p5999_p11 = pnand %p5192_p10, %p8275_p1 }
  0x1e   : > { %s8609_s26 = scalar_select %p5999_p11, 1, 0 }
  0x1f   : > { %p6013_p13 = pneg %p5999_p11 }
  0x21   : > { %s5538_s29 = scalar_lea.hbm %s8610_s4, 32 }
  0x22   : > { %p5539_p12 = scmp.ne.s32.totalorder %s8610_s4, %s5538_s29  ;;  %p5545_p5 = scmp.lt.u32.totalorder %s5538_s29, %s8610_s4 }
  0x23   : > { %s8611_s12 = scalar_select %p6013_p13, 1, 0 }
  0x24   : > { %p5541_p0 = pnand %p6013_p13, %p5539_p12 }
  0x26   : > { %p5542_p3 = pneg %p5541_p0 }
  0x28   : > { %p5547_p7 = pnand %p5545_p5, %p5542_p3 }
  0x2a   : > { %5550 = shalt.err (!%p5547_p7)
}
  0x2b   : > { %s5551_s24 = scalar_lea.vmem %s311_s23, 32  ;;  %p5559_p2 = scmp.lt.s32.totalorder %s311_s23, %s311_s23 }
  0x2c   : > { %p5552_p10 = scmp.ne.s32.totalorder %s311_s23, %s5551_s24  ;;  %p5560_p6 = scmp.lt.s32.totalorder %s5551_s24, %s5551_s24 }
  0x2e   : > { %p5554_p8 = pnand %p5552_p10, %p6013_p13  ;;  %p5561_p4 = por %p5560_p6, %p5559_p2 }
  0x30   : > { %p5555_p1 = pneg %p5554_p8 }
  0x32   : > { %p5562_p9 = pnand %p5561_p4, %p5555_p1 }
  0x34   : > { %5565 = shalt.err (!%p5562_p9)
}
  0x35   : > { %5195 = dma.hbm_to_vmem [thread:$0]  (!%p5999_p11), %s8610_s4, 32, %s311_s23, [#allocation10]  }
  0x36   : > { %s8612_s6 = sld [smem:[#allocation174_spill]] }
  0x3c   : > { %s5566_s11 = scalar_lea.hbm %s8612_s6, 4096 }
  0x3d   : > { %p5567_p8 = scmp.ne.s32.totalorder %s8612_s6, %s5566_s11  ;;  %p5573_p1 = scmp.lt.u32.totalorder %s5566_s11, %s8612_s6 }
  0x3f   : > { %p5569_p12 = pnand %p5567_p8, %p6013_p13 }
  0x41   : > { %p5570_p2 = pneg %p5569_p12 }
  0x43   : > { %p5575_p4 = pnand %p5573_p1, %p5570_p2 }
  0x45   : > { %5578 = shalt.err (!%p5575_p4)
}
  0x46   : > { %s5579_s23 = scalar_lea.vmem %s6003_s25, 4096  ;;  %p5587_p3 = scmp.lt.s32.totalorder %s6003_s25, %s6003_s25 }
  0x47   : > { %p5580_p6 = scmp.ne.s32.totalorder %s6003_s25, %s5579_s23  ;;  %p5588_p5 = scmp.lt.s32.totalorder %s5579_s23, %s5579_s23 }
  0x49   : > { %p5582_p9 = pnand %p5580_p6, %p6013_p13  ;;  %p5589_p7 = por %p5588_p5, %p5587_p3 }
  0x4b   : > { %p5583_p0 = pneg %p5582_p9 }
  0x4d   : > { %p5590_p10 = pnand %p5589_p7, %p5583_p0 }
  0x4f   : > { %5593 = shalt.err (!%p5590_p10)
}
  0x50   : > { %s5880_s27 = smov 128   ;;  %s5881_s18 = smov 8  }
  0x51   : > { %5201 = dma.hbm_to_vmem [thread:$0]  (!%p5999_p11), %s8612_s6, 4096, %s6003_s25, [#allocation13], %s5880_s27, %s5880_s27, %s5881_s18  }
  0x52   : > { %s6053_s30 = sadd.s32 1, %s5876_s16   ;;  %s61_s11 = sadd.s32 1, %s5872_s15 }
  0x53   : > { %8613 = sst [smem:[#allocation27_spill]] %s6053_s30  ;;  %s58_s13 = ssub.s32 %s5876_s16, %s6053_s30 }
  0x54   : > { %p68_p8 = scmp.ne.s32.totalorder %s5872_s15, %s5868_s14  ;;  %p59_p12 = scmp.eq.s32.totalorder %s58_s13, 0 }
  0x55   : > { %p69_p2 = scmp.eq.s32.totalorder %s5876_s16, 0  ;;  %p8614_p1 = scmp.eq.s32.totalorder %s5970_s17, 2 }
  0x56   : > { %p5226_p6 = scmp.lt.s32.totalorder %s5876_s16, 3  ;;  %s6072_s23 = sand.u32 1, %s5872_s15  }
  0x57   : > { %p6063_p4 = por %p8614_p1, %p68_p8  ;;  %p70_p9 = por %p69_p2, %p68_p8 }
  0x58   : > { %s6069_s24 = scalar_select %p59_p12, %s5872_s15, %s61_s11  }
  0x59   : > { %s8615_s22 = scalar_select %p6063_p4, 1, 0 }
  0x5a   : > { %8616 = sst [smem:[#allocation28_spill]] %s6069_s24  ;;  %s8283_s25 = sshll.u32 %s6072_s23, 10 }
  0x5b   : > { %s8284_s27 = sshll.u32 %s5876_s16, 14  ;;  %p6076_p0 = pnand %p5226_p6, %p70_p9 }
  0x5c   : > { %s377_s28 = sand.u32 1, %s5876_s16   ;;  %s8618_s2 = sld [smem:[#allocation172_spill]] }
  0x5d   : > { %s8617_s18 = scalar_select %p6076_p0, 1, 0 }
  0x5e   : > { %s381_s11 = scalar_lea.vmem [#allocation6], %s8283_s25  ;;  %s5882_s24 = smov [#allocation11]  }
  0x5f   : > { %s388_s6 = sshll.u32 %s381_s11, 4  ;;  %s6092_s15 = sshll.u32 %s5882_s24, 4  ;;  %s6090_s6 = int_to_ptr.vmem [resolvable:$true] %s388_s6  ;;  %s322_s15 = int_to_ptr.vmem [resolvable:$true] %s6092_s15 }
  0x60   : > { %s6094_s30 = scalar_lea.sflag [#allocation7], %s377_s28  ;;  %p6100_p5 = pneg %p6076_p0 }
  0x62   : > { %s6086_s4 = scalar_lea.hbm %s8618_s2, %s8284_s27  ;;  %s5599_s25 = scalar_lea.hbm %s8618_s2, 49152 }
  0x63   : > { %s5594_s20 = scalar_lea.hbm %s6086_s4, 16384  ;;  %p5600_p8 = scmp.lt.u32.totalorder %s6086_s4, %s8618_s2 }
  0x64   : > { %p5595_p3 = scmp.ne.s32.totalorder %s6086_s4, %s5594_s20  ;;  %p5601_p12 = scmp.lt.u32.totalorder %s5599_s25, %s5594_s20 }
  0x65   : > { %s8619_s29 = scalar_select %p6100_p5, 1, 0 }
  0x66   : > { %p5597_p7 = pnand %p6100_p5, %p5595_p3  ;;  %p5602_p2 = por %p5601_p12, %p5600_p8 }
  0x67   : > { %p5603_p1 = scmp.lt.u32.totalorder %s5594_s20, %s6086_s4 }
  0x68   : > { %p5598_p10 = pneg %p5597_p7 }
  0x69   : > { %p5604_p6 = por %p5603_p1, %p5602_p2 }
  0x6b   : > { %p5605_p9 = pnand %p5604_p6, %p5598_p10 }
  0x6d   : > { %5608 = shalt.err (!%p5605_p9)
}
  0x6e   : > { %s5609_s28 = scalar_lea.vmem %s6090_s6, 16384  ;;  %s5883_s13 = smov [#allocation6]  }
  0x6f   : > { %p5610_p3 = scmp.ne.s32.totalorder %s6090_s6, %s5609_s28  ;;  %s5614_s11 = sshll.u32 %s5883_s13, 4  ;;  %s5615_s11 = int_to_ptr.vmem [resolvable:$false] %s5614_s11 }
  0x70   : > { %s5616_s27 = scalar_lea.vmem %s5615_s11, 32768  ;;  %p5617_p11 = scmp.lt.s32.totalorder %s6090_s6, %s5615_s11 }
  0x71   : > { %p5612_p7 = pnand %p5610_p3, %p6100_p5  ;;  %p5618_p13 = scmp.lt.s32.totalorder %s5616_s27, %s5609_s28 }
  0x73   : > { %p5613_p4 = pneg %p5612_p7  ;;  %p5619_p8 = por %p5618_p13, %p5617_p11 }
  0x75   : > { %p5620_p12 = pnand %p5619_p8, %p5613_p4 }
  0x77   : > { %5623 = shalt.err (!%p5620_p12)
}
  0x78   : > { %s8294_s20 = smov 512   ;;  %s5885_s25 = smov 32  }
  0x79   : > { %5211 = dma.hbm_to_vmem [thread:$0]  (!%p6076_p0), %s6086_s4, 16384, %s6090_s6, %s6094_s30, %s8294_s20, %s8294_s20, %s5885_s25  }
  0x7a   : > { %s5624_s28 = scalar_lea.hbm %s8269_s5, 32  ;;  %p8620_p13 = scmp.ne.s32.totalorder %s8611_s12, 0 }
  0x7b   : > { %p5625_p11 = scmp.ne.s32.totalorder %s8269_s5, %s5624_s28  ;;  %p5631_p2 = scmp.lt.u32.totalorder %s5624_s28, %s8269_s5 }
  0x7d   : > { %p5627_p4 = pnand %p5625_p11, %p8620_p13 }
  0x7f   : > { %p5628_p10 = pneg %p5627_p4 }
  0x81   : > { %p5633_p1 = pnand %p5631_p2, %p5628_p10 }
  0x83   : > { %5636 = shalt.err (!%p5633_p1)
}
  0x84   : > { %s5637_s10 = scalar_lea.vmem %s322_s15, 32  ;;  %p5645_p7 = scmp.lt.s32.totalorder %s322_s15, %s322_s15 }
  0x85   : > { %p5638_p6 = scmp.ne.s32.totalorder %s322_s15, %s5637_s10  ;;  %p5646_p8 = scmp.lt.s32.totalorder %s5637_s10, %s5637_s10 }
  0x87   : > { %p5640_p9 = pnand %p5638_p6, %p8620_p13  ;;  %p5647_p12 = por %p5646_p8, %p5645_p7 }
  0x89   : > { %p5641_p3 = pneg %p5640_p9 }
  0x8b   : > { %p5648_p0 = pnand %p5647_p12, %p5641_p3 }
  0x8d   : > { %5651 = shalt.err (!%p5648_p0)
}
  0x8e   : > { %p8621_p11 = scmp.ne.s32.totalorder %s8609_s26, 0  ;;  %s5886_s2 = smov [#allocation14]  }
  0x8f   : > { %s345_s8 = sshll.u32 %s5886_s2, 4  ;;  %s5652_s28 = scalar_lea.hbm %s8271_s7, 16  ;;  %s346_s8 = int_to_ptr.vmem [resolvable:$true] %s345_s8 }
  0x90   : > { %5198 = dma.hbm_to_vmem [thread:$0]  (!%p8621_p11), %s8269_s5, 32, %s322_s15, [#allocation10]  }
  0x91   : > { %p5653_p4 = scmp.ne.s32.totalorder %s8271_s7, %s5652_s28  ;;  %p5659_p2 = scmp.lt.u32.totalorder %s5652_s28, %s8271_s7 }
  0x93   : > { %p5655_p0 = pnand %p5653_p4, %p8620_p13 }
  0x95   : > { %p5656_p10 = pneg %p5655_p0 }
  0x97   : > { %p5661_p1 = pnand %p5659_p2, %p5656_p10 }
  0x99   : > { %5664 = shalt.err (!%p5661_p1)
}
  0x9a   : > { %s5665_s15 = scalar_lea.vmem %s346_s8, 16  ;;  %s5672_s4 = scalar_lea.vmem %s346_s8, 32 }
  0x9b   : > { %p5666_p6 = scmp.ne.s32.totalorder %s346_s8, %s5665_s15  ;;  %p5673_p7 = scmp.lt.s32.totalorder %s346_s8, %s346_s8 }
  0x9c   : > { %p5674_p8 = scmp.lt.s32.totalorder %s5672_s4, %s5665_s15 }
  0x9d   : > { %p5668_p9 = pnand %p5666_p6, %p8620_p13 }
  0x9e   : > { %p5675_p12 = por %p5674_p8, %p5673_p7 }
  0x9f   : > { %p5669_p3 = pneg %p5668_p9 }
  0xa1   : > { %p5676_p5 = pnand %p5675_p12, %p5669_p3 }
  0xa3   : > { %5679 = shalt.err (!%p5676_p5)
}
  0xa4   : > { %5204 = dma.hbm_to_vmem [thread:$0]  (!%p8621_p11), %s8271_s7, 16, %s346_s8, [#allocation13]  }
  0xa5   : > { %s8622_s12 = sshll.u32 %s5876_s16, 14  ;;  %s8623_s28 = sshll.u32 %s6072_s23, 10 }
  0xa6   : > { %s6169_s13 = scalar_lea.hbm %s8265_s1, %s8622_s12  ;;  %s360_s26 = scalar_lea.vmem [#allocation3], %s8623_s28 }
  0xa7   : > { %s367_s11 = sshll.u32 %s360_s26, 4  ;;  %s4755_s27 = sshll.u32 %s6072_s23, 3  ;;  %s6173_s11 = int_to_ptr.vmem [resolvable:$true] %s367_s11 }
  0xa8   : > { %s357_s10 = scalar_lea.sflag [#allocation4], %s6072_s23  ;;  %s5680_s15 = scalar_lea.hbm %s6169_s13, 16384 }
  0xa9   : > { %p5681_p5 = scmp.ne.s32.totalorder %s6169_s13, %s5680_s15  ;;  %p8624_p13 = scmp.ne.s32.totalorder %s8619_s29, 0 }
  0xaa   : > { %s5685_s6 = scalar_lea.hbm %s8265_s1, 49152  ;;  %p5686_p0 = scmp.lt.u32.totalorder %s6169_s13, %s8265_s1 }
  0xab   : > { %p5683_p11 = pnand %p5681_p5, %p8624_p13  ;;  %p5687_p10 = scmp.lt.u32.totalorder %s5685_s6, %s5680_s15 }
  0xac   : > { %p5689_p1 = scmp.lt.u32.totalorder %s5680_s15, %s6169_s13 }
  0xad   : > { %p5684_p4 = pneg %p5683_p11  ;;  %p5688_p2 = por %p5687_p10, %p5686_p0 }
  0xaf   : > { %p5690_p6 = por %p5689_p1, %p5688_p2 }
  0xb1   : > { %p5691_p9 = pnand %p5690_p6, %p5684_p4 }
  0xb3   : > { %5694 = shalt.err (!%p5691_p9)
}
  0xb4   : > { %s5695_s20 = scalar_lea.vmem %s6173_s11, 16384  ;;  %s5887_s24 = smov [#allocation3]  }
  0xb5   : > { %p5696_p3 = scmp.ne.s32.totalorder %s6173_s11, %s5695_s20  ;;  %s5700_s28 = sshll.u32 %s5887_s24, 4  ;;  %s5701_s28 = int_to_ptr.vmem [resolvable:$false] %s5700_s28 }
  0xb6   : > { %s5702_s26 = scalar_lea.vmem %s5701_s28, 32768  ;;  %p5703_p12 = scmp.lt.s32.totalorder %s6173_s11, %s5701_s28 }
  0xb7   : > { %p5698_p7 = pnand %p5696_p3, %p8624_p13  ;;  %p5704_p5 = scmp.lt.s32.totalorder %s5702_s26, %s5695_s20 }
  0xb9   : > { %p5699_p8 = pneg %p5698_p7  ;;  %p5705_p11 = por %p5704_p5, %p5703_p12 }
  0xbb   : > { %p5706_p0 = pnand %p5705_p11, %p5699_p8 }
  0xbd   : > { %5709 = shalt.err (!%p5706_p0)
}
  0xbe   : > { %p8625_p4 = scmp.ne.s32.totalorder %s8617_s18, 0  ;;  %s8626_s15 = smov 512  }
  0xbf   : > { %s5092_s8 = sshll.u32 %s5876_s16, 7  ;;  %s402_s12 = scalar_lea.vmem [#allocation8], %s4755_s27 }
  0xc0   : > { %5208 = dma.hbm_to_vmem [thread:$0]  (!%p8625_p4), %s6169_s13, 16384, %s6173_s11, %s357_s10, %s8626_s15, %s8626_s15, %s5885_s25  }
  0xc1   : > { %s6207_s2 = scalar_lea.hbm %s8267_s3, %s5092_s8  ;;  %s410_s20 = sshll.u32 %s402_s12, 4  ;;  %s411_s20 = int_to_ptr.vmem [resolvable:$true] %s410_s20 }
  0xc2   : > { %s5710_s24 = scalar_lea.hbm %s6207_s2, 128  ;;  %s5715_s11 = scalar_lea.hbm %s8267_s3, 384 }
  0xc3   : > { %p5711_p10 = scmp.ne.s32.totalorder %s6207_s2, %s5710_s24  ;;  %p5716_p6 = scmp.lt.u32.totalorder %s6207_s2, %s8267_s3 }
  0xc4   : > { %p5717_p9 = scmp.lt.u32.totalorder %s5715_s11, %s5710_s24  ;;  %p5719_p7 = scmp.lt.u32.totalorder %s5710_s24, %s6207_s2 }
  0xc5   : > { %p5713_p2 = pnand %p5711_p10, %p8624_p13 }
  0xc6   : > { %p5718_p3 = por %p5717_p9, %p5716_p6 }
  0xc7   : > { %p5714_p1 = pneg %p5713_p2 }
  0xc8   : > { %p5720_p8 = por %p5719_p7, %p5718_p3 }
  0xca   : > { %p5721_p12 = pnand %p5720_p8, %p5714_p1 }
  0xcc   : > { %5724 = shalt.err (!%p5721_p12)
}
  0xcd   : > { %s5725_s23 = scalar_lea.vmem %s411_s20, 128  ;;  %s5888_s27 = smov [#allocation8]  }
  0xce   : > { %p5726_p5 = scmp.ne.s32.totalorder %s411_s20, %s5725_s23  ;;  %s5730_s26 = sshll.u32 %s5888_s27, 4  ;;  %s5731_s26 = int_to_ptr.vmem [resolvable:$false] %s5730_s26 }
  0xcf   : > { %s5732_s15 = scalar_lea.vmem %s5731_s26, 256  ;;  %p5733_p10 = scmp.lt.s32.totalorder %s411_s20, %s5731_s26 }
  0xd0   : > { %p5728_p11 = pnand %p5726_p5, %p8624_p13  ;;  %p5734_p2 = scmp.lt.s32.totalorder %s5732_s15, %s5725_s23 }
  0xd2   : > { %p5729_p0 = pneg %p5728_p11  ;;  %p5735_p4 = por %p5734_p2, %p5733_p10 }
  0xd4   : > { %p5736_p6 = pnand %p5735_p4, %p5729_p0 }
  0xd6   : > { %5739 = shalt.err (!%p5736_p6)
}
  0xd7   : > { %p8627_p9 = scmp.ne.s32.totalorder %s8617_s18, 0  ;;  %p8628_p1 = scmp.ne.s32.totalorder %s8608_s21, 0 }
  0xd9   : > { %5214 = dma.hbm_to_vmem [thread:$0]  (!%p8627_p9), %s6207_s2, 128, %s411_s20, %s6094_s30  }
  0xda   : > { %419 = sbr.rel (%p8628_p1) target bundleno = 3719 (0xe87), region = 52 }
  0xe1   : > { %s421_s29 = sand.u32 1, %s5868_s14   ;;  %p8629_p13 = scmp.ne.s32.totalorder %s8605_s19, 0 }
  0xe2   : > { %s4759_s8 = sshll.u32 %s421_s29, 10  ;;  %s422_s4 = scalar_lea.sflag [#allocation4], %s421_s29 }
  0xe3   : > { %s6232_s6 = scalar_lea.vmem [#allocation3], %s4759_s8 }
  0xe4   : > { %5839 = dma.done.wait (%p8629_p13), %s422_s4, 16384  }
  0xe5   : > { %5841 = vsyncadd (%p8629_p13), %s422_s4, 4294950912  ;;  %s430_s18 = sand.u32 1, %s5970_s17   ;;  %s6241_s21 = scalar_lea.vmem [#allocation6], %s4759_s8 }
  0xe6   : > { %s431_s30 = scalar_lea.sflag [#allocation7], %s430_s18 }
  0xe7   : > { %5843 = dma.done.wait (%p8629_p13), %s431_s30, 16512  }
  0xe8   : > { %5845 = vsyncadd (%p8629_p13), %s431_s30, 4294950784  ;;  %s4761_s2 = sshll.u32 %s421_s29, 3  ;;  %p8630_p4 = scmp.eq.s32.totalorder %s5970_s17, 0 }
  0xe9   : > { %s6247_s12 = scalar_lea.vmem [#allocation8], %s4761_s2 }
  0xea   : > { %5847 = dma.done.wait (%p8630_p4), [#allocation10], 64   ;;  %p8631_p3 = pmov %p8630_p4 }
  0xec   : > { %5849 = vsyncadd (%p8631_p3), [#allocation10], 4294967232  ;;  %p8632_p7 = pmov %p8631_p3 }
  0xed   : > { %p8633_p8 = pmov %p8631_p3 }
  0xee   : > { %5851 = dma.done.wait (%p8632_p7), [#allocation13], 4112  }
  0xef   : > { %5853 = vsyncadd (%p8633_p8), [#allocation13], 4294963184  ;;  %s4766_s20 = sshll.u32 %s421_s29, 2  ;;  %p8634_p12 = scmp.ne.s32.totalorder %s5970_s17, 0 }
  0xf0   : > { %s6257_s24 = scalar_lea.vmem [#allocation16], %s4766_s20  ;;  %s6259_s19 = scalar_lea.vmem [#allocation18], %s4766_s20  ;;  %v516_v0 = vld [vmem:[%s8264_s0] sm:$0xff] (!%p8634_p12)  ;;  %v5889_v1 = vmov (!%p8634_p12), 0   ;;  %v517_v2 = vld [vmem:[%s8264_s0 + $0x8] sm:$0xff] (!%p8634_p12)  ;;  %v518_v3 = vlaneseq (!%p8634_p12)  ;;  %v5890_v8 = vmov (!%p8634_p12), 0.0  }
  0xf1   : > { %515 = sbr.rel (%p8634_p12) target bundleno = 379 (0x17b), region = 84  ;;  %5279 = vset.pattern.permute.xlu0 (!%p8634_p12), %v5889_v1 }
  0xf2   : > { %522 = vperm.xlu0 (!%p8634_p12), %5279, %v516_v0   ;;  %v519_v4 = vand.u32 (!%p8634_p12), 127, %v518_v3 }
  0xf4   : > { %v520_v5 = vadd.s32 (!%p8634_p12), 128, %v519_v4 }
  0xf6   : > { %525 = vperm.xlu0 (!%p8634_p12), %5279, %v517_v2  }
 0x171   : > { %v523_v6 = vpop.permute.xlu0 %522 }
 0x172   : > { %vm527_vm0 = vcmp.eq.s32.totalorder %v519_v4, %v523_v6  ;;  %vm528_vm1 = vcmp.eq.s32.totalorder %v520_v5, %v523_v6 }
 0x173   : > { %v4769_v9 = vsel %vm527_vm0, 1.0, %v5890_v8  ;;  %v4770_v10 = vsel %vm528_vm1, 1.0, %v5890_v8 }
 0x175   : > { %v526_v7 = vpop.permute.xlu0 %525 }
 0x176   : > { %vm529_vm2 = vcmp.eq.s32.totalorder %v519_v4, %v526_v7  ;;  %vm530_vm3 = vcmp.eq.s32.totalorder %v520_v5, %v526_v7 }
 0x177   : > { %v4771_v11 = vsel %vm529_vm2, 1.0, %v5890_v8  ;;  %v4772_v12 = vsel %vm530_vm3, 1.0, %v5890_v8 }
 0x178   : > { %v539_v13 = vpack.c.bf16 %v4771_v11, %v4769_v9  ;;  %v540_v14 = vpack.c.bf16 %v4772_v12, %v4770_v10 }
 0x17a   : > { %541 = vst [vmem:[#allocation2] sm:$0xff] %v539_v13  ;;  %542 = vst [vmem:[#allocation2 + $0x8] sm:$0xff] %v540_v14 }
 0x17b PF: > { %v545_v15 = vld [vmem:[%s6232_s6] sm:$0xff]  ;;  %v546_v17 = vld [vmem:[%s6232_s6 + $0x8] sm:$0xff]  ;;  %p5077_p5 = scmp.ge.s32.totalorder %s5970_s17, 2 }
 0x17c   : > { %v549_v16 = vld [vmem:[%s6232_s6 + $0x20] sm:$0xff]  ;;  %v550_v19 = vld [vmem:[%s6232_s6 + $0x28] sm:$0xff]  ;;  %vm4315_vm4 = vcmask (!%p5077_p5), 1041408   ;;  %vm4318_vm5 = vcmask (!%p5077_p5), 1043456   ;;  %vm4321_vm6 = vcmask (!%p5077_p5), 1045504  }
 0x17d   : > { %v4774_v18 = vcombine.high %v545_v15, %v549_v16  ;;  %v4773_v20 = vcombine.low %v545_v15, %v549_v16  ;;  %v553_v21 = vld [vmem:[%s6232_s6 + $0x40] sm:$0xff]  ;;  %v4776_v23 = vcombine.high %v546_v17, %v550_v19  ;;  %v4775_v24 = vcombine.low %v546_v17, %v550_v19  ;;  %v554_v26 = vld [vmem:[%s6232_s6 + $0x48] sm:$0xff] }
 0x17e   : > { %v557_v22 = vld [vmem:[%s6232_s6 + $0x60] sm:$0xff]  ;;  %v558_v27 = vld [vmem:[%s6232_s6 + $0x68] sm:$0xff] }
 0x17f   : > { %v4782_v25 = vcombine.high %v553_v21, %v557_v22  ;;  %v561_v28 = vld [vmem:[%s6232_s6 + $0x80] sm:$0xff]  ;;  %1483 = vmatprep.subr.bf16.mxu0 %v4774_v18  ;;  %v4784_v29 = vcombine.high %v554_v26, %v558_v27  ;;  %v562_v31 = vld [vmem:[%s6232_s6 + $0x88] sm:$0xff]  ;;  %1526 = vmatprep.subr.bf16.mxu1 %v4776_v23  ;;  %v4781_v33 = vcombine.low %v553_v21, %v557_v22 }
 0x180   : > { %v565_v30 = vld [vmem:[%s6232_s6 + $0xa0] sm:$0xff]  ;;  %v566_v32 = vld [vmem:[%s6232_s6 + $0xa8] sm:$0xff]  ;;  %1484 = vmatpush1.bf16.msra.mxu0 %v4773_v20  ;;  %1527 = vmatpush1.bf16.msra.mxu1 %v4775_v24  ;;  %v4783_v34 = vcombine.low %v554_v26, %v558_v27 }
 0x181   : > { %1485 = vmatprep.subr.bf16.mxu0 %v4782_v25  ;;  %v4790_v35 = vcombine.high %v561_v28, %v565_v30  ;;  %1528 = vmatprep.subr.bf16.mxu1 %v4784_v29  ;;  %v4792_v36 = vcombine.high %v562_v31, %v566_v32  ;;  %v569_v37 = vld [vmem:[%s6232_s6 + $0xc0] sm:$0xff]  ;;  %v570_v39 = vld [vmem:[%s6232_s6 + $0xc8] sm:$0xff]  ;;  %v4789_v41 = vcombine.low %v561_v28, %v565_v30  ;;  %v6297_v4 = vld [vmem:[#allocation2 + $0x8] sm:$0xff] }
 0x182   : > { %v573_v38 = vld [vmem:[%s6232_s6 + $0xe0] sm:$0xff]  ;;  %v574_v40 = vld [vmem:[%s6232_s6 + $0xe8] sm:$0xff]  ;;  %v4791_v42 = vcombine.low %v562_v31, %v566_v32  ;;  %1515 = vmatprep.mubr.bf16.mxu0 %v6297_v4  ;;  %1558 = vmatprep.mubr.bf16.mxu1 %v6297_v4 }
 0x183   : > { %v4798_v43 = vcombine.high %v569_v37, %v573_v38  ;;  %v4800_v44 = vcombine.high %v570_v39, %v574_v40  ;;  %v577_v45 = vld [vmem:[%s6232_s6 + $0x100] sm:$0xff]  ;;  %v578_v47 = vld [vmem:[%s6232_s6 + $0x108] sm:$0xff]  ;;  %v4797_v49 = vcombine.low %v569_v37, %v573_v38  ;;  %v4799_v50 = vcombine.low %v570_v39, %v574_v40 }
 0x184   : > { %1486 = vmatpush1.bf16.msra.mxu0 %v4781_v33  ;;  %1529 = vmatpush1.bf16.msra.mxu1 %v4783_v34  ;;  %v581_v46 = vld [vmem:[%s6232_s6 + $0x120] sm:$0xff]  ;;  %v582_v48 = vld [vmem:[%s6232_s6 + $0x128] sm:$0xff] }
 0x185   : > { %1487 = vmatprep.subr.bf16.mxu0 %v4790_v35  ;;  %1530 = vmatprep.subr.bf16.mxu1 %v4792_v36  ;;  %v4806_v51 = vcombine.high %v577_v45, %v581_v46  ;;  %v4808_v52 = vcombine.high %v578_v47, %v582_v48  ;;  %v585_v53 = vld [vmem:[%s6232_s6 + $0x140] sm:$0xff]  ;;  %v586_v55 = vld [vmem:[%s6232_s6 + $0x148] sm:$0xff]  ;;  %v4805_v57 = vcombine.low %v577_v45, %v581_v46 }
 0x186   : > { %v589_v54 = vld [vmem:[%s6232_s6 + $0x160] sm:$0xff]  ;;  %v590_v56 = vld [vmem:[%s6232_s6 + $0x168] sm:$0xff]  ;;  %v4807_v58 = vcombine.low %v578_v47, %v582_v48 }
 0x187   : > { %v4814_v59 = vcombine.high %v585_v53, %v589_v54  ;;  %v4816_v60 = vcombine.high %v586_v55, %v590_v56  ;;  %v593_v61 = vld [vmem:[%s6232_s6 + $0x180] sm:$0xff]  ;;  %v594_v63 = vld [vmem:[%s6232_s6 + $0x188] sm:$0xff]  ;;  %v4813_v1 = vcombine.low %v585_v53, %v589_v54  ;;  %v4815_v2 = vcombine.low %v586_v55, %v590_v56 }
 0x188   : > { %1488 = vmatpush1.bf16.msra.mxu0 %v4789_v41  ;;  %1531 = vmatpush1.bf16.msra.mxu1 %v4791_v42  ;;  %v597_v62 = vld [vmem:[%s6232_s6 + $0x1a0] sm:$0xff]  ;;  %v598_v0 = vld [vmem:[%s6232_s6 + $0x1a8] sm:$0xff] }
 0x189   : > { %1489 = vmatprep.subr.bf16.mxu0 %v4798_v43  ;;  %1532 = vmatprep.subr.bf16.mxu1 %v4800_v44  ;;  %v4822_v3 = vcombine.high %v593_v61, %v597_v62  ;;  %v4824_v5 = vcombine.high %v594_v63, %v598_v0  ;;  %v601_v6 = vld [vmem:[%s6232_s6 + $0x1c0] sm:$0xff]  ;;  %v602_v8 = vld [vmem:[%s6232_s6 + $0x1c8] sm:$0xff]  ;;  %v4821_v10 = vcombine.low %v593_v61, %v597_v62 }
 0x18a   : > { %v605_v7 = vld [vmem:[%s6232_s6 + $0x1e0] sm:$0xff]  ;;  %v606_v9 = vld [vmem:[%s6232_s6 + $0x1e8] sm:$0xff]  ;;  %v4823_v11 = vcombine.low %v594_v63, %v598_v0 }
 0x18b   : > { %v4830_v12 = vcombine.high %v601_v6, %v605_v7  ;;  %v4832_v13 = vcombine.high %v602_v8, %v606_v9  ;;  %v609_v14 = vld [vmem:[%s6232_s6 + $0x200] sm:$0xff]  ;;  %v610_v16 = vld [vmem:[%s6232_s6 + $0x208] sm:$0xff]  ;;  %v4829_v18 = vcombine.low %v601_v6, %v605_v7  ;;  %v4831_v19 = vcombine.low %v602_v8, %v606_v9 }
 0x18c   : > { %1490 = vmatpush1.bf16.msra.mxu0 %v4797_v49  ;;  %1533 = vmatpush1.bf16.msra.mxu1 %v4799_v50  ;;  %v613_v15 = vld [vmem:[%s6232_s6 + $0x220] sm:$0xff]  ;;  %v614_v17 = vld [vmem:[%s6232_s6 + $0x228] sm:$0xff] }
 0x18d   : > { %1491 = vmatprep.subr.bf16.mxu0 %v4806_v51  ;;  %1534 = vmatprep.subr.bf16.mxu1 %v4808_v52  ;;  %v4838_v20 = vcombine.high %v609_v14, %v613_v15  ;;  %v4840_v21 = vcombine.high %v610_v16, %v614_v17  ;;  %v617_v22 = vld [vmem:[%s6232_s6 + $0x240] sm:$0xff]  ;;  %v618_v24 = vld [vmem:[%s6232_s6 + $0x248] sm:$0xff]  ;;  %v4837_v26 = vcombine.low %v609_v14, %v613_v15  ;;  %v547_v15 = vld [vmem:[%s6232_s6 + $0x10] sm:$0xff] }
 0x18e   : > { %v621_v23 = vld [vmem:[%s6232_s6 + $0x260] sm:$0xff]  ;;  %v622_v25 = vld [vmem:[%s6232_s6 + $0x268] sm:$0xff]  ;;  %v4839_v27 = vcombine.low %v610_v16, %v614_v17  ;;  %v551_v16 = vld [vmem:[%s6232_s6 + $0x30] sm:$0xff] }
 0x18f   : > { %v4846_v28 = vcombine.high %v617_v22, %v621_v23  ;;  %v4848_v29 = vcombine.high %v618_v24, %v622_v25  ;;  %v625_v30 = vld [vmem:[%s6232_s6 + $0x280] sm:$0xff]  ;;  %v626_v32 = vld [vmem:[%s6232_s6 + $0x288] sm:$0xff]  ;;  %v4845_v34 = vcombine.low %v617_v22, %v621_v23  ;;  %v4847_v35 = vcombine.low %v618_v24, %v622_v25  ;;  %v548_v17 = vld [vmem:[%s6232_s6 + $0x18] sm:$0xff] }
 0x190   : > { %1492 = vmatpush1.bf16.msra.mxu0 %v4805_v57  ;;  %1535 = vmatpush1.bf16.msra.mxu1 %v4807_v58  ;;  %v629_v31 = vld [vmem:[%s6232_s6 + $0x2a0] sm:$0xff]  ;;  %v630_v33 = vld [vmem:[%s6232_s6 + $0x2a8] sm:$0xff]  ;;  %v555_v23 = vld [vmem:[%s6232_s6 + $0x50] sm:$0xff] }
 0x191   : > { %1493 = vmatprep.subr.bf16.mxu0 %v4814_v59  ;;  %1536 = vmatprep.subr.bf16.mxu1 %v4816_v60  ;;  %v4854_v36 = vcombine.high %v625_v30, %v629_v31  ;;  %v4856_v37 = vcombine.high %v626_v32, %v630_v33  ;;  %v633_v38 = vld [vmem:[%s6232_s6 + $0x2c0] sm:$0xff]  ;;  %v634_v40 = vld [vmem:[%s6232_s6 + $0x2c8] sm:$0xff]  ;;  %v4853_v42 = vcombine.low %v625_v30, %v629_v31  ;;  %v559_v24 = vld [vmem:[%s6232_s6 + $0x70] sm:$0xff] }
 0x192   : > { %v637_v39 = vld [vmem:[%s6232_s6 + $0x2e0] sm:$0xff]  ;;  %v638_v41 = vld [vmem:[%s6232_s6 + $0x2e8] sm:$0xff]  ;;  %v4855_v43 = vcombine.low %v626_v32, %v630_v33  ;;  %v556_v25 = vld [vmem:[%s6232_s6 + $0x58] sm:$0xff]  ;;  %v4786_v30 = vcombine.high %v555_v23, %v559_v24 }
 0x193   : > { %v4862_v44 = vcombine.high %v633_v38, %v637_v39  ;;  %v4864_v45 = vcombine.high %v634_v40, %v638_v41  ;;  %v641_v46 = vld [vmem:[%s6232_s6 + $0x300] sm:$0xff]  ;;  %v642_v48 = vld [vmem:[%s6232_s6 + $0x308] sm:$0xff]  ;;  %v4861_v50 = vcombine.low %v633_v38, %v637_v39  ;;  %v4863_v51 = vcombine.low %v634_v40, %v638_v41  ;;  %v563_v32 = vld [vmem:[%s6232_s6 + $0x90] sm:$0xff] }
 0x194   : > { %1494 = vmatpush1.bf16.msra.mxu0 %v4813_v1  ;;  %1537 = vmatpush1.bf16.msra.mxu1 %v4815_v2  ;;  %v645_v47 = vld [vmem:[%s6232_s6 + $0x320] sm:$0xff]  ;;  %v646_v49 = vld [vmem:[%s6232_s6 + $0x328] sm:$0xff]  ;;  %v567_v33 = vld [vmem:[%s6232_s6 + $0xb0] sm:$0xff] }
 0x195   : > { %1495 = vmatprep.subr.bf16.mxu0 %v4822_v3  ;;  %1538 = vmatprep.subr.bf16.mxu1 %v4824_v5  ;;  %v4870_v52 = vcombine.high %v641_v46, %v645_v47  ;;  %v4872_v53 = vcombine.high %v642_v48, %v646_v49  ;;  %v649_v54 = vld [vmem:[%s6232_s6 + $0x340] sm:$0xff]  ;;  %v650_v56 = vld [vmem:[%s6232_s6 + $0x348] sm:$0xff]  ;;  %v4869_v58 = vcombine.low %v641_v46, %v645_v47  ;;  %v571_v40 = vld [vmem:[%s6232_s6 + $0xd0] sm:$0xff] }
 0x196   : > { %v653_v55 = vld [vmem:[%s6232_s6 + $0x360] sm:$0xff]  ;;  %v654_v57 = vld [vmem:[%s6232_s6 + $0x368] sm:$0xff]  ;;  %v4871_v59 = vcombine.low %v642_v48, %v646_v49  ;;  %v4794_v38 = vcombine.high %v563_v32, %v567_v33  ;;  %v575_v41 = vld [vmem:[%s6232_s6 + $0xf0] sm:$0xff] }
 0x197   : > { %v4878_v60 = vcombine.high %v649_v54, %v653_v55  ;;  %v4880_v61 = vcombine.high %v650_v56, %v654_v57  ;;  %v657_v62 = vld [vmem:[%s6232_s6 + $0x380] sm:$0xff]  ;;  %v658_v0 = vld [vmem:[%s6232_s6 + $0x388] sm:$0xff]  ;;  %v4877_v2 = vcombine.low %v649_v54, %v653_v55  ;;  %v4879_v3 = vcombine.low %v650_v56, %v654_v57  ;;  %v579_v48 = vld [vmem:[%s6232_s6 + $0x110] sm:$0xff] }
 0x198   : > { %1496 = vmatpush1.bf16.msra.mxu0 %v4821_v10  ;;  %1539 = vmatpush1.bf16.msra.mxu1 %v4823_v11  ;;  %v661_v63 = vld [vmem:[%s6232_s6 + $0x3a0] sm:$0xff]  ;;  %v662_v1 = vld [vmem:[%s6232_s6 + $0x3a8] sm:$0xff]  ;;  %v4802_v46 = vcombine.high %v571_v40, %v575_v41  ;;  %v583_v49 = vld [vmem:[%s6232_s6 + $0x130] sm:$0xff] }
 0x199   : > { %1497 = vmatprep.subr.bf16.mxu0 %v4830_v12  ;;  %1540 = vmatprep.subr.bf16.mxu1 %v4832_v13  ;;  %v4886_v5 = vcombine.high %v657_v62, %v661_v63  ;;  %v4888_v6 = vcombine.high %v658_v0, %v662_v1  ;;  %v665_v7 = vld [vmem:[%s6232_s6 + $0x3c0] sm:$0xff]  ;;  %v666_v9 = vld [vmem:[%s6232_s6 + $0x3c8] sm:$0xff]  ;;  %v4885_v11 = vcombine.low %v657_v62, %v661_v63  ;;  %v587_v55 = vld [vmem:[%s6232_s6 + $0x150] sm:$0xff] }
 0x19a   : > { %v669_v8 = vld [vmem:[%s6232_s6 + $0x3e0] sm:$0xff]  ;;  %v670_v10 = vld [vmem:[%s6232_s6 + $0x3e8] sm:$0xff]  ;;  %v4887_v12 = vcombine.low %v658_v0, %v662_v1  ;;  %v591_v56 = vld [vmem:[%s6232_s6 + $0x170] sm:$0xff] }
 0x19b   : > { %v4894_v13 = vcombine.high %v665_v7, %v669_v8  ;;  %v4896_v14 = vcombine.high %v666_v9, %v670_v10  ;;  %v588_v57 = vld [vmem:[%s6232_s6 + $0x158] sm:$0xff]  ;;  %v595_v63 = vld [vmem:[%s6232_s6 + $0x190] sm:$0xff] }
 0x19c   : > { %1498 = vmatpush1.bf16.msra.mxu0 %v4829_v18  ;;  %1541 = vmatpush1.bf16.msra.mxu1 %v4831_v19  ;;  %v552_v18 = vld [vmem:[%s6232_s6 + $0x38] sm:$0xff]  ;;  %v4893_v19 = vcombine.low %v665_v7, %v669_v8  ;;  %v599_v0 = vld [vmem:[%s6232_s6 + $0x1b0] sm:$0xff] }
 0x19d   : > { %1499 = vmatprep.subr.bf16.mxu0 %v4838_v20  ;;  %1542 = vmatprep.subr.bf16.mxu1 %v4840_v21  ;;  %v4895_v20 = vcombine.low %v666_v9, %v670_v10  ;;  %v4778_v21 = vcombine.high %v547_v15, %v551_v16  ;;  %v4780_v22 = vcombine.high %v548_v17, %v552_v18  ;;  %v596_v1 = vld [vmem:[%s6232_s6 + $0x198] sm:$0xff]  ;;  %v603_v8 = vld [vmem:[%s6232_s6 + $0x1d0] sm:$0xff] }
 0x19e   : > { %v607_v9 = vld [vmem:[%s6232_s6 + $0x1f0] sm:$0xff]  ;;  %v604_v10 = vld [vmem:[%s6232_s6 + $0x1d8] sm:$0xff] }
 0x1a0   : > { %1500 = vmatpush1.bf16.msra.mxu0 %v4837_v26  ;;  %1543 = vmatpush1.bf16.msra.mxu1 %v4839_v27  ;;  %v560_v26 = vld [vmem:[%s6232_s6 + $0x78] sm:$0xff]  ;;  %v6345_v27 = vld [vmem:[#allocation2] sm:$0xff] }
 0x1a1   : > { %1501 = vmatprep.subr.bf16.mxu0 %v4846_v28  ;;  %1544 = vmatprep.subr.bf16.mxu1 %v4848_v29  ;;  %v4777_v28 = vcombine.low %v547_v15, %v551_v16  ;;  %v4779_v29 = vcombine.low %v548_v17, %v552_v18  ;;  %v4788_v31 = vcombine.high %v556_v25, %v560_v26  ;;  %v611_v16 = vld [vmem:[%s6232_s6 + $0x210] sm:$0xff]  ;;  %v612_v18 = vld [vmem:[%s6232_s6 + $0x218] sm:$0xff] }
 0x1a2   : > { %v615_v17 = vld [vmem:[%s6232_s6 + $0x230] sm:$0xff] }
 0x1a4   : > { %1502 = vmatpush1.bf16.msra.mxu0 %v4845_v34  ;;  %1545 = vmatpush1.bf16.msra.mxu1 %v4847_v35  ;;  %v564_v34 = vld [vmem:[%s6232_s6 + $0x98] sm:$0xff] }
 0x1a5   : > { %1503 = vmatprep.subr.bf16.mxu0 %v4854_v36  ;;  %1546 = vmatprep.subr.bf16.mxu1 %v4856_v37  ;;  %v568_v35 = vld [vmem:[%s6232_s6 + $0xb8] sm:$0xff]  ;;  %v4785_v36 = vcombine.low %v555_v23, %v559_v24  ;;  %v4787_v37 = vcombine.low %v556_v25, %v560_v26  ;;  %v619_v24 = vld [vmem:[%s6232_s6 + $0x250] sm:$0xff] }
 0x1a6   : > { %v4796_v39 = vcombine.high %v564_v34, %v568_v35  ;;  %v623_v25 = vld [vmem:[%s6232_s6 + $0x270] sm:$0xff]  ;;  %v620_v26 = vld [vmem:[%s6232_s6 + $0x258] sm:$0xff] }
 0x1a8   : > { %1504 = vmatpush1.bf16.msra.mxu0 %v4853_v42  ;;  %1547 = vmatpush1.bf16.msra.mxu1 %v4855_v43  ;;  %v572_v42 = vld [vmem:[%s6232_s6 + $0xd8] sm:$0xff] }
 0x1a9   : > { %1505 = vmatprep.subr.bf16.mxu0 %v4862_v44  ;;  %1548 = vmatprep.subr.bf16.mxu1 %v4864_v45  ;;  %v576_v43 = vld [vmem:[%s6232_s6 + $0xf8] sm:$0xff]  ;;  %v4793_v44 = vcombine.low %v563_v32, %v567_v33  ;;  %v4795_v45 = vcombine.low %v564_v34, %v568_v35  ;;  %v627_v33 = vld [vmem:[%s6232_s6 + $0x290] sm:$0xff] }
 0x1aa   : > { %v4804_v47 = vcombine.high %v572_v42, %v576_v43  ;;  %v631_v34 = vld [vmem:[%s6232_s6 + $0x2b0] sm:$0xff]  ;;  %v628_v35 = vld [vmem:[%s6232_s6 + $0x298] sm:$0xff] }
 0x1ac   : > { %1506 = vmatpush1.bf16.msra.mxu0 %v4861_v50  ;;  %1549 = vmatpush1.bf16.msra.mxu1 %v4863_v51  ;;  %v580_v50 = vld [vmem:[%s6232_s6 + $0x118] sm:$0xff] }
 0x1ad   : > { %1507 = vmatprep.subr.bf16.mxu0 %v4870_v52  ;;  %1550 = vmatprep.subr.bf16.mxu1 %v4872_v53  ;;  %v584_v51 = vld [vmem:[%s6232_s6 + $0x138] sm:$0xff]  ;;  %v4801_v52 = vcombine.low %v571_v40, %v575_v41  ;;  %v4810_v53 = vcombine.high %v579_v48, %v583_v49  ;;  %v635_v41 = vld [vmem:[%s6232_s6 + $0x2d0] sm:$0xff] }
 0x1ae   : > { %v4812_v54 = vcombine.high %v580_v50, %v584_v51 }
 0x1b0   : > { %1508 = vmatpush1.bf16.msra.mxu0 %v4869_v58  ;;  %1551 = vmatpush1.bf16.msra.mxu1 %v4871_v59  ;;  %v592_v58 = vld [vmem:[%s6232_s6 + $0x178] sm:$0xff]  ;;  %v4809_v59 = vcombine.low %v579_v48, %v583_v49  ;;  %v643_v49 = vld [vmem:[%s6232_s6 + $0x310] sm:$0xff] }
 0x1b1   : > { %1509 = vmatprep.subr.bf16.mxu0 %v4878_v60  ;;  %1552 = vmatprep.subr.bf16.mxu1 %v4880_v61  ;;  %v4811_v60 = vcombine.low %v580_v50, %v584_v51  ;;  %v4818_v61 = vcombine.high %v587_v55, %v591_v56  ;;  %v4820_v62 = vcombine.high %v588_v57, %v592_v58  ;;  %v647_v50 = vld [vmem:[%s6232_s6 + $0x330] sm:$0xff]  ;;  %v644_v51 = vld [vmem:[%s6232_s6 + $0x318] sm:$0xff] }
 0x1b4   : > { %1510 = vmatpush1.bf16.msra.mxu0 %v4877_v2  ;;  %1553 = vmatpush1.bf16.msra.mxu1 %v4879_v3  ;;  %v600_v2 = vld [vmem:[%s6232_s6 + $0x1b8] sm:$0xff]  ;;  %v4817_v3 = vcombine.low %v587_v55, %v591_v56  ;;  %v651_v56 = vld [vmem:[%s6232_s6 + $0x350] sm:$0xff] }
 0x1b5   : > { %1511 = vmatprep.subr.bf16.mxu0 %v4886_v5  ;;  %1554 = vmatprep.subr.bf16.mxu1 %v4888_v6  ;;  %v4819_v5 = vcombine.low %v588_v57, %v592_v58  ;;  %v4826_v6 = vcombine.high %v595_v63, %v599_v0  ;;  %v4828_v7 = vcombine.high %v596_v1, %v600_v2  ;;  %v655_v57 = vld [vmem:[%s6232_s6 + $0x370] sm:$0xff]  ;;  %v652_v58 = vld [vmem:[%s6232_s6 + $0x358] sm:$0xff] }
 0x1b8   : > { %1512 = vmatpush1.bf16.msra.mxu0 %v4885_v11  ;;  %1555 = vmatpush1.bf16.msra.mxu1 %v4887_v12  ;;  %v608_v11 = vld [vmem:[%s6232_s6 + $0x1f8] sm:$0xff]  ;;  %v4825_v12 = vcombine.low %v595_v63, %v599_v0  ;;  %v659_v0 = vld [vmem:[%s6232_s6 + $0x390] sm:$0xff] }
 0x1b9   : > { %1513 = vmatprep.subr.bf16.mxu0 %v4894_v13  ;;  %1556 = vmatprep.subr.bf16.mxu1 %v4896_v14  ;;  %v4827_v13 = vcombine.low %v596_v1, %v600_v2  ;;  %v4834_v14 = vcombine.high %v603_v8, %v607_v9  ;;  %v4836_v15 = vcombine.high %v604_v10, %v608_v11  ;;  %v663_v1 = vld [vmem:[%s6232_s6 + $0x3b0] sm:$0xff]  ;;  %v660_v2 = vld [vmem:[%s6232_s6 + $0x398] sm:$0xff] }
 0x1bc   : > { %1514 = vmatpush1.bf16.msra.mxu0 %v4893_v19  ;;  %1557 = vmatpush1.bf16.msra.mxu1 %v4895_v20  ;;  %v616_v19 = vld [vmem:[%s6232_s6 + $0x238] sm:$0xff]  ;;  %v4833_v20 = vcombine.low %v603_v8, %v607_v9  ;;  %v667_v9 = vld [vmem:[%s6232_s6 + $0x3d0] sm:$0xff] }
 0x1bd   : > { %1569 = vmatprep.subr.bf16.mxu0 %v4778_v21  ;;  %1612 = vmatprep.subr.bf16.mxu1 %v4780_v22  ;;  %v4835_v21 = vcombine.low %v604_v10, %v608_v11  ;;  %v4842_v22 = vcombine.high %v611_v16, %v615_v17  ;;  %v4844_v23 = vcombine.high %v612_v18, %v616_v19  ;;  %v671_v10 = vld [vmem:[%s6232_s6 + $0x3f0] sm:$0xff]  ;;  %v668_v11 = vld [vmem:[%s6232_s6 + $0x3d8] sm:$0xff] }
 0x1bf   : > { %1516 = vmatmul.mubr.bf16.vlgmr.msra.gmra.mrb[0].mxu0 %v6345_v27  ;;  %1559 = vmatmul.mubr.bf16.vlgmr.msra.gmra.mrb[0].mxu1 %v6345_v27 }
 0x1c0   : > { %1570 = vmatpush1.bf16.msra.mxu0 %v4777_v28  ;;  %1613 = vmatpush1.bf16.msra.mxu1 %v4779_v29  ;;  %v624_v28 = vld [vmem:[%s6232_s6 + $0x278] sm:$0xff]  ;;  %v4841_v29 = vcombine.low %v611_v16, %v615_v17  ;;  %v673_v17 = vld [vmem:[%s6241_s21] sm:$0xff] }
 0x1c1   : > { %1571 = vmatprep.subr.bf16.mxu0 %v4786_v30  ;;  %1614 = vmatprep.subr.bf16.mxu1 %v4788_v31  ;;  %v4843_v30 = vcombine.low %v612_v18, %v616_v19  ;;  %v4850_v31 = vcombine.high %v619_v24, %v623_v25  ;;  %v4852_v32 = vcombine.high %v620_v26, %v624_v28  ;;  %v677_v18 = vld [vmem:[%s6241_s21 + $0x20] sm:$0xff]  ;;  %v674_v19 = vld [vmem:[%s6241_s21 + $0x8] sm:$0xff] }
 0x1c2   : > { %1601 = vmatprep.mubr.bf16.mxu0 %v6297_v4  ;;  %1644 = vmatprep.mubr.bf16.mxu1 %v6297_v4  ;;  %v4803_v4 = vcombine.low %v572_v42, %v576_v43  ;;  %v639_v42 = vld [vmem:[%s6232_s6 + $0x2f0] sm:$0xff]  ;;  %v636_v43 = vld [vmem:[%s6232_s6 + $0x2d8] sm:$0xff] }
 0x1c4   : > { %1572 = vmatpush1.bf16.msra.mxu0 %v4785_v36  ;;  %1615 = vmatpush1.bf16.msra.mxu1 %v4787_v37  ;;  %v632_v36 = vld [vmem:[%s6232_s6 + $0x2b8] sm:$0xff]  ;;  %v4849_v37 = vcombine.low %v619_v24, %v623_v25  ;;  %v681_v25 = vld [vmem:[%s6241_s21 + $0x40] sm:$0xff] }
 0x1c5   : > { %1573 = vmatprep.subr.bf16.mxu0 %v4794_v38  ;;  %1616 = vmatprep.subr.bf16.mxu1 %v4796_v39  ;;  %v4851_v38 = vcombine.low %v620_v26, %v624_v28  ;;  %v4858_v39 = vcombine.high %v627_v33, %v631_v34  ;;  %v4860_v40 = vcombine.high %v628_v35, %v632_v36  ;;  %v685_v26 = vld [vmem:[%s6241_s21 + $0x60] sm:$0xff]  ;;  %v682_v28 = vld [vmem:[%s6241_s21 + $0x48] sm:$0xff] }
 0x1c8   : > { %1574 = vmatpush1.bf16.msra.mxu0 %v4793_v44  ;;  %1617 = vmatpush1.bf16.msra.mxu1 %v4795_v45  ;;  %v640_v44 = vld [vmem:[%s6232_s6 + $0x2f8] sm:$0xff]  ;;  %v4857_v45 = vcombine.low %v627_v33, %v631_v34  ;;  %v689_v34 = vld [vmem:[%s6241_s21 + $0x80] sm:$0xff] }
 0x1c9   : > { %1575 = vmatprep.subr.bf16.mxu0 %v4802_v46  ;;  %1618 = vmatprep.subr.bf16.mxu1 %v4804_v47  ;;  %v4859_v46 = vcombine.low %v628_v35, %v632_v36  ;;  %v4866_v47 = vcombine.high %v635_v41, %v639_v42  ;;  %v4868_v48 = vcombine.high %v636_v43, %v640_v44  ;;  %v693_v35 = vld [vmem:[%s6241_s21 + $0xa0] sm:$0xff]  ;;  %v690_v36 = vld [vmem:[%s6241_s21 + $0x88] sm:$0xff] }
 0x1cc   : > { %1576 = vmatpush1.bf16.msra.mxu0 %v4801_v52  ;;  %1619 = vmatpush1.bf16.msra.mxu1 %v4803_v4  ;;  %v648_v52 = vld [vmem:[%s6232_s6 + $0x338] sm:$0xff]  ;;  %v4865_v4 = vcombine.low %v635_v41, %v639_v42  ;;  %v697_v42 = vld [vmem:[%s6241_s21 + $0xc0] sm:$0xff] }
 0x1cd   : > { %1577 = vmatprep.subr.bf16.mxu0 %v4810_v53  ;;  %1620 = vmatprep.subr.bf16.mxu1 %v4812_v54  ;;  %v4867_v53 = vcombine.low %v636_v43, %v640_v44  ;;  %v4874_v54 = vcombine.high %v643_v49, %v647_v50  ;;  %v4876_v55 = vcombine.high %v644_v51, %v648_v52  ;;  %v8297_v43 = vmov 0   ;;  %v698_v44 = vld [vmem:[%s6241_s21 + $0xc8] sm:$0xff] }
 0x1d0   : > { %1578 = vmatpush1.bf16.msra.mxu0 %v4809_v59  ;;  %1621 = vmatpush1.bf16.msra.mxu1 %v4811_v60  ;;  %v656_v59 = vld [vmem:[%s6232_s6 + $0x378] sm:$0xff]  ;;  %v4873_v60 = vcombine.low %v643_v49, %v647_v50  ;;  %v705_v50 = vld [vmem:[%s6241_s21 + $0x100] sm:$0xff] }
 0x1d1   : > { %1579 = vmatprep.subr.bf16.mxu0 %v4818_v61  ;;  %1622 = vmatprep.subr.bf16.mxu1 %v4820_v62  ;;  %v4875_v61 = vcombine.low %v644_v51, %v648_v52  ;;  %v4882_v62 = vcombine.high %v651_v56, %v655_v57  ;;  %v4884_v63 = vcombine.high %v652_v58, %v656_v59  ;;  %v709_v51 = vld [vmem:[%s6241_s21 + $0x120] sm:$0xff]  ;;  %v706_v52 = vld [vmem:[%s6241_s21 + $0x108] sm:$0xff] }
 0x1d4   : > { %1580 = vmatpush1.bf16.msra.mxu0 %v4817_v3  ;;  %1623 = vmatpush1.bf16.msra.mxu1 %v4819_v5  ;;  %v664_v3 = vld [vmem:[%s6232_s6 + $0x3b8] sm:$0xff]  ;;  %v4881_v5 = vcombine.low %v651_v56, %v655_v57  ;;  %v713_v57 = vld [vmem:[%s6241_s21 + $0x140] sm:$0xff] }
 0x1d5   : > { %1581 = vmatprep.subr.bf16.mxu0 %v4826_v6  ;;  %1624 = vmatprep.subr.bf16.mxu1 %v4828_v7  ;;  %v4883_v6 = vcombine.low %v652_v58, %v656_v59  ;;  %v4890_v7 = vcombine.high %v659_v0, %v663_v1  ;;  %v4892_v8 = vcombine.high %v660_v2, %v664_v3  ;;  %v717_v58 = vld [vmem:[%s6241_s21 + $0x160] sm:$0xff]  ;;  %v714_v59 = vld [vmem:[%s6241_s21 + $0x148] sm:$0xff] }
 0x1d8   : > { %1582 = vmatpush1.bf16.msra.mxu0 %v4825_v12  ;;  %1625 = vmatpush1.bf16.msra.mxu1 %v4827_v13  ;;  %v672_v12 = vld [vmem:[%s6232_s6 + $0x3f8] sm:$0xff]  ;;  %v4889_v13 = vcombine.low %v659_v0, %v663_v1  ;;  %v721_v1 = vld [vmem:[%s6241_s21 + $0x180] sm:$0xff] }
 0x1d9   : > { %1583 = vmatprep.subr.bf16.mxu0 %v4834_v14  ;;  %1626 = vmatprep.subr.bf16.mxu1 %v4836_v15  ;;  %v4891_v14 = vcombine.low %v660_v2, %v664_v3  ;;  %v4898_v15 = vcombine.high %v667_v9, %v671_v10  ;;  %v4900_v16 = vcombine.high %v668_v11, %v672_v12  ;;  %v725_v2 = vld [vmem:[%s6241_s21 + $0x1a0] sm:$0xff]  ;;  %v722_v3 = vld [vmem:[%s6241_s21 + $0x188] sm:$0xff] }
 0x1dc   : > { %1584 = vmatpush1.bf16.msra.mxu0 %v4833_v20  ;;  %1627 = vmatpush1.bf16.msra.mxu1 %v4835_v21  ;;  %v678_v20 = vld [vmem:[%s6241_s21 + $0x28] sm:$0xff]  ;;  %v4897_v21 = vcombine.low %v667_v9, %v671_v10  ;;  %v729_v10 = vld [vmem:[%s6241_s21 + $0x1c0] sm:$0xff] }
 0x1dd   : > { %1585 = vmatprep.subr.bf16.mxu0 %v4842_v22  ;;  %1628 = vmatprep.subr.bf16.mxu1 %v4844_v23  ;;  %v4899_v22 = vcombine.low %v668_v11, %v672_v12  ;;  %v6411_v23 = vcombine.high %v673_v17, %v677_v18  ;;  %v6413_v24 = vcombine.high %v674_v19, %v678_v20  ;;  %v733_v11 = vld [vmem:[%s6241_s21 + $0x1e0] sm:$0xff]  ;;  %v730_v12 = vld [vmem:[%s6241_s21 + $0x1c8] sm:$0xff] }
 0x1df   : > { %8635 = vst [vmem:[#allocation29_spill] sm:$0xff] %v6411_v23  ;;  %8636 = vst [vmem:[#allocation30_spill] sm:$0xff] %v6413_v24 }
 0x1e0   : > { %1586 = vmatpush1.bf16.msra.mxu0 %v4841_v29  ;;  %1629 = vmatpush1.bf16.msra.mxu1 %v4843_v30  ;;  %v686_v29 = vld [vmem:[%s6241_s21 + $0x68] sm:$0xff]  ;;  %v6419_v30 = vcombine.low %v673_v17, %v677_v18  ;;  %v737_v18 = vld [vmem:[%s6241_s21 + $0x200] sm:$0xff] }
 0x1e1   : > { %1587 = vmatprep.subr.bf16.mxu0 %v4850_v31  ;;  %1630 = vmatprep.subr.bf16.mxu1 %v4852_v32  ;;  %v6422_v31 = vcombine.low %v674_v19, %v678_v20  ;;  %v6424_v32 = vcombine.high %v681_v25, %v685_v26  ;;  %v6427_v33 = vcombine.high %v682_v28, %v686_v29  ;;  %v741_v19 = vld [vmem:[%s6241_s21 + $0x220] sm:$0xff]  ;;  %v738_v20 = vld [vmem:[%s6241_s21 + $0x208] sm:$0xff] }
 0x1e2   : > { %8637 = vst [vmem:[#allocation31_spill] sm:$0xff] %v6419_v30 }
 0x1e3   : > { %8638 = vst [vmem:[#allocation32_spill] sm:$0xff] %v6422_v31  ;;  %8639 = vst [vmem:[#allocation33_spill] sm:$0xff] %v6424_v32 }
 0x1e4   : > { %1588 = vmatpush1.bf16.msra.mxu0 %v4849_v37  ;;  %1631 = vmatpush1.bf16.msra.mxu1 %v4851_v38  ;;  %8640 = vst [vmem:[#allocation34_spill] sm:$0xff] %v6427_v33  ;;  %v694_v37 = vld [vmem:[%s6241_s21 + $0xa8] sm:$0xff]  ;;  %v6436_v38 = vcombine.low %v681_v25, %v685_v26  ;;  %v6540_v26 = vcombine.high %v737_v18, %v741_v19 }
 0x1e5   : > { %1589 = vmatprep.subr.bf16.mxu0 %v4858_v39  ;;  %1632 = vmatprep.subr.bf16.mxu1 %v4860_v40  ;;  %v6440_v39 = vcombine.low %v682_v28, %v686_v29  ;;  %v6442_v40 = vcombine.high %v689_v34, %v693_v35  ;;  %v6445_v41 = vcombine.high %v690_v36, %v694_v37  ;;  %v745_v29 = vld [vmem:[%s6241_s21 + $0x240] sm:$0xff] }
 0x1e6   : > { %8641 = vst [vmem:[#allocation35_spill] sm:$0xff] %v6436_v38  ;;  %8667 = vst [vmem:[#allocation61_spill] sm:$0xff] %v6540_v26 }
 0x1e7   : > { %8642 = vst [vmem:[#allocation36_spill] sm:$0xff] %v6440_v39  ;;  %8643 = vst [vmem:[#allocation37_spill] sm:$0xff] %v6442_v40 }
 0x1e8   : > { %1590 = vmatpush1.bf16.msra.mxu0 %v4857_v45  ;;  %1633 = vmatpush1.bf16.msra.mxu1 %v4859_v46  ;;  %8644 = vst [vmem:[#allocation38_spill] sm:$0xff] %v6445_v41  ;;  %v702_v45 = vld [vmem:[%s6241_s21 + $0xe8] sm:$0xff]  ;;  %v6454_v46 = vcombine.low %v689_v34, %v693_v35  ;;  %v749_v34 = vld [vmem:[%s6241_s21 + $0x260] sm:$0xff] }
 0x1e9   : > { %1591 = vmatprep.subr.bf16.mxu0 %v4866_v47  ;;  %1634 = vmatprep.subr.bf16.mxu1 %v4868_v48  ;;  %v6458_v47 = vcombine.low %v690_v36, %v694_v37  ;;  %v6463_v49 = vcombine.high %v698_v44, %v702_v45  ;;  %v746_v35 = vld [vmem:[%s6241_s21 + $0x248] sm:$0xff]  ;;  %v6550_v37 = vcombine.low %v737_v18, %v741_v19  ;;  %v773_v18 = vld [vmem:[%s6241_s21 + $0x320] sm:$0xff] }
 0x1ea   : > { %8645 = vst [vmem:[#allocation39_spill] sm:$0xff] %v6454_v46  ;;  %v750_v36 = vld [vmem:[%s6241_s21 + $0x268] sm:$0xff] }
 0x1eb   : > { %8646 = vst [vmem:[#allocation40_spill] sm:$0xff] %v6458_v47  ;;  %8648 = vst [vmem:[#allocation42_spill] sm:$0xff] %v6463_v49  ;;  %v770_v19 = vld [vmem:[%s6241_s21 + $0x308] sm:$0xff] }
 0x1ec   : > { %1592 = vmatpush1.bf16.msra.mxu0 %v4865_v4  ;;  %1635 = vmatpush1.bf16.msra.mxu1 %v4867_v53  ;;  %v710_v4 = vld [vmem:[%s6241_s21 + $0x128] sm:$0xff]  ;;  %8669 = vst [vmem:[#allocation63_spill] sm:$0xff] %v6550_v37 }
 0x1ed   : > { %1593 = vmatprep.subr.bf16.mxu0 %v4874_v54  ;;  %1636 = vmatprep.subr.bf16.mxu1 %v4876_v55  ;;  %v6474_v54 = vcombine.low %v698_v44, %v702_v45  ;;  %v6476_v55 = vcombine.high %v705_v50, %v709_v51  ;;  %v6479_v56 = vcombine.high %v706_v52, %v710_v4  ;;  %v753_v45 = vld [vmem:[%s6241_s21 + $0x280] sm:$0xff] }
 0x1ee   : > { %v6559_v44 = vcombine.high %v746_v35, %v750_v36 }
 0x1ef   : > { %8650 = vst [vmem:[#allocation44_spill] sm:$0xff] %v6474_v54  ;;  %8651 = vst [vmem:[#allocation45_spill] sm:$0xff] %v6476_v55 }
 0x1f0   : > { %1594 = vmatpush1.bf16.msra.mxu0 %v4873_v60  ;;  %1637 = vmatpush1.bf16.msra.mxu1 %v4875_v61  ;;  %8652 = vst [vmem:[#allocation46_spill] sm:$0xff] %v6479_v56  ;;  %v718_v60 = vld [vmem:[%s6241_s21 + $0x168] sm:$0xff]  ;;  %v6486_v61 = vcombine.low %v705_v50, %v709_v51  ;;  %8672 = vst [vmem:[#allocation66_spill] sm:$0xff] %v6559_v44  ;;  %v757_v50 = vld [vmem:[%s6241_s21 + $0x2a0] sm:$0xff] }
 0x1f1   : > { %1595 = vmatprep.subr.bf16.mxu0 %v4882_v62  ;;  %1638 = vmatprep.subr.bf16.mxu1 %v4884_v63  ;;  %v6490_v62 = vcombine.low %v706_v52, %v710_v4  ;;  %v6492_v63 = vcombine.high %v713_v57, %v717_v58  ;;  %v6495_v0 = vcombine.high %v714_v59, %v718_v60  ;;  %v754_v51 = vld [vmem:[%s6241_s21 + $0x288] sm:$0xff] }
 0x1f2   : > { %8653 = vst [vmem:[#allocation47_spill] sm:$0xff] %v6486_v61  ;;  %v758_v52 = vld [vmem:[%s6241_s21 + $0x2a8] sm:$0xff]  ;;  %v6566_v4 = vcombine.low %v745_v29, %v749_v34 }
 0x1f3   : > { %8654 = vst [vmem:[#allocation48_spill] sm:$0xff] %v6490_v62  ;;  %8655 = vst [vmem:[#allocation49_spill] sm:$0xff] %v6492_v63 }
 0x1f4   : > { %1596 = vmatpush1.bf16.msra.mxu0 %v4881_v5  ;;  %1639 = vmatpush1.bf16.msra.mxu1 %v4883_v6  ;;  %8656 = vst [vmem:[#allocation50_spill] sm:$0xff] %v6495_v0  ;;  %v726_v5 = vld [vmem:[%s6241_s21 + $0x1a8] sm:$0xff]  ;;  %v6502_v6 = vcombine.low %v713_v57, %v717_v58  ;;  %8673 = vst [vmem:[#allocation67_spill] sm:$0xff] %v6566_v4  ;;  %v6570_v57 = vcombine.low %v746_v35, %v750_v36  ;;  %v777_v36 = vld [vmem:[%s6241_s21 + $0x340] sm:$0xff] }
 0x1f5   : > { %1597 = vmatprep.subr.bf16.mxu0 %v4890_v7  ;;  %1640 = vmatprep.subr.bf16.mxu1 %v4892_v8  ;;  %v6506_v7 = vcombine.low %v714_v59, %v718_v60  ;;  %v6508_v8 = vcombine.high %v721_v1, %v725_v2  ;;  %v6511_v9 = vcombine.high %v722_v3, %v726_v5  ;;  %v761_v60 = vld [vmem:[%s6241_s21 + $0x2c0] sm:$0xff] }
 0x1f6   : > { %8657 = vst [vmem:[#allocation51_spill] sm:$0xff] %v6502_v6  ;;  %8674 = vst [vmem:[#allocation68_spill] sm:$0xff] %v6570_v57  ;;  %v6572_v58 = vcombine.high %v753_v45, %v757_v50  ;;  %v6575_v59 = vcombine.high %v754_v51, %v758_v52 }
 0x1f7   : > { %8658 = vst [vmem:[#allocation52_spill] sm:$0xff] %v6506_v7  ;;  %8659 = vst [vmem:[#allocation53_spill] sm:$0xff] %v6508_v8 }
 0x1f8   : > { %1598 = vmatpush1.bf16.msra.mxu0 %v4889_v13  ;;  %1641 = vmatpush1.bf16.msra.mxu1 %v4891_v14  ;;  %8660 = vst [vmem:[#allocation54_spill] sm:$0xff] %v6511_v9  ;;  %v734_v13 = vld [vmem:[%s6241_s21 + $0x1e8] sm:$0xff]  ;;  %v6518_v14 = vcombine.low %v721_v1, %v725_v2  ;;  %8675 = vst [vmem:[#allocation69_spill] sm:$0xff] %v6572_v58  ;;  %v765_v1 = vld [vmem:[%s6241_s21 + $0x2e0] sm:$0xff] }
 0x1f9   : > { %1599 = vmatprep.subr.bf16.mxu0 %v4898_v15  ;;  %1642 = vmatprep.subr.bf16.mxu1 %v4900_v16  ;;  %v6522_v15 = vcombine.low %v722_v3, %v726_v5  ;;  %v6524_v16 = vcombine.high %v729_v10, %v733_v11  ;;  %v6527_v17 = vcombine.high %v730_v12, %v734_v13  ;;  %v762_v2 = vld [vmem:[%s6241_s21 + $0x2c8] sm:$0xff] }
 0x1fa   : > { %8661 = vst [vmem:[#allocation55_spill] sm:$0xff] %v6518_v14  ;;  %v6538_v25 = vcombine.low %v730_v12, %v734_v13  ;;  %8676 = vst [vmem:[#allocation70_spill] sm:$0xff] %v6575_v59  ;;  %v766_v3 = vld [vmem:[%s6241_s21 + $0x2e8] sm:$0xff]  ;;  %v6582_v5 = vcombine.low %v753_v45, %v757_v50  ;;  %v769_v13 = vld [vmem:[%s6241_s21 + $0x300] sm:$0xff] }
 0x1fb   : > { %8662 = vst [vmem:[#allocation56_spill] sm:$0xff] %v6522_v15  ;;  %8663 = vst [vmem:[#allocation57_spill] sm:$0xff] %v6524_v16  ;;  %v6591_v12 = vcombine.high %v762_v2, %v766_v3  ;;  %v781_v45 = vld [vmem:[%s6241_s21 + $0x360] sm:$0xff]  ;;  %v778_v50 = vld [vmem:[%s6241_s21 + $0x348] sm:$0xff] }
 0x1fc   : > { %1600 = vmatpush1.bf16.msra.mxu0 %v4897_v21  ;;  %1643 = vmatpush1.bf16.msra.mxu1 %v4899_v22  ;;  %8664 = vst [vmem:[#allocation58_spill] sm:$0xff] %v6527_v17  ;;  %v742_v21 = vld [vmem:[%s6241_s21 + $0x228] sm:$0xff]  ;;  %v6534_v22 = vcombine.low %v729_v10, %v733_v11  ;;  %8666 = vst [vmem:[#allocation60_spill] sm:$0xff] %v6538_v25  ;;  %v6586_v10 = vcombine.low %v754_v51, %v758_v52 }
 0x1fd   : > { %2295 = vmatprep.subr.bf16.mxu0 %v6411_v23  ;;  %2336 = vmatprep.subr.bf16.mxu1 %v6413_v24  ;;  %v6543_v28 = vcombine.high %v738_v20, %v742_v21  ;;  %8677 = vst [vmem:[#allocation71_spill] sm:$0xff] %v6582_v5  ;;  %v6588_v11 = vcombine.high %v761_v60, %v765_v1  ;;  %8680 = vst [vmem:[#allocation74_spill] sm:$0xff] %v6591_v12  ;;  %v782_v51 = vld [vmem:[%s6241_s21 + $0x368] sm:$0xff] }
 0x1fe   : > { %8665 = vst [vmem:[#allocation59_spill] sm:$0xff] %v6534_v22  ;;  %8678 = vst [vmem:[#allocation72_spill] sm:$0xff] %v6586_v10  ;;  %v6614_v52 = vcombine.low %v769_v13, %v773_v18 }
 0x1ff   : > { %1602 = vmatmul.mubr.bf16.vlgmr.msra.gmra.mrb[4].mxu0 %v6345_v27  ;;  %1645 = vmatmul.mubr.bf16.vlgmr.msra.gmra.mrb[4].mxu1 %v6345_v27  ;;  %v701_v27 = vld [vmem:[%s6241_s21 + $0xe0] sm:$0xff]  ;;  %8668 = vst [vmem:[#allocation62_spill] sm:$0xff] %v6543_v28  ;;  %8679 = vst [vmem:[#allocation73_spill] sm:$0xff] %v6588_v11 }
 0x200   : > { %2296 = vmatpush1.bf16.msra.mxu0 %v6419_v30  ;;  %2337 = vmatpush1.bf16.msra.mxu1 %v6422_v31  ;;  %v6460_v48 = vcombine.high %v697_v42, %v701_v27  ;;  %v6470_v53 = vcombine.low %v697_v42, %v701_v27  ;;  %v6554_v42 = vcombine.low %v738_v20, %v742_v21  ;;  %v774_v20 = vld [vmem:[%s6241_s21 + $0x328] sm:$0xff] }
 0x201   : > { %2297 = vmatprep.subr.bf16.mxu0 %v6424_v32  ;;  %2338 = vmatprep.subr.bf16.mxu1 %v6427_v33  ;;  %v6556_v27 = vcombine.high %v745_v29, %v749_v34  ;;  %v6598_v21 = vcombine.low %v761_v60, %v765_v1  ;;  %v6602_v29 = vcombine.low %v762_v2, %v766_v3  ;;  %v785_v3 = vld [vmem:[%s6241_s21 + $0x380] sm:$0xff] }
 0x202   : > { %2327 = vmatprep.mubr.bf16.mxu0 %v8297_v43  ;;  %2368 = vmatprep.mubr.bf16.mxu1 %v8297_v43  ;;  %8647 = vst [vmem:[#allocation41_spill] sm:$0xff] %v6460_v48  ;;  %8649 = vst [vmem:[#allocation43_spill] sm:$0xff] %v6470_v53  ;;  %v6604_v34 = vcombine.high %v769_v13, %v773_v18  ;;  %v6607_v35 = vcombine.high %v770_v19, %v774_v20  ;;  %v789_v43 = vld [vmem:[%s6241_s21 + $0x3a0] sm:$0xff]  ;;  %v786_v13 = vld [vmem:[%s6241_s21 + $0x388] sm:$0xff] }
 0x203   : > { %8670 = vst [vmem:[#allocation64_spill] sm:$0xff] %v6554_v42  ;;  %8671 = vst [vmem:[#allocation65_spill] sm:$0xff] %v6556_v27  ;;  %v6618_v60 = vcombine.low %v770_v19, %v774_v20  ;;  %v6620_v1 = vcombine.high %v777_v36, %v781_v45  ;;  %v6623_v2 = vcombine.high %v778_v50, %v782_v51  ;;  %v790_v18 = vld [vmem:[%s6241_s21 + $0x3a8] sm:$0xff] }
 0x204   : > { %2298 = vmatpush1.bf16.msra.mxu0 %v6436_v38  ;;  %2339 = vmatpush1.bf16.msra.mxu1 %v6440_v39  ;;  %8681 = vst [vmem:[#allocation75_spill] sm:$0xff] %v6598_v21  ;;  %8682 = vst [vmem:[#allocation76_spill] sm:$0xff] %v6602_v29  ;;  %v6634_v19 = vcombine.low %v778_v50, %v782_v51  ;;  %v6636_v20 = vcombine.high %v785_v3, %v789_v43 }
 0x205   : > { %2299 = vmatprep.subr.bf16.mxu0 %v6442_v40  ;;  %2340 = vmatprep.subr.bf16.mxu1 %v6445_v41  ;;  %8683 = vst [vmem:[#allocation77_spill] sm:$0xff] %v6604_v34  ;;  %8684 = vst [vmem:[#allocation78_spill] sm:$0xff] %v6607_v35  ;;  %v6650_v50 = vcombine.low %v786_v13, %v790_v18 }
 0x206   : > { %8685 = vst [vmem:[#allocation79_spill] sm:$0xff] %v6614_v52  ;;  %8686 = vst [vmem:[#allocation80_spill] sm:$0xff] %v6618_v60 }
 0x207   : > { %8687 = vst [vmem:[#allocation81_spill] sm:$0xff] %v6620_v1  ;;  %8688 = vst [vmem:[#allocation82_spill] sm:$0xff] %v6623_v2 }
 0x208   : > { %2300 = vmatpush1.bf16.msra.mxu0 %v6454_v46  ;;  %2341 = vmatpush1.bf16.msra.mxu1 %v6458_v47  ;;  %8690 = vst [vmem:[#allocation84_spill] sm:$0xff] %v6634_v19  ;;  %8691 = vst [vmem:[#allocation85_spill] sm:$0xff] %v6636_v20 }
 0x209   : > { %2301 = vmatprep.subr.bf16.mxu0 %v6460_v48  ;;  %2342 = vmatprep.subr.bf16.mxu1 %v6463_v49  ;;  %8694 = vst [vmem:[#allocation88_spill] sm:$0xff] %v6650_v50 }
 0x20c   : > { %2302 = vmatpush1.bf16.msra.mxu0 %v6470_v53  ;;  %2343 = vmatpush1.bf16.msra.mxu1 %v6474_v54 }
 0x20d   : > { %2303 = vmatprep.subr.bf16.mxu0 %v6476_v55  ;;  %2344 = vmatprep.subr.bf16.mxu1 %v6479_v56 }
 0x210   : > { %2304 = vmatpush1.bf16.msra.mxu0 %v6486_v61  ;;  %2345 = vmatpush1.bf16.msra.mxu1 %v6490_v62 }
 0x211   : > { %2305 = vmatprep.subr.bf16.mxu0 %v6492_v63  ;;  %2346 = vmatprep.subr.bf16.mxu1 %v6495_v0 }
 0x214   : > { %2306 = vmatpush1.bf16.msra.mxu0 %v6502_v6  ;;  %2347 = vmatpush1.bf16.msra.mxu1 %v6506_v7 }
 0x215   : > { %2307 = vmatprep.subr.bf16.mxu0 %v6508_v8  ;;  %2348 = vmatprep.subr.bf16.mxu1 %v6511_v9 }
 0x218   : > { %2308 = vmatpush1.bf16.msra.mxu0 %v6518_v14  ;;  %2349 = vmatpush1.bf16.msra.mxu1 %v6522_v15 }
 0x219   : > { %2309 = vmatprep.subr.bf16.mxu0 %v6524_v16  ;;  %2350 = vmatprep.subr.bf16.mxu1 %v6527_v17 }
 0x21c   : > { %2310 = vmatpush1.bf16.msra.mxu0 %v6534_v22  ;;  %2351 = vmatpush1.bf16.msra.mxu1 %v6538_v25 }
 0x21d   : > { %2311 = vmatprep.subr.bf16.mxu0 %v6540_v26  ;;  %2352 = vmatprep.subr.bf16.mxu1 %v6543_v28 }
 0x220   : > { %2312 = vmatpush1.bf16.msra.mxu0 %v6550_v37  ;;  %2353 = vmatpush1.bf16.msra.mxu1 %v6554_v42 }
 0x221   : > { %2313 = vmatprep.subr.bf16.mxu0 %v6556_v27  ;;  %2354 = vmatprep.subr.bf16.mxu1 %v6559_v44 }
 0x224   : > { %2314 = vmatpush1.bf16.msra.mxu0 %v6566_v4  ;;  %2355 = vmatpush1.bf16.msra.mxu1 %v6570_v57 }
 0x225   : > { %2315 = vmatprep.subr.bf16.mxu0 %v6572_v58  ;;  %2356 = vmatprep.subr.bf16.mxu1 %v6575_v59 }
 0x228   : > { %2316 = vmatpush1.bf16.msra.mxu0 %v6582_v5  ;;  %2357 = vmatpush1.bf16.msra.mxu1 %v6586_v10  ;;  %v800_v10 = vld [vmem:[%s6241_s21 + $0x3f8] sm:$0xff] }
 0x229   : > { %2317 = vmatprep.subr.bf16.mxu0 %v6588_v11  ;;  %2358 = vmatprep.subr.bf16.mxu1 %v6591_v12  ;;  %v8705_v12 = vmov 0   ;;  %v796_v11 = vld [vmem:[%s6241_s21 + $0x3d8] sm:$0xff] }
 0x22c   : > { %2318 = vmatpush1.bf16.msra.mxu0 %v6598_v21  ;;  %2359 = vmatpush1.bf16.msra.mxu1 %v6602_v29  ;;  %v6630_v29 = vcombine.low %v777_v36, %v781_v45  ;;  %v794_v36 = vld [vmem:[%s6241_s21 + $0x3c8] sm:$0xff]  ;;  %v695_v21 = vld [vmem:[%s6241_s21 + $0xb0] sm:$0xff] }
 0x22d   : > { %2319 = vmatprep.subr.bf16.mxu0 %v6604_v34  ;;  %2360 = vmatprep.subr.bf16.mxu1 %v6607_v35  ;;  %v6639_v35 = vcombine.high %v786_v13, %v790_v18  ;;  %v793_v34 = vld [vmem:[%s6241_s21 + $0x3c0] sm:$0xff]  ;;  %v798_v45 = vld [vmem:[%s6241_s21 + $0x3e8] sm:$0xff] }
 0x22e   : > { %8689 = vst [vmem:[#allocation83_spill] sm:$0xff] %v6630_v29  ;;  %v6666_v13 = vcombine.low %v794_v36, %v798_v45 }
 0x22f   : > { %8692 = vst [vmem:[#allocation86_spill] sm:$0xff] %v6639_v35 }
 0x230   : > { %2320 = vmatpush1.bf16.msra.mxu0 %v6614_v52  ;;  %2361 = vmatpush1.bf16.msra.mxu1 %v6618_v60  ;;  %v797_v52 = vld [vmem:[%s6241_s21 + $0x3e0] sm:$0xff]  ;;  %v6646_v60 = vcombine.low %v785_v3, %v789_v43  ;;  %v676_v43 = vld [vmem:[%s6241_s21 + $0x18] sm:$0xff]  ;;  %8698 = vst [vmem:[#allocation92_spill] sm:$0xff] %v6666_v13 }
 0x231   : > { %2321 = vmatprep.subr.bf16.mxu0 %v6620_v1  ;;  %2362 = vmatprep.subr.bf16.mxu1 %v6623_v2  ;;  %v6652_v51 = vcombine.high %v793_v34, %v797_v52  ;;  %v6655_v2 = vcombine.high %v794_v36, %v798_v45  ;;  %v675_v1 = vld [vmem:[%s6241_s21 + $0x10] sm:$0xff]  ;;  %v680_v3 = vld [vmem:[%s6241_s21 + $0x38] sm:$0xff] }
 0x232   : > { %8693 = vst [vmem:[#allocation87_spill] sm:$0xff] %v6646_v60  ;;  %v6682_v36 = vcombine.low %v676_v43, %v680_v3 }
 0x233   : > { %8695 = vst [vmem:[#allocation89_spill] sm:$0xff] %v6652_v51  ;;  %8696 = vst [vmem:[#allocation90_spill] sm:$0xff] %v6655_v2 }
 0x234   : > { %2322 = vmatpush1.bf16.msra.mxu0 %v6630_v29  ;;  %2363 = vmatpush1.bf16.msra.mxu1 %v6634_v19  ;;  %v679_v29 = vld [vmem:[%s6241_s21 + $0x30] sm:$0xff]  ;;  %v6662_v19 = vcombine.low %v793_v34, %v797_v52  ;;  %v684_v34 = vld [vmem:[%s6241_s21 + $0x58] sm:$0xff]  ;;  %8702 = vst [vmem:[#allocation96_spill] sm:$0xff] %v6682_v36 }
 0x235   : > { %2323 = vmatprep.subr.bf16.mxu0 %v6636_v20  ;;  %2364 = vmatprep.subr.bf16.mxu1 %v6639_v35  ;;  %v6668_v18 = vcombine.high %v675_v1, %v679_v29  ;;  %v6671_v35 = vcombine.high %v676_v43, %v680_v3  ;;  %v683_v20 = vld [vmem:[%s6241_s21 + $0x50] sm:$0xff]  ;;  %v688_v52 = vld [vmem:[%s6241_s21 + $0x78] sm:$0xff] }
 0x236   : > { %8697 = vst [vmem:[#allocation91_spill] sm:$0xff] %v6662_v19  ;;  %v6700_v3 = vcombine.low %v684_v34, %v688_v52 }
 0x237   : > { %8699 = vst [vmem:[#allocation93_spill] sm:$0xff] %v6668_v18  ;;  %8700 = vst [vmem:[#allocation94_spill] sm:$0xff] %v6671_v35 }
 0x238   : > { %2324 = vmatpush1.bf16.msra.mxu0 %v6646_v60  ;;  %2365 = vmatpush1.bf16.msra.mxu1 %v6650_v50  ;;  %v687_v60 = vld [vmem:[%s6241_s21 + $0x70] sm:$0xff]  ;;  %v6678_v50 = vcombine.low %v675_v1, %v679_v29  ;;  %v692_v29 = vld [vmem:[%s6241_s21 + $0x98] sm:$0xff]  ;;  %8707 = vst [vmem:[#allocation100_spill] sm:$0xff] %v6700_v3 }
 0x239   : > { %2325 = vmatprep.subr.bf16.mxu0 %v6652_v51  ;;  %2366 = vmatprep.subr.bf16.mxu1 %v6655_v2  ;;  %v6684_v45 = vcombine.high %v683_v20, %v687_v60  ;;  %v6687_v2 = vcombine.high %v684_v34, %v688_v52  ;;  %v691_v51 = vld [vmem:[%s6241_s21 + $0x90] sm:$0xff]  ;;  %v696_v1 = vld [vmem:[%s6241_s21 + $0xb8] sm:$0xff]  ;;  %v6696_v43 = vcombine.low %v683_v20, %v687_v60 }
 0x23a   : > { %8701 = vst [vmem:[#allocation95_spill] sm:$0xff] %v6678_v50  ;;  %v700_v60 = vld [vmem:[%s6241_s21 + $0xd8] sm:$0xff]  ;;  %v6714_v34 = vcombine.low %v691_v51, %v695_v21  ;;  %v6718_v52 = vcombine.low %v692_v29, %v696_v1 }
 0x23b   : > { %8703 = vst [vmem:[#allocation97_spill] sm:$0xff] %v6684_v45  ;;  %8704 = vst [vmem:[#allocation98_spill] sm:$0xff] %v6687_v2  ;;  %v704_v20 = vld [vmem:[%s6241_s21 + $0xf8] sm:$0xff] }
 0x23c   : > { %2326 = vmatpush1.bf16.msra.mxu0 %v6662_v19  ;;  %2367 = vmatpush1.bf16.msra.mxu1 %v6666_v13  ;;  %8706 = vst [vmem:[#allocation99_spill] sm:$0xff] %v6696_v43  ;;  %v699_v13 = vld [vmem:[%s6241_s21 + $0xd0] sm:$0xff]  ;;  %8710 = vst [vmem:[#allocation103_spill] sm:$0xff] %v6714_v34 }
 0x23d   : > { %2377 = vmatprep.subr.bf16.mxu0 %v6668_v18  ;;  %2418 = vmatprep.subr.bf16.mxu1 %v6671_v35  ;;  %v6702_v35 = vcombine.high %v691_v51, %v695_v21  ;;  %v6705_v18 = vcombine.high %v692_v29, %v696_v1  ;;  %v703_v19 = vld [vmem:[%s6241_s21 + $0xf0] sm:$0xff]  ;;  %8711 = vst [vmem:[#allocation104_spill] sm:$0xff] %v6718_v52  ;;  %v708_v21 = vld [vmem:[%s6241_s21 + $0x118] sm:$0xff] }
 0x23e   : > { %v712_v51 = vld [vmem:[%s6241_s21 + $0x138] sm:$0xff]  ;;  %v6734_v29 = vcombine.low %v700_v60, %v704_v20 }
 0x23f   : > { %2328 = vmatmul.mubr.bf16.vlgmr.msra.gmra.mrb[8].mxu0 %v8705_v12  ;;  %2369 = vmatmul.mubr.bf16.vlgmr.msra.gmra.mrb[8].mxu1 %v8705_v12  ;;  %8708 = vst [vmem:[#allocation101_spill] sm:$0xff] %v6702_v35  ;;  %8709 = vst [vmem:[#allocation102_spill] sm:$0xff] %v6705_v18 }
 0x240   : > { %2378 = vmatpush1.bf16.msra.mxu0 %v6678_v50  ;;  %2419 = vmatpush1.bf16.msra.mxu1 %v6682_v36  ;;  %v707_v36 = vld [vmem:[%s6241_s21 + $0x110] sm:$0xff]  ;;  %8715 = vst [vmem:[#allocation108_spill] sm:$0xff] %v6734_v29 }
 0x241   : > { %2379 = vmatprep.subr.bf16.mxu0 %v6684_v45  ;;  %2420 = vmatprep.subr.bf16.mxu1 %v6687_v2  ;;  %v6720_v2 = vcombine.high %v699_v13, %v703_v19  ;;  %v6723_v45 = vcombine.high %v700_v60, %v704_v20  ;;  %v6750_v60 = vcombine.low %v708_v21, %v712_v51  ;;  %v799_v50 = vld [vmem:[%s6241_s21 + $0x3f0] sm:$0xff] }
 0x242   : > { %2409 = vmatprep.mubr.bf16.mxu0 %v8705_v12  ;;  %2450 = vmatprep.mubr.bf16.mxu1 %v8705_v12 }
 0x243   : > { %8712 = vst [vmem:[#allocation105_spill] sm:$0xff] %v6720_v2  ;;  %8713 = vst [vmem:[#allocation106_spill] sm:$0xff] %v6723_v45 }
 0x244   : > { %2380 = vmatpush1.bf16.msra.mxu0 %v6696_v43  ;;  %2421 = vmatpush1.bf16.msra.mxu1 %v6700_v3  ;;  %v711_v43 = vld [vmem:[%s6241_s21 + $0x130] sm:$0xff]  ;;  %v6730_v3 = vcombine.low %v699_v13, %v703_v19  ;;  %v716_v19 = vld [vmem:[%s6241_s21 + $0x158] sm:$0xff]  ;;  %8719 = vst [vmem:[#allocation112_spill] sm:$0xff] %v6750_v60 }
 0x245   : > { %2381 = vmatprep.subr.bf16.mxu0 %v6702_v35  ;;  %2422 = vmatprep.subr.bf16.mxu1 %v6705_v18  ;;  %v6736_v1 = vcombine.high %v707_v36, %v711_v43  ;;  %v6739_v18 = vcombine.high %v708_v21, %v712_v51  ;;  %v715_v35 = vld [vmem:[%s6241_s21 + $0x150] sm:$0xff]  ;;  %v720_v13 = vld [vmem:[%s6241_s21 + $0x178] sm:$0xff] }
 0x246   : > { %8714 = vst [vmem:[#allocation107_spill] sm:$0xff] %v6730_v3  ;;  %v6766_v21 = vcombine.low %v716_v19, %v720_v13 }
 0x247   : > { %8716 = vst [vmem:[#allocation109_spill] sm:$0xff] %v6736_v1  ;;  %8717 = vst [vmem:[#allocation110_spill] sm:$0xff] %v6739_v18 }
 0x248   : > { %2382 = vmatpush1.bf16.msra.mxu0 %v6714_v34  ;;  %2423 = vmatpush1.bf16.msra.mxu1 %v6718_v52  ;;  %v719_v34 = vld [vmem:[%s6241_s21 + $0x170] sm:$0xff]  ;;  %v6746_v52 = vcombine.low %v707_v36, %v711_v43  ;;  %v724_v36 = vld [vmem:[%s6241_s21 + $0x198] sm:$0xff]  ;;  %8723 = vst [vmem:[#allocation116_spill] sm:$0xff] %v6766_v21 }
 0x249   : > { %2383 = vmatprep.subr.bf16.mxu0 %v6720_v2  ;;  %2424 = vmatprep.subr.bf16.mxu1 %v6723_v45  ;;  %v6752_v20 = vcombine.high %v715_v35, %v719_v34  ;;  %v6755_v45 = vcombine.high %v716_v19, %v720_v13  ;;  %v723_v2 = vld [vmem:[%s6241_s21 + $0x190] sm:$0xff]  ;;  %v728_v43 = vld [vmem:[%s6241_s21 + $0x1b8] sm:$0xff] }
 0x24a   : > { %8718 = vst [vmem:[#allocation111_spill] sm:$0xff] %v6746_v52  ;;  %v6782_v19 = vcombine.low %v724_v36, %v728_v43 }
 0x24b   : > { %8720 = vst [vmem:[#allocation113_spill] sm:$0xff] %v6752_v20  ;;  %8721 = vst [vmem:[#allocation114_spill] sm:$0xff] %v6755_v45 }
 0x24c   : > { %2384 = vmatpush1.bf16.msra.mxu0 %v6730_v3  ;;  %2425 = vmatpush1.bf16.msra.mxu1 %v6734_v29  ;;  %v727_v3 = vld [vmem:[%s6241_s21 + $0x1b0] sm:$0xff]  ;;  %v6762_v29 = vcombine.low %v715_v35, %v719_v34  ;;  %v732_v35 = vld [vmem:[%s6241_s21 + $0x1d8] sm:$0xff]  ;;  %8727 = vst [vmem:[#allocation120_spill] sm:$0xff] %v6782_v19 }
 0x24d   : > { %2385 = vmatprep.subr.bf16.mxu0 %v6736_v1  ;;  %2426 = vmatprep.subr.bf16.mxu1 %v6739_v18  ;;  %v6768_v51 = vcombine.high %v723_v2, %v727_v3  ;;  %v6771_v18 = vcombine.high %v724_v36, %v728_v43  ;;  %v731_v1 = vld [vmem:[%s6241_s21 + $0x1d0] sm:$0xff]  ;;  %v736_v34 = vld [vmem:[%s6241_s21 + $0x1f8] sm:$0xff] }
 0x24e   : > { %8722 = vst [vmem:[#allocation115_spill] sm:$0xff] %v6762_v29  ;;  %v6798_v36 = vcombine.low %v732_v35, %v736_v34 }
 0x24f   : > { %8724 = vst [vmem:[#allocation117_spill] sm:$0xff] %v6768_v51  ;;  %8725 = vst [vmem:[#allocation118_spill] sm:$0xff] %v6771_v18 }
 0x250   : > { %2386 = vmatpush1.bf16.msra.mxu0 %v6746_v52  ;;  %2427 = vmatpush1.bf16.msra.mxu1 %v6750_v60  ;;  %v735_v52 = vld [vmem:[%s6241_s21 + $0x1f0] sm:$0xff]  ;;  %v6778_v60 = vcombine.low %v723_v2, %v727_v3  ;;  %v740_v2 = vld [vmem:[%s6241_s21 + $0x218] sm:$0xff]  ;;  %8731 = vst [vmem:[#allocation124_spill] sm:$0xff] %v6798_v36 }
 0x251   : > { %2387 = vmatprep.subr.bf16.mxu0 %v6752_v20  ;;  %2428 = vmatprep.subr.bf16.mxu1 %v6755_v45  ;;  %v6784_v13 = vcombine.high %v731_v1, %v735_v52  ;;  %v6787_v45 = vcombine.high %v732_v35, %v736_v34  ;;  %v739_v20 = vld [vmem:[%s6241_s21 + $0x210] sm:$0xff]  ;;  %v744_v3 = vld [vmem:[%s6241_s21 + $0x238] sm:$0xff] }
 0x252   : > { %8726 = vst [vmem:[#allocation119_spill] sm:$0xff] %v6778_v60  ;;  %v6814_v35 = vcombine.low %v740_v2, %v744_v3 }
 0x253   : > { %8728 = vst [vmem:[#allocation121_spill] sm:$0xff] %v6784_v13  ;;  %8729 = vst [vmem:[#allocation122_spill] sm:$0xff] %v6787_v45 }
 0x254   : > { %2388 = vmatpush1.bf16.msra.mxu0 %v6762_v29  ;;  %2429 = vmatpush1.bf16.msra.mxu1 %v6766_v21  ;;  %v743_v29 = vld [vmem:[%s6241_s21 + $0x230] sm:$0xff]  ;;  %v6794_v21 = vcombine.low %v731_v1, %v735_v52  ;;  %v748_v52 = vld [vmem:[%s6241_s21 + $0x258] sm:$0xff]  ;;  %8735 = vst [vmem:[#allocation128_spill] sm:$0xff] %v6814_v35 }
 0x255   : > { %2389 = vmatprep.subr.bf16.mxu0 %v6768_v51  ;;  %2430 = vmatprep.subr.bf16.mxu1 %v6771_v18  ;;  %v6800_v43 = vcombine.high %v739_v20, %v743_v29  ;;  %v6803_v18 = vcombine.high %v740_v2, %v744_v3  ;;  %v747_v51 = vld [vmem:[%s6241_s21 + $0x250] sm:$0xff]  ;;  %v752_v1 = vld [vmem:[%s6241_s21 + $0x278] sm:$0xff] }
 0x256   : > { %8730 = vst [vmem:[#allocation123_spill] sm:$0xff] %v6794_v21  ;;  %v6830_v2 = vcombine.low %v748_v52, %v752_v1 }
 0x257   : > { %8732 = vst [vmem:[#allocation125_spill] sm:$0xff] %v6800_v43  ;;  %8733 = vst [vmem:[#allocation126_spill] sm:$0xff] %v6803_v18 }
 0x258   : > { %2390 = vmatpush1.bf16.msra.mxu0 %v6778_v60  ;;  %2431 = vmatpush1.bf16.msra.mxu1 %v6782_v19  ;;  %v751_v60 = vld [vmem:[%s6241_s21 + $0x270] sm:$0xff]  ;;  %v6810_v19 = vcombine.low %v739_v20, %v743_v29  ;;  %v756_v29 = vld [vmem:[%s6241_s21 + $0x298] sm:$0xff]  ;;  %8739 = vst [vmem:[#allocation132_spill] sm:$0xff] %v6830_v2 }
 0x259   : > { %2391 = vmatprep.subr.bf16.mxu0 %v6784_v13  ;;  %2432 = vmatprep.subr.bf16.mxu1 %v6787_v45  ;;  %v6816_v34 = vcombine.high %v747_v51, %v751_v60  ;;  %v6819_v45 = vcombine.high %v748_v52, %v752_v1  ;;  %v755_v13 = vld [vmem:[%s6241_s21 + $0x290] sm:$0xff]  ;;  %v760_v20 = vld [vmem:[%s6241_s21 + $0x2b8] sm:$0xff] }
 0x25a   : > { %8734 = vst [vmem:[#allocation127_spill] sm:$0xff] %v6810_v19  ;;  %v6846_v52 = vcombine.low %v756_v29, %v760_v20 }
 0x25b   : > { %8736 = vst [vmem:[#allocation129_spill] sm:$0xff] %v6816_v34  ;;  %8737 = vst [vmem:[#allocation130_spill] sm:$0xff] %v6819_v45 }
 0x25c   : > { %2392 = vmatpush1.bf16.msra.mxu0 %v6794_v21  ;;  %2433 = vmatpush1.bf16.msra.mxu1 %v6798_v36  ;;  %v759_v21 = vld [vmem:[%s6241_s21 + $0x2b0] sm:$0xff]  ;;  %v6826_v36 = vcombine.low %v747_v51, %v751_v60  ;;  %v764_v60 = vld [vmem:[%s6241_s21 + $0x2d8] sm:$0xff]  ;;  %8743 = vst [vmem:[#allocation136_spill] sm:$0xff] %v6846_v52 }
 0x25d   : > { %2393 = vmatprep.subr.bf16.mxu0 %v6800_v43  ;;  %2434 = vmatprep.subr.bf16.mxu1 %v6803_v18  ;;  %v6832_v3 = vcombine.high %v755_v13, %v759_v21  ;;  %v6835_v18 = vcombine.high %v756_v29, %v760_v20  ;;  %v763_v43 = vld [vmem:[%s6241_s21 + $0x2d0] sm:$0xff]  ;;  %v768_v51 = vld [vmem:[%s6241_s21 + $0x2f8] sm:$0xff] }
 0x25e   : > { %8738 = vst [vmem:[#allocation131_spill] sm:$0xff] %v6826_v36  ;;  %v6862_v29 = vcombine.low %v764_v60, %v768_v51 }
 0x25f   : > { %8740 = vst [vmem:[#allocation133_spill] sm:$0xff] %v6832_v3  ;;  %8741 = vst [vmem:[#allocation134_spill] sm:$0xff] %v6835_v18 }
 0x260   : > { %2394 = vmatpush1.bf16.msra.mxu0 %v6810_v19  ;;  %2435 = vmatpush1.bf16.msra.mxu1 %v6814_v35  ;;  %v767_v19 = vld [vmem:[%s6241_s21 + $0x2f0] sm:$0xff]  ;;  %v6842_v35 = vcombine.low %v755_v13, %v759_v21  ;;  %v772_v21 = vld [vmem:[%s6241_s21 + $0x318] sm:$0xff]  ;;  %8747 = vst [vmem:[#allocation140_spill] sm:$0xff] %v6862_v29 }
 0x261   : > { %2395 = vmatprep.subr.bf16.mxu0 %v6816_v34  ;;  %2436 = vmatprep.subr.bf16.mxu1 %v6819_v45  ;;  %v6848_v1 = vcombine.high %v763_v43, %v767_v19  ;;  %v6851_v45 = vcombine.high %v764_v60, %v768_v51  ;;  %v771_v34 = vld [vmem:[%s6241_s21 + $0x310] sm:$0xff]  ;;  %v776_v13 = vld [vmem:[%s6241_s21 + $0x338] sm:$0xff] }
 0x262   : > { %8742 = vst [vmem:[#allocation135_spill] sm:$0xff] %v6842_v35  ;;  %v6878_v60 = vcombine.low %v772_v21, %v776_v13 }
 0x263   : > { %8744 = vst [vmem:[#allocation137_spill] sm:$0xff] %v6848_v1  ;;  %8745 = vst [vmem:[#allocation138_spill] sm:$0xff] %v6851_v45 }
 0x264   : > { %2396 = vmatpush1.bf16.msra.mxu0 %v6826_v36  ;;  %2437 = vmatpush1.bf16.msra.mxu1 %v6830_v2  ;;  %v775_v36 = vld [vmem:[%s6241_s21 + $0x330] sm:$0xff]  ;;  %v6858_v2 = vcombine.low %v763_v43, %v767_v19  ;;  %v780_v19 = vld [vmem:[%s6241_s21 + $0x358] sm:$0xff]  ;;  %8751 = vst [vmem:[#allocation144_spill] sm:$0xff] %v6878_v60 }
 0x265   : > { %2397 = vmatprep.subr.bf16.mxu0 %v6832_v3  ;;  %2438 = vmatprep.subr.bf16.mxu1 %v6835_v18  ;;  %v6864_v20 = vcombine.high %v771_v34, %v775_v36  ;;  %v6867_v18 = vcombine.high %v772_v21, %v776_v13  ;;  %v779_v3 = vld [vmem:[%s6241_s21 + $0x350] sm:$0xff]  ;;  %v784_v43 = vld [vmem:[%s6241_s21 + $0x378] sm:$0xff] }
 0x266   : > { %8746 = vst [vmem:[#allocation139_spill] sm:$0xff] %v6858_v2  ;;  %v6894_v21 = vcombine.low %v780_v19, %v784_v43 }
 0x267   : > { %8748 = vst [vmem:[#allocation141_spill] sm:$0xff] %v6864_v20  ;;  %8749 = vst [vmem:[#allocation142_spill] sm:$0xff] %v6867_v18 }
 0x268   : > { %2398 = vmatpush1.bf16.msra.mxu0 %v6842_v35  ;;  %2439 = vmatpush1.bf16.msra.mxu1 %v6846_v52  ;;  %v783_v35 = vld [vmem:[%s6241_s21 + $0x370] sm:$0xff]  ;;  %v6874_v52 = vcombine.low %v771_v34, %v775_v36  ;;  %v788_v36 = vld [vmem:[%s6241_s21 + $0x398] sm:$0xff]  ;;  %8755 = vst [vmem:[#allocation148_spill] sm:$0xff] %v6894_v21 }
 0x269   : > { %2399 = vmatprep.subr.bf16.mxu0 %v6848_v1  ;;  %2440 = vmatprep.subr.bf16.mxu1 %v6851_v45  ;;  %v6880_v51 = vcombine.high %v779_v3, %v783_v35  ;;  %v6883_v45 = vcombine.high %v780_v19, %v784_v43  ;;  %v787_v1 = vld [vmem:[%s6241_s21 + $0x390] sm:$0xff]  ;;  %v792_v34 = vld [vmem:[%s6241_s21 + $0x3b8] sm:$0xff]  ;;  %v6915_v43 = vcombine.high %v796_v11, %v800_v10 }
 0x26a   : > { %8750 = vst [vmem:[#allocation143_spill] sm:$0xff] %v6874_v52 }
 0x26b   : > { %8752 = vst [vmem:[#allocation145_spill] sm:$0xff] %v6880_v51  ;;  %8753 = vst [vmem:[#allocation146_spill] sm:$0xff] %v6883_v45 }
 0x26c   : > { %2400 = vmatpush1.bf16.msra.mxu0 %v6858_v2  ;;  %2441 = vmatpush1.bf16.msra.mxu1 %v6862_v29  ;;  %v791_v2 = vld [vmem:[%s6241_s21 + $0x3b0] sm:$0xff]  ;;  %v6890_v29 = vcombine.low %v779_v3, %v783_v35  ;;  %v6910_v3 = vcombine.low %v788_v36, %v792_v34  ;;  %8761 = vst [vmem:[#allocation154_spill] sm:$0xff] %v6915_v43 }
 0x26d   : > { %2401 = vmatprep.subr.bf16.mxu0 %v6864_v20  ;;  %2442 = vmatprep.subr.bf16.mxu1 %v6867_v18  ;;  %v6896_v13 = vcombine.high %v787_v1, %v791_v2  ;;  %v6899_v18 = vcombine.high %v788_v36, %v792_v34  ;;  %v795_v20 = vld [vmem:[%s6241_s21 + $0x3d0] sm:$0xff]  ;;  %v6906_v35 = vcombine.low %v787_v1, %v791_v2 }
 0x26e   : > { %8754 = vst [vmem:[#allocation147_spill] sm:$0xff] %v6890_v29  ;;  %8759 = vst [vmem:[#allocation152_spill] sm:$0xff] %v6910_v3  ;;  %v6912_v19 = vcombine.high %v795_v20, %v799_v50  ;;  %v6922_v2 = vcombine.low %v796_v11, %v800_v10  ;;  %v803_v10 = vlaneseq }
 0x26f   : > { %8756 = vst [vmem:[#allocation149_spill] sm:$0xff] %v6896_v13  ;;  %8757 = vst [vmem:[#allocation150_spill] sm:$0xff] %v6899_v18 }
 0x270   : > { %2402 = vmatpush1.bf16.msra.mxu0 %v6874_v52  ;;  %2443 = vmatpush1.bf16.msra.mxu1 %v6878_v60  ;;  %8758 = vst [vmem:[#allocation151_spill] sm:$0xff] %v6906_v35  ;;  %8760 = vst [vmem:[#allocation153_spill] sm:$0xff] %v6912_v19  ;;  %v6940_v11 = vshrl.u32 %v803_v10, 7 }
 0x271   : > { %2403 = vmatprep.subr.bf16.mxu0 %v6880_v51  ;;  %2444 = vmatprep.subr.bf16.mxu1 %v6883_v45  ;;  %v6918_v45 = vcombine.low %v795_v20, %v799_v50  ;;  %8763 = vst [vmem:[#allocation156_spill] sm:$0xff] %v6922_v2  ;;  %v6952_v50 = vld [vmem:[%s6247_s12] sm:$0xff] }
 0x272   : > { %8764 = vst [vmem:[#allocation157_spill] sm:$0xff] %v6940_v11  ;;  %v813_v1 = vsub.s32 2, %v6940_v11  ;;  %v6957_v20 = vsub.s32 1, %v6940_v11  ;;  %v817_v34 = vsub.s32 3, %v6940_v11 }
 0x273   : > { %8762 = vst [vmem:[#allocation155_spill] sm:$0xff] %v6918_v45 }
 0x274   : > { %2404 = vmatpush1.bf16.msra.mxu0 %v6890_v29  ;;  %2445 = vmatpush1.bf16.msra.mxu1 %v6894_v21  ;;  %8766 = vst [vmem:[#allocation159_spill] sm:$0xff] %v6957_v20 }
 0x275   : > { %2405 = vmatprep.subr.bf16.mxu0 %v6896_v13  ;;  %2446 = vmatprep.subr.bf16.mxu1 %v6899_v18 }
 0x278   : > { %2406 = vmatpush1.bf16.msra.mxu0 %v6906_v35  ;;  %2447 = vmatpush1.bf16.msra.mxu1 %v6910_v3 }
 0x279   : > { %2407 = vmatprep.subr.bf16.mxu0 %v6912_v19  ;;  %2448 = vmatprep.subr.bf16.mxu1 %v6915_v43 }
 0x27c   : > { %2408 = vmatpush1.bf16.msra.mxu0 %v6918_v45  ;;  %2449 = vmatpush1.bf16.msra.mxu1 %v6922_v2 }
 0x27d   : > { %2517 = vmatprep.subr.bf16.mxu0 %v6411_v23  ;;  %2558 = vmatprep.subr.bf16.mxu1 %v6413_v24 }
 0x27f   : > { %2410 = vmatmul.mubr.bf16.vlgmr.msra.gmra.mrb[12].mxu0 %v8705_v12  ;;  %2451 = vmatmul.mubr.bf16.vlgmr.msra.gmra.mrb[12].mxu1 %v8705_v12  ;;  %v6947_v12 = vsub.s32 0, %v6940_v11 }
 0x280   : > { %2518 = vmatpush1.bf16.msra.mxu0 %v6419_v30  ;;  %2559 = vmatpush1.bf16.msra.mxu1 %v6422_v31 }
 0x281   : > { %2519 = vmatprep.subr.bf16.mxu0 %v6424_v32  ;;  %2560 = vmatprep.subr.bf16.mxu1 %v6427_v33  ;;  %8765 = vst [vmem:[#allocation158_spill] sm:$0xff] %v6947_v12  ;;  %v6962_v36 = vrot.slane %v6952_v50, %v6947_v12  ;;  %v6979_v12 = vrot.slane %v6952_v50, %v6957_v20 }
 0x284   : > { %2520 = vmatpush1.bf16.msra.mxu0 %v6436_v38  ;;  %2561 = vmatpush1.bf16.msra.mxu1 %v6440_v39 }
 0x285   : > { %2521 = vmatprep.subr.bf16.mxu0 %v6442_v40  ;;  %2562 = vmatprep.subr.bf16.mxu1 %v6445_v41 }
 0x288   : > { %2522 = vmatpush1.bf16.msra.mxu0 %v6454_v46  ;;  %2563 = vmatpush1.bf16.msra.mxu1 %v6458_v47 }
 0x289   : > { %2523 = vmatprep.subr.bf16.mxu0 %v6460_v48  ;;  %2564 = vmatprep.subr.bf16.mxu1 %v6463_v49 }
 0x28c   : > { %2524 = vmatpush1.bf16.msra.mxu0 %v6470_v53  ;;  %2565 = vmatpush1.bf16.msra.mxu1 %v6474_v54 }
 0x28d   : > { %2525 = vmatprep.subr.bf16.mxu0 %v6476_v55  ;;  %2566 = vmatprep.subr.bf16.mxu1 %v6479_v56  ;;  %v6970_v55 = vrot.slane %v6952_v50, %v813_v1 }
 0x290   : > { %2526 = vmatpush1.bf16.msra.mxu0 %v6486_v61  ;;  %2567 = vmatpush1.bf16.msra.mxu1 %v6490_v62 }
 0x291   : > { %2527 = vmatprep.subr.bf16.mxu0 %v6492_v63  ;;  %2568 = vmatprep.subr.bf16.mxu1 %v6495_v0  ;;  %v6985_v63 = vrot.slane %v6952_v50, %v817_v34 }
 0x292   : > { %v6967_v10 = vpop.f32.mrb[0].mxu0  ;;  %v6973_v56 = vpop.f32.mrb[0].mxu1 }
 0x293   : > { %v6975_v61 = vpop.f32.mrb[1].mxu0  ;;  %v6981_v54 = vpop.f32.mrb[1].mxu1 }
 0x294   : > { %v1521_v62 = vpop.f32.mrb[2].mxu0  ;;  %2528 = vmatpush1.bf16.msra.mxu0 %v6502_v6  ;;  %v1564_v0 = vpop.f32.mrb[2].mxu1  ;;  %2569 = vmatpush1.bf16.msra.mxu1 %v6506_v7 }
 0x295   : > { %v6988_v1 = vadd.f32 %v1521_v62, %v6962_v36  ;;  %v1523_v53 = vpop.f32.mrb[3].mxu0  ;;  %2529 = vmatprep.subr.bf16.mxu0 %v6508_v8  ;;  %v6993_v20 = vadd.f32 %v1564_v0, %v6970_v55  ;;  %v1566_v48 = vpop.f32.mrb[3].mxu1  ;;  %2570 = vmatprep.subr.bf16.mxu1 %v6511_v9  ;;  %v8773_v62 = vld [vmem:[#allocation74_spill] sm:$0xff]  ;;  %v8774_v0 = vld [vmem:[#allocation75_spill] sm:$0xff] }
 0x296   : > { %v6996_v49 = vadd.f32 %v1523_v53, %v6979_v12  ;;  %v7000_v34 = vadd.f32 %v1566_v48, %v6985_v63  ;;  %v8771_v48 = vld [vmem:[#allocation72_spill] sm:$0xff]  ;;  %v8772_v53 = vld [vmem:[#allocation73_spill] sm:$0xff] }
 0x297   : > { %8767 = vst [vmem:[#allocation160_spill] sm:$0xff] %v6988_v1  ;;  %8768 = vst [vmem:[#allocation161_spill] sm:$0xff] %v6993_v20  ;;  %v8776_v1 = vld [vmem:[#allocation77_spill] sm:$0xff]  ;;  %v8778_v20 = vld [vmem:[#allocation79_spill] sm:$0xff] }
 0x298   : > { %8769 = vst [vmem:[#allocation162_spill] sm:$0xff] %v6996_v49  ;;  %8770 = vst [vmem:[#allocation163_spill] sm:$0xff] %v7000_v34  ;;  %2530 = vmatpush1.bf16.msra.mxu0 %v6518_v14  ;;  %2571 = vmatpush1.bf16.msra.mxu1 %v6522_v15  ;;  %v8775_v49 = vld [vmem:[#allocation76_spill] sm:$0xff]  ;;  %v8777_v34 = vld [vmem:[#allocation78_spill] sm:$0xff] }
 0x299   : > { %2531 = vmatprep.subr.bf16.mxu0 %v6524_v16  ;;  %2572 = vmatprep.subr.bf16.mxu1 %v6527_v17 }
 0x29c   : > { %2532 = vmatpush1.bf16.msra.mxu0 %v6534_v22  ;;  %2573 = vmatpush1.bf16.msra.mxu1 %v6538_v25 }
 0x29d   : > { %2533 = vmatprep.subr.bf16.mxu0 %v6540_v26  ;;  %2574 = vmatprep.subr.bf16.mxu1 %v6543_v28 }
 0x2a0   : > { %2534 = vmatpush1.bf16.msra.mxu0 %v6550_v37  ;;  %2575 = vmatpush1.bf16.msra.mxu1 %v6554_v42 }
 0x2a1   : > { %2535 = vmatprep.subr.bf16.mxu0 %v6556_v27  ;;  %2576 = vmatprep.subr.bf16.mxu1 %v6559_v44 }
 0x2a4   : > { %2536 = vmatpush1.bf16.msra.mxu0 %v6566_v4  ;;  %2577 = vmatpush1.bf16.msra.mxu1 %v6570_v57 }
 0x2a5   : > { %2537 = vmatprep.subr.bf16.mxu0 %v6572_v58  ;;  %2578 = vmatprep.subr.bf16.mxu1 %v6575_v59  ;;  %v8779_v58 = vld [vmem:[#allocation80_spill] sm:$0xff]  ;;  %v8780_v59 = vld [vmem:[#allocation81_spill] sm:$0xff] }
 0x2a8   : > { %2538 = vmatpush1.bf16.msra.mxu0 %v6582_v5  ;;  %2579 = vmatpush1.bf16.msra.mxu1 %v8771_v48  ;;  %v8781_v5 = vld [vmem:[#allocation82_spill] sm:$0xff]  ;;  %v8782_v48 = vld [vmem:[#allocation83_spill] sm:$0xff] }
 0x2a9   : > { %2539 = vmatprep.subr.bf16.mxu0 %v8772_v53  ;;  %2580 = vmatprep.subr.bf16.mxu1 %v8773_v62  ;;  %v8783_v53 = vld [vmem:[#allocation84_spill] sm:$0xff]  ;;  %v8784_v62 = vld [vmem:[#allocation85_spill] sm:$0xff] }
 0x2ac   : > { %2540 = vmatpush1.bf16.msra.mxu0 %v8774_v0  ;;  %2581 = vmatpush1.bf16.msra.mxu1 %v8775_v49  ;;  %v8785_v0 = vld [vmem:[#allocation86_spill] sm:$0xff]  ;;  %v8786_v49 = vld [vmem:[#allocation87_spill] sm:$0xff] }
 0x2ad   : > { %2541 = vmatprep.subr.bf16.mxu0 %v8776_v1  ;;  %2582 = vmatprep.subr.bf16.mxu1 %v8777_v34  ;;  %v8787_v1 = vld [vmem:[#allocation88_spill] sm:$0xff]  ;;  %v8788_v34 = vld [vmem:[#allocation89_spill] sm:$0xff] }
 0x2b0   : > { %2542 = vmatpush1.bf16.msra.mxu0 %v8778_v20  ;;  %2583 = vmatpush1.bf16.msra.mxu1 %v8779_v58  ;;  %v8789_v20 = vld [vmem:[#allocation90_spill] sm:$0xff]  ;;  %v8790_v58 = vld [vmem:[#allocation91_spill] sm:$0xff] }
 0x2b1   : > { %2543 = vmatprep.subr.bf16.mxu0 %v8780_v59  ;;  %2584 = vmatprep.subr.bf16.mxu1 %v8781_v5  ;;  %v8791_v59 = vld [vmem:[#allocation92_spill] sm:$0xff]  ;;  %v8792_v5 = vld [vmem:[#allocation93_spill] sm:$0xff] }
 0x2b4   : > { %2544 = vmatpush1.bf16.msra.mxu0 %v8782_v48  ;;  %2585 = vmatpush1.bf16.msra.mxu1 %v8783_v53  ;;  %v8793_v48 = vld [vmem:[#allocation94_spill] sm:$0xff] }
 0x2b5   : > { %2545 = vmatprep.subr.bf16.mxu0 %v8784_v62  ;;  %2586 = vmatprep.subr.bf16.mxu1 %v8785_v0  ;;  %v821_v62 = vsub.s32 4, %v6940_v11  ;;  %v829_v0 = vsub.s32 6, %v6940_v11 }
 0x2b8   : > { %2546 = vmatpush1.bf16.msra.mxu0 %v8786_v49  ;;  %2587 = vmatpush1.bf16.msra.mxu1 %v8787_v1  ;;  %v825_v49 = vsub.s32 5, %v6940_v11  ;;  %v822_v1 = vrot.slane %v6952_v50, %v821_v62 }
 0x2b9   : > { %2547 = vmatprep.subr.bf16.mxu0 %v8788_v34  ;;  %2588 = vmatprep.subr.bf16.mxu1 %v8789_v20  ;;  %v833_v34 = vsub.s32 7, %v6940_v11  ;;  %v830_v20 = vrot.slane %v6952_v50, %v829_v0 }
 0x2bc   : > { %2548 = vmatpush1.bf16.msra.mxu0 %v8790_v58  ;;  %2589 = vmatpush1.bf16.msra.mxu1 %v8791_v59  ;;  %v826_v59 = vrot.slane %v6952_v50, %v825_v49 }
 0x2bd   : > { %2599 = vmatprep.subr.bf16.mxu0 %v8792_v5  ;;  %2640 = vmatprep.subr.bf16.mxu1 %v8793_v48  ;;  %v834_v48 = vrot.slane %v6952_v50, %v833_v34  ;;  %v7073_v50 = vadd.f32 %v6981_v54, %v6985_v63 }
 0x2bf   : > { %8799 = vst [vmem:[#allocation169_spill] sm:$0xff] %v7073_v50 }
 0x2d2   : > { %v1603_v53 = vpop.f32.mrb[4].mxu0  ;;  %v1646_v58 = vpop.f32.mrb[4].mxu1 }
 0x2d3   : > { %v1605_v57 = vpop.f32.mrb[5].mxu0  ;;  %v1648_v5 = vpop.f32.mrb[5].mxu1 }
 0x2d4   : > { %v1607_v4 = vpop.f32.mrb[6].mxu0  ;;  %v1650_v27 = vpop.f32.mrb[6].mxu1 }
 0x2d5   : > { %v7050_v44 = vadd.f32 %v1607_v4, %v822_v1  ;;  %v1609_v42 = vpop.f32.mrb[7].mxu0  ;;  %v7052_v37 = vadd.f32 %v1650_v27, %v830_v20  ;;  %v1652_v11 = vpop.f32.mrb[7].mxu1  ;;  %v7060_v4 = vadd.f32 %v6967_v10, %v6962_v36  ;;  %v7064_v27 = vadd.f32 %v6973_v56, %v6970_v55 }
 0x2d6   : > { %v7054_v62 = vadd.f32 %v1609_v42, %v826_v59  ;;  %v7056_v28 = vadd.f32 %v1652_v11, %v834_v48  ;;  %v7068_v42 = vadd.f32 %v6975_v61, %v6979_v12 }
 0x2d7   : > { %8794 = vst [vmem:[#allocation164_spill] sm:$0xff] %v7050_v44  ;;  %8795 = vst [vmem:[#allocation165_spill] sm:$0xff] %v7052_v37  ;;  %v8823_v37 = vld [vmem:[#allocation116_spill] sm:$0xff]  ;;  %v8824_v44 = vld [vmem:[#allocation117_spill] sm:$0xff] }
 0x2d8   : > { %8796 = vst [vmem:[#allocation166_spill] sm:$0xff] %v7054_v62  ;;  %8797 = vst [vmem:[#allocation167_spill] sm:$0xff] %v7056_v28  ;;  %v7080_v28 = vadd.f32 %v1646_v58, %v830_v20  ;;  %v8822_v62 = vld [vmem:[#allocation115_spill] sm:$0xff] }
 0x2d9   : > { %8798 = vst [vmem:[#allocation168_spill] sm:$0xff] %v7064_v27 }
 0x312   : > { %v2329_v0 = vpop.f32.mrb[8].mxu0  ;;  %v2370_v26 = vpop.f32.mrb[8].mxu1 }
 0x313   : > { %v2331_v25 = vpop.f32.mrb[9].mxu0  ;;  %v2372_v22 = vpop.f32.mrb[9].mxu1  ;;  %v2459_v11 = vadd.f32 %v2329_v0, %v7060_v4 }
 0x314   : > { %v2333_v49 = vpop.f32.mrb[10].mxu0  ;;  %v2374_v17 = vpop.f32.mrb[10].mxu1 }
 0x315   : > { %v2334_v16 = vpop.f32.mrb[11].mxu0  ;;  %v2375_v15 = vpop.f32.mrb[11].mxu1  ;;  %v2462_v17 = vadd.f32 %v2372_v22, %v7073_v50  ;;  %v5029_v36 = vmul.f32 -1.442695, %v2459_v11  ;;  %v7082_v22 = vadd.f32 %v1605_v57, %v826_v59 }
 0x316   : > { %v2461_v15 = vadd.f32 %v2370_v26, %v7064_v27  ;;  %v2460_v16 = vadd.f32 %v2331_v25, %v7068_v42  ;;  %v7078_v26 = vadd.f32 %v1603_v53, %v822_v1 }
 0x317   : > { %v5032_v56 = vmul.f32 -1.442695, %v2462_v17  ;;  %5280 = vpow2.f32 %v5029_v36 }
 0x318   : > { %v5031_v10 = vmul.f32 -1.442695, %v2461_v15  ;;  %v5030_v55 = vmul.f32 -1.442695, %v2460_v16  ;;  %v7084_v15 = vadd.f32 %v1648_v5, %v834_v48 }
 0x31a   : > { %5282 = vpow2.f32 %v5031_v10 }
 0x31b   : > { %5284 = vpow2.f32 %v5030_v55 }
 0x31c   : > { %5286 = vpow2.f32 %v5032_v56 }
 0x321   : > { %v5281_v61 = vpop.eup %5280 }
 0x322   : > { %v2485_v54 = vadd.f32 1.0, %v5281_v61 }
 0x324   : > { %v5283_v12 = vpop.eup %5282  ;;  %5288 = vrcp.f32 %v2485_v54 }
 0x325   : > { %v5285_v34 = vpop.eup %5284  ;;  %v2487_v63 = vadd.f32 1.0, %v5283_v12 }
 0x326   : > { %v5287_v0 = vpop.eup %5286  ;;  %v2486_v49 = vadd.f32 1.0, %v5285_v34 }
 0x327   : > { %v2488_v25 = vadd.f32 1.0, %v5287_v0  ;;  %5290 = vrcp.f32 %v2487_v63 }
 0x328   : > { %5292 = vrcp.f32 %v2486_v49 }
 0x329   : > { %5294 = vrcp.f32 %v2488_v25 }
 0x32e   : > { %v5289_v56 = vpop.eup %5288 }
 0x331   : > { %v5291_v61 = vpop.eup %5290 }
 0x332   : > { %v5293_v12 = vpop.eup %5292  ;;  %v2505_v63 = vmul.f32 0.0, %v5291_v61  ;;  %v8802_v61 = vld [vmem:[#allocation95_spill] sm:$0xff] }
 0x333   : > { %v5295_v34 = vpop.eup %5294 }
 0x352   : > { %v2411_v11 = vpop.f32.mrb[12].mxu0  ;;  %v2452_v17 = vpop.f32.mrb[12].mxu1 }
 0x353   : > { %v2463_v16 = vadd.f32 %v2411_v11, %v7078_v26  ;;  %v2413_v36 = vpop.f32.mrb[13].mxu0  ;;  %v2465_v10 = vadd.f32 %v2452_v17, %v7080_v28  ;;  %v2454_v53 = vpop.f32.mrb[13].mxu1 }
 0x354   : > { %v2464_v1 = vadd.f32 %v2413_v36, %v7082_v22  ;;  %v2415_v55 = vpop.f32.mrb[14].mxu0  ;;  %v2466_v57 = vadd.f32 %v2454_v53, %v7084_v15  ;;  %v2456_v59 = vpop.f32.mrb[14].mxu1 }
 0x355   : > { %v5033_v58 = vmul.f32 -1.442695, %v2463_v16  ;;  %v2416_v20 = vpop.f32.mrb[15].mxu0  ;;  %5296 = vtanh.f32 %v2465_v10  ;;  %v2457_v48 = vpop.f32.mrb[15].mxu1  ;;  %v2506_v10 = vmul.f32 0.0, %v5295_v34  ;;  %v8804_v34 = vld [vmem:[#allocation97_spill] sm:$0xff] }
 0x356   : > { %v5034_v5 = vmul.f32 -1.442695, %v2464_v1 }
 0x357   : > { %5298 = vpow2.f32 %v5033_v58 }
 0x358   : > { %5300 = vpow2.f32 %v5034_v5 }
 0x359   : > { %5302 = vtanh.f32 %v2466_v57 }
 0x35f   : > { %v5297_v0 = vpop.eup %5296 }
 0x360   : > { %v2507_v49 = vmul.f32 %v5297_v0, %v5289_v56  ;;  %v8805_v0 = vld [vmem:[#allocation98_spill] sm:$0xff] }
 0x361   : > { %v5299_v54 = vpop.eup %5298 }
 0x362   : > { %v5301_v25 = vpop.eup %5300  ;;  %v2489_v11 = vadd.f32 1.0, %v5299_v54  ;;  %v7090_v17 = vadd.f32 %v2507_v49, %v2505_v63  ;;  %v8806_v54 = vld [vmem:[#allocation99_spill] sm:$0xff]  ;;  %v8807_v63 = vld [vmem:[#allocation100_spill] sm:$0xff]  ;;  %v8808_v49 = vld [vmem:[#allocation101_spill] sm:$0xff] }
 0x363   : > { %v5303_v16 = vpop.eup %5302  ;;  %v2490_v36 = vadd.f32 1.0, %v5301_v25  ;;  %v8809_v25 = vld [vmem:[#allocation102_spill] sm:$0xff] }
 0x364   : > { %5304 = vrcp.f32 %v2489_v11  ;;  %v2508_v1 = vmul.f32 %v5303_v16, %v5293_v12  ;;  %v8803_v12 = vld [vmem:[#allocation96_spill] sm:$0xff]  ;;  %v8810_v11 = vld [vmem:[#allocation103_spill] sm:$0xff] }
 0x365   : > { %5306 = vtanh.f32 %v7090_v17  ;;  %v8811_v16 = vld [vmem:[#allocation104_spill] sm:$0xff] }
 0x366   : > { %5308 = vrcp.f32 %v2490_v36  ;;  %v7093_v53 = vadd.f32 %v2508_v1, %v2506_v10  ;;  %v8812_v36 = vld [vmem:[#allocation105_spill] sm:$0xff]  ;;  %v8813_v10 = vld [vmem:[#allocation106_spill] sm:$0xff]  ;;  %v8814_v1 = vld [vmem:[#allocation107_spill] sm:$0xff] }
 0x368   : > { %5310 = vtanh.f32 %v7093_v53 }
 0x36e   : > { %v5305_v55 = vpop.eup %5304 }
 0x36f   : > { %v5307_v58 = vpop.eup %5306 }
 0x370   : > { %v5309_v57 = vpop.eup %5308  ;;  %v7096_v59 = vmul.f32 %v5307_v58, %v5305_v55  ;;  %v8815_v55 = vld [vmem:[#allocation108_spill] sm:$0xff]  ;;  %v8816_v58 = vld [vmem:[#allocation109_spill] sm:$0xff] }
 0x372   : > { %8800 = vst [vmem:[#allocation170_spill] sm:$0xff] %v7096_v59  ;;  %v5311_v20 = vpop.eup %5310  ;;  %v7104_v56 = vpack.c.bf16 %v7096_v59, %v7096_v59  ;;  %v8821_v59 = vld [vmem:[#allocation114_spill] sm:$0xff] }
 0x373   : > { %v7098_v5 = vmul.f32 %v5311_v20, %v5309_v57  ;;  %v8817_v57 = vld [vmem:[#allocation110_spill] sm:$0xff]  ;;  %v8818_v20 = vld [vmem:[#allocation111_spill] sm:$0xff] }
 0x375   : > { %8801 = vst [vmem:[#allocation171_spill] sm:$0xff] %v7098_v5  ;;  %v2516_v48 = vpack.c.bf16 %v7098_v5, %v7098_v5  ;;  %v8820_v5 = vld [vmem:[#allocation113_spill] sm:$0xff] }
 0x377   : > { %2549 = vmatprep.mubr.bf16.mxu0 %v2516_v48  ;;  %2590 = vmatprep.mubr.bf16.mxu1 %v2516_v48 }
 0x378   : > { %2550 = vmatmul.mubr.bf16.vlgmr.msra.gmra.mrb[16].mxu0 %v7104_v56  ;;  %2591 = vmatmul.mubr.bf16.vlgmr.msra.gmra.mrb[16].mxu1 %v7104_v56 }
 0x379   : > { %2600 = vmatpush1.bf16.msra.mxu0 %v8802_v61  ;;  %2641 = vmatpush1.bf16.msra.mxu1 %v8803_v12 }
 0x37a   : > { %2631 = vmatprep.mubr.bf16.mxu0 %v2516_v48  ;;  %2672 = vmatprep.mubr.bf16.mxu1 %v2516_v48  ;;  %v8819_v48 = vld [vmem:[#allocation112_spill] sm:$0xff] }
 0x37b   : > { %2601 = vmatprep.subr.bf16.mxu0 %v8804_v34  ;;  %2642 = vmatprep.subr.bf16.mxu1 %v8805_v0 }
 0x37d   : > { %2602 = vmatpush1.bf16.msra.mxu0 %v8806_v54  ;;  %2643 = vmatpush1.bf16.msra.mxu1 %v8807_v63 }
 0x37e   : > { %2603 = vmatprep.subr.bf16.mxu0 %v8808_v49  ;;  %2644 = vmatprep.subr.bf16.mxu1 %v8809_v25 }
 0x381   : > { %2604 = vmatpush1.bf16.msra.mxu0 %v8810_v11  ;;  %2645 = vmatpush1.bf16.msra.mxu1 %v8811_v16 }
 0x382   : > { %2605 = vmatprep.subr.bf16.mxu0 %v8812_v36  ;;  %2646 = vmatprep.subr.bf16.mxu1 %v8813_v10 }
 0x385   : > { %2606 = vmatpush1.bf16.msra.mxu0 %v8814_v1  ;;  %2647 = vmatpush1.bf16.msra.mxu1 %v8815_v55  ;;  %v8825_v1 = vld [vmem:[#allocation118_spill] sm:$0xff]  ;;  %v8826_v55 = vld [vmem:[#allocation119_spill] sm:$0xff] }
 0x386   : > { %2607 = vmatprep.subr.bf16.mxu0 %v8816_v58  ;;  %2648 = vmatprep.subr.bf16.mxu1 %v8817_v57  ;;  %v8827_v58 = vld [vmem:[#allocation120_spill] sm:$0xff]  ;;  %v8828_v57 = vld [vmem:[#allocation121_spill] sm:$0xff] }
 0x389   : > { %2608 = vmatpush1.bf16.msra.mxu0 %v8818_v20  ;;  %2649 = vmatpush1.bf16.msra.mxu1 %v8819_v48  ;;  %v8829_v20 = vld [vmem:[#allocation122_spill] sm:$0xff]  ;;  %v8830_v48 = vld [vmem:[#allocation123_spill] sm:$0xff] }
 0x38a   : > { %2609 = vmatprep.subr.bf16.mxu0 %v8820_v5  ;;  %2650 = vmatprep.subr.bf16.mxu1 %v8821_v59  ;;  %v8831_v5 = vld [vmem:[#allocation124_spill] sm:$0xff]  ;;  %v8832_v59 = vld [vmem:[#allocation125_spill] sm:$0xff] }
 0x38d   : > { %2610 = vmatpush1.bf16.msra.mxu0 %v8822_v62  ;;  %2651 = vmatpush1.bf16.msra.mxu1 %v8823_v37  ;;  %v8833_v62 = vld [vmem:[#allocation126_spill] sm:$0xff]  ;;  %v8834_v37 = vld [vmem:[#allocation127_spill] sm:$0xff] }
 0x38e   : > { %2611 = vmatprep.subr.bf16.mxu0 %v8824_v44  ;;  %2652 = vmatprep.subr.bf16.mxu1 %v8825_v1  ;;  %v8835_v44 = vld [vmem:[#allocation128_spill] sm:$0xff]  ;;  %v8836_v1 = vld [vmem:[#allocation129_spill] sm:$0xff] }
 0x391   : > { %2612 = vmatpush1.bf16.msra.mxu0 %v8826_v55  ;;  %2653 = vmatpush1.bf16.msra.mxu1 %v8827_v58  ;;  %v8837_v55 = vld [vmem:[#allocation130_spill] sm:$0xff]  ;;  %v8838_v58 = vld [vmem:[#allocation131_spill] sm:$0xff] }
 0x392   : > { %2613 = vmatprep.subr.bf16.mxu0 %v8828_v57  ;;  %2654 = vmatprep.subr.bf16.mxu1 %v8829_v20  ;;  %v8839_v57 = vld [vmem:[#allocation132_spill] sm:$0xff]  ;;  %v8840_v20 = vld [vmem:[#allocation133_spill] sm:$0xff] }
 0x395   : > { %2614 = vmatpush1.bf16.msra.mxu0 %v8830_v48  ;;  %2655 = vmatpush1.bf16.msra.mxu1 %v8831_v5  ;;  %v8841_v48 = vld [vmem:[#allocation134_spill] sm:$0xff]  ;;  %v8842_v5 = vld [vmem:[#allocation135_spill] sm:$0xff] }
 0x396   : > { %2615 = vmatprep.subr.bf16.mxu0 %v8832_v59  ;;  %2656 = vmatprep.subr.bf16.mxu1 %v8833_v62  ;;  %v8843_v59 = vld [vmem:[#allocation136_spill] sm:$0xff]  ;;  %v8844_v62 = vld [vmem:[#allocation137_spill] sm:$0xff] }
 0x399   : > { %2616 = vmatpush1.bf16.msra.mxu0 %v8834_v37  ;;  %2657 = vmatpush1.bf16.msra.mxu1 %v8835_v44  ;;  %v8845_v37 = vld [vmem:[#allocation138_spill] sm:$0xff]  ;;  %v8846_v44 = vld [vmem:[#allocation139_spill] sm:$0xff] }
 0x39a   : > { %2617 = vmatprep.subr.bf16.mxu0 %v8836_v1  ;;  %2658 = vmatprep.subr.bf16.mxu1 %v8837_v55  ;;  %v8847_v1 = vld [vmem:[#allocation140_spill] sm:$0xff]  ;;  %v8848_v55 = vld [vmem:[#allocation141_spill] sm:$0xff] }
 0x39d   : > { %2618 = vmatpush1.bf16.msra.mxu0 %v8838_v58  ;;  %2659 = vmatpush1.bf16.msra.mxu1 %v8839_v57  ;;  %v8849_v58 = vld [vmem:[#allocation142_spill] sm:$0xff] }
 0x39e   : > { %2619 = vmatprep.subr.bf16.mxu0 %v8840_v20  ;;  %2660 = vmatprep.subr.bf16.mxu1 %v8841_v48 }
 0x3a1   : > { %2620 = vmatpush1.bf16.msra.mxu0 %v8842_v5  ;;  %2661 = vmatpush1.bf16.msra.mxu1 %v8843_v59  ;;  %v8850_v5 = vld [vmem:[#allocation146_spill] sm:$0xff] }
 0x3a2   : > { %2621 = vmatprep.subr.bf16.mxu0 %v8844_v62  ;;  %2662 = vmatprep.subr.bf16.mxu1 %v8845_v37 }
 0x3a5   : > { %2622 = vmatpush1.bf16.msra.mxu0 %v8846_v44  ;;  %2663 = vmatpush1.bf16.msra.mxu1 %v8847_v1 }
 0x3a6   : > { %2623 = vmatprep.subr.bf16.mxu0 %v8848_v55  ;;  %2664 = vmatprep.subr.bf16.mxu1 %v8849_v58 }
 0x3a9   : > { %2624 = vmatpush1.bf16.msra.mxu0 %v6874_v52  ;;  %2665 = vmatpush1.bf16.msra.mxu1 %v6878_v60 }
 0x3aa   : > { %2625 = vmatprep.subr.bf16.mxu0 %v6880_v51  ;;  %2666 = vmatprep.subr.bf16.mxu1 %v8850_v5 }
 0x3ad   : > { %2626 = vmatpush1.bf16.msra.mxu0 %v6890_v29  ;;  %2667 = vmatpush1.bf16.msra.mxu1 %v6894_v21 }
 0x3ae   : > { %2627 = vmatprep.subr.bf16.mxu0 %v6896_v13  ;;  %2668 = vmatprep.subr.bf16.mxu1 %v6899_v18 }
 0x3b1   : > { %2628 = vmatpush1.bf16.msra.mxu0 %v6906_v35  ;;  %2669 = vmatpush1.bf16.msra.mxu1 %v6910_v3 }
 0x3b2   : > { %2629 = vmatprep.subr.bf16.mxu0 %v6912_v19  ;;  %2670 = vmatprep.subr.bf16.mxu1 %v6915_v43 }
 0x3b5   : > { %2630 = vmatpush1.bf16.msra.mxu0 %v6918_v45  ;;  %2671 = vmatpush1.bf16.msra.mxu1 %v6922_v2 }
 0x3b6   : > { %2775 = vmatprep.subr.bf16.mxu0 %v6411_v23  ;;  %2816 = vmatprep.subr.bf16.mxu1 %v6413_v24 }
 0x3b8   : > { %2632 = vmatmul.mubr.bf16.vlgmr.msra.gmra.mrb[20].mxu0 %v7104_v56  ;;  %2673 = vmatmul.mubr.bf16.vlgmr.msra.gmra.mrb[20].mxu1 %v7104_v56  ;;  %v8851_v56 = vld [vmem:[#allocation41_spill] sm:$0xff] }
 0x3b9   : > { %2776 = vmatpush1.bf16.msra.mxu0 %v6419_v30  ;;  %2817 = vmatpush1.bf16.msra.mxu1 %v6422_v31  ;;  %v8852_v30 = vld [vmem:[#allocation42_spill] sm:$0xff]  ;;  %v8853_v31 = vld [vmem:[#allocation43_spill] sm:$0xff] }
 0x3ba   : > { %2777 = vmatprep.subr.bf16.mxu0 %v6424_v32  ;;  %2818 = vmatprep.subr.bf16.mxu1 %v6427_v33  ;;  %v8854_v32 = vld [vmem:[#allocation44_spill] sm:$0xff]  ;;  %v8855_v33 = vld [vmem:[#allocation45_spill] sm:$0xff] }
 0x3bd   : > { %2778 = vmatpush1.bf16.msra.mxu0 %v6436_v38  ;;  %2819 = vmatpush1.bf16.msra.mxu1 %v6440_v39  ;;  %v8856_v38 = vld [vmem:[#allocation46_spill] sm:$0xff]  ;;  %v8857_v39 = vld [vmem:[#allocation47_spill] sm:$0xff] }
 0x3be   : > { %2779 = vmatprep.subr.bf16.mxu0 %v6442_v40  ;;  %2820 = vmatprep.subr.bf16.mxu1 %v6445_v41  ;;  %v8858_v40 = vld [vmem:[#allocation48_spill] sm:$0xff]  ;;  %v8859_v41 = vld [vmem:[#allocation49_spill] sm:$0xff] }
 0x3c1   : > { %2780 = vmatpush1.bf16.msra.mxu0 %v6454_v46  ;;  %2821 = vmatpush1.bf16.msra.mxu1 %v6458_v47  ;;  %v8860_v46 = vld [vmem:[#allocation50_spill] sm:$0xff] }
 0x3c2   : > { %2781 = vmatprep.subr.bf16.mxu0 %v8851_v56  ;;  %2822 = vmatprep.subr.bf16.mxu1 %v8852_v30 }
 0x3c5   : > { %2782 = vmatpush1.bf16.msra.mxu0 %v8853_v31  ;;  %2823 = vmatpush1.bf16.msra.mxu1 %v8854_v32 }
 0x3c6   : > { %2783 = vmatprep.subr.bf16.mxu0 %v8855_v33  ;;  %2824 = vmatprep.subr.bf16.mxu1 %v8856_v38  ;;  %v8861_v33 = vld [vmem:[#allocation56_spill] sm:$0xff]  ;;  %v8862_v38 = vld [vmem:[#allocation57_spill] sm:$0xff] }
 0x3c9   : > { %2784 = vmatpush1.bf16.msra.mxu0 %v8857_v39  ;;  %2825 = vmatpush1.bf16.msra.mxu1 %v8858_v40  ;;  %v8863_v39 = vld [vmem:[#allocation58_spill] sm:$0xff]  ;;  %v8864_v40 = vld [vmem:[#allocation59_spill] sm:$0xff] }
 0x3ca   : > { %2785 = vmatprep.subr.bf16.mxu0 %v8859_v41  ;;  %2826 = vmatprep.subr.bf16.mxu1 %v8860_v46  ;;  %v8865_v41 = vld [vmem:[#allocation60_spill] sm:$0xff]  ;;  %v8866_v46 = vld [vmem:[#allocation61_spill] sm:$0xff] }
 0x3cd   : > { %2786 = vmatpush1.bf16.msra.mxu0 %v6502_v6  ;;  %2827 = vmatpush1.bf16.msra.mxu1 %v6506_v7  ;;  %v8867_v6 = vld [vmem:[#allocation62_spill] sm:$0xff]  ;;  %v8868_v7 = vld [vmem:[#allocation63_spill] sm:$0xff] }
 0x3ce   : > { %2787 = vmatprep.subr.bf16.mxu0 %v6508_v8  ;;  %2828 = vmatprep.subr.bf16.mxu1 %v6511_v9  ;;  %v8869_v8 = vld [vmem:[#allocation64_spill] sm:$0xff]  ;;  %v8870_v9 = vld [vmem:[#allocation65_spill] sm:$0xff] }
 0x3d1   : > { %2788 = vmatpush1.bf16.msra.mxu0 %v6518_v14  ;;  %2829 = vmatpush1.bf16.msra.mxu1 %v8861_v33  ;;  %v8871_v14 = vld [vmem:[#allocation66_spill] sm:$0xff]  ;;  %v8872_v33 = vld [vmem:[#allocation67_spill] sm:$0xff] }
 0x3d2   : > { %2789 = vmatprep.subr.bf16.mxu0 %v8862_v38  ;;  %2830 = vmatprep.subr.bf16.mxu1 %v8863_v39  ;;  %v8873_v38 = vld [vmem:[#allocation68_spill] sm:$0xff]  ;;  %v8874_v39 = vld [vmem:[#allocation69_spill] sm:$0xff] }
 0x3d5   : > { %2790 = vmatpush1.bf16.msra.mxu0 %v8864_v40  ;;  %2831 = vmatpush1.bf16.msra.mxu1 %v8865_v41  ;;  %v8875_v40 = vld [vmem:[#allocation70_spill] sm:$0xff]  ;;  %v8876_v41 = vld [vmem:[#allocation71_spill] sm:$0xff] }
 0x3d6   : > { %2791 = vmatprep.subr.bf16.mxu0 %v8866_v46  ;;  %2832 = vmatprep.subr.bf16.mxu1 %v8867_v6  ;;  %v8877_v46 = vld [vmem:[#allocation72_spill] sm:$0xff]  ;;  %v8878_v6 = vld [vmem:[#allocation73_spill] sm:$0xff] }
 0x3d9   : > { %2792 = vmatpush1.bf16.msra.mxu0 %v8868_v7  ;;  %2833 = vmatpush1.bf16.msra.mxu1 %v8869_v8  ;;  %v8879_v7 = vld [vmem:[#allocation74_spill] sm:$0xff]  ;;  %v8880_v8 = vld [vmem:[#allocation75_spill] sm:$0xff] }
 0x3da   : > { %2793 = vmatprep.subr.bf16.mxu0 %v8870_v9  ;;  %2834 = vmatprep.subr.bf16.mxu1 %v8871_v14  ;;  %v8881_v9 = vld [vmem:[#allocation76_spill] sm:$0xff]  ;;  %v8882_v14 = vld [vmem:[#allocation77_spill] sm:$0xff] }
 0x3dd   : > { %2794 = vmatpush1.bf16.msra.mxu0 %v8872_v33  ;;  %2835 = vmatpush1.bf16.msra.mxu1 %v8873_v38  ;;  %v8883_v33 = vld [vmem:[#allocation78_spill] sm:$0xff]  ;;  %v8884_v38 = vld [vmem:[#allocation79_spill] sm:$0xff] }
 0x3de   : > { %2795 = vmatprep.subr.bf16.mxu0 %v8874_v39  ;;  %2836 = vmatprep.subr.bf16.mxu1 %v8875_v40  ;;  %v8885_v39 = vld [vmem:[#allocation80_spill] sm:$0xff]  ;;  %v8886_v40 = vld [vmem:[#allocation81_spill] sm:$0xff] }
 0x3e1   : > { %2796 = vmatpush1.bf16.msra.mxu0 %v8876_v41  ;;  %2837 = vmatpush1.bf16.msra.mxu1 %v8877_v46  ;;  %v8887_v41 = vld [vmem:[#allocation82_spill] sm:$0xff]  ;;  %v8888_v46 = vld [vmem:[#allocation83_spill] sm:$0xff] }
 0x3e2   : > { %2797 = vmatprep.subr.bf16.mxu0 %v8878_v6  ;;  %2838 = vmatprep.subr.bf16.mxu1 %v8879_v7  ;;  %v8889_v6 = vld [vmem:[#allocation84_spill] sm:$0xff]  ;;  %v8890_v7 = vld [vmem:[#allocation85_spill] sm:$0xff] }
 0x3e5   : > { %2798 = vmatpush1.bf16.msra.mxu0 %v8880_v8  ;;  %2839 = vmatpush1.bf16.msra.mxu1 %v8881_v9  ;;  %v8891_v8 = vld [vmem:[#allocation86_spill] sm:$0xff]  ;;  %v8892_v9 = vld [vmem:[#allocation87_spill] sm:$0xff] }
 0x3e6   : > { %2799 = vmatprep.subr.bf16.mxu0 %v8882_v14  ;;  %2840 = vmatprep.subr.bf16.mxu1 %v8883_v33  ;;  %v8893_v14 = vld [vmem:[#allocation88_spill] sm:$0xff]  ;;  %v8894_v33 = vld [vmem:[#allocation89_spill] sm:$0xff] }
 0x3e9   : > { %2800 = vmatpush1.bf16.msra.mxu0 %v8884_v38  ;;  %2841 = vmatpush1.bf16.msra.mxu1 %v8885_v39  ;;  %v8895_v38 = vld [vmem:[#allocation90_spill] sm:$0xff]  ;;  %v8896_v39 = vld [vmem:[#allocation91_spill] sm:$0xff] }
 0x3ea   : > { %2801 = vmatprep.subr.bf16.mxu0 %v8886_v40  ;;  %2842 = vmatprep.subr.bf16.mxu1 %v8887_v41  ;;  %v8897_v40 = vld [vmem:[#allocation92_spill] sm:$0xff]  ;;  %v8898_v41 = vld [vmem:[#allocation93_spill] sm:$0xff] }
 0x3ed   : > { %2802 = vmatpush1.bf16.msra.mxu0 %v8888_v46  ;;  %2843 = vmatpush1.bf16.msra.mxu1 %v8889_v6  ;;  %v8899_v46 = vld [vmem:[#allocation94_spill] sm:$0xff] }
 0x3ee   : > { %2803 = vmatprep.subr.bf16.mxu0 %v8890_v7  ;;  %2844 = vmatprep.subr.bf16.mxu1 %v8891_v8 }
 0x3f1   : > { %2804 = vmatpush1.bf16.msra.mxu0 %v8892_v9  ;;  %2845 = vmatpush1.bf16.msra.mxu1 %v8893_v14 }
 0x3f2   : > { %2805 = vmatprep.subr.bf16.mxu0 %v8894_v33  ;;  %2846 = vmatprep.subr.bf16.mxu1 %v8895_v38 }
 0x3f5   : > { %2806 = vmatpush1.bf16.msra.mxu0 %v8896_v39  ;;  %2847 = vmatpush1.bf16.msra.mxu1 %v8897_v40 }
 0x3f6   : > { %2857 = vmatprep.subr.bf16.mxu0 %v8898_v41  ;;  %2898 = vmatprep.subr.bf16.mxu1 %v8899_v46 }
 0x44b   : > { %v2551_v6 = vpop.f32.mrb[16].mxu0  ;;  %v2592_v7 = vpop.f32.mrb[16].mxu1 }
 0x44c   : > { %v2691_v32 = vrot.slane %v2592_v7, 6  ;;  %v2553_v8 = vpop.f32.mrb[17].mxu0  ;;  %v2594_v31 = vpop.f32.mrb[17].mxu1 }
 0x44d   : > { %v2692_v9 = vrot.slane %v2594_v31, 6  ;;  %v2555_v30 = vpop.f32.mrb[18].mxu0  ;;  %v2596_v14 = vpop.f32.mrb[18].mxu1  ;;  %v2753_v31 = vrot.slane %v7090_v17, 6 }
 0x44e   : > { %v2707_v33 = vadd.f32 %v2691_v32, %v7064_v27  ;;  %v2556_v56 = vpop.f32.mrb[19].mxu0  ;;  %v2597_v38 = vpop.f32.mrb[19].mxu1  ;;  %v2754_v14 = vrot.slane %v7093_v53, 6  ;;  %v2689_v27 = vrot.slane %v2551_v6, 6 }
 0x44f   : > { %v2708_v39 = vadd.f32 %v2692_v9, %v7073_v50  ;;  %v2690_v9 = vrot.slane %v2553_v8, 6 }
 0x450   : > { %v5037_v47 = vmul.f32 -1.442695, %v2707_v33  ;;  %v2705_v33 = vadd.f32 %v2689_v27, %v7060_v4 }
 0x451   : > { %v5038_v40 = vmul.f32 -1.442695, %v2708_v39  ;;  %v2706_v39 = vadd.f32 %v2690_v9, %v7068_v42 }
 0x452   : > { %5312 = vpow2.f32 %v5037_v47 }
 0x453   : > { %5314 = vpow2.f32 %v5038_v40  ;;  %v5035_v40 = vmul.f32 -1.442695, %v2705_v33 }
 0x45c   : > { %v5313_v41 = vpop.eup %5312 }
 0x45d   : > { %v2733_v46 = vadd.f32 1.0, %v5313_v41  ;;  %v5315_v24 = vpop.eup %5314  ;;  %v5036_v41 = vmul.f32 -1.442695, %v2706_v39 }
 0x45e   : > { %v2734_v7 = vadd.f32 1.0, %v5315_v24 }
 0x45f   : > { %5316 = vrcp.f32 %v2733_v46 }
 0x460   : > { %5318 = vrcp.f32 %v2734_v7 }
 0x461   : > { %5320 = vpow2.f32 %v5035_v40 }
 0x462   : > { %5322 = vpow2.f32 %v5036_v41 }
 0x469   : > { %v5317_v30 = vpop.eup %5316 }
 0x46a   : > { %v2757_v32 = vmul.f32 %v5317_v30, %v2753_v31  ;;  %v5319_v56 = vpop.eup %5318 }
 0x46b   : > { %v2758_v38 = vmul.f32 %v5319_v56, %v2754_v14  ;;  %v5321_v24 = vpop.eup %5320 }
 0x46c   : > { %v5323_v46 = vpop.eup %5322  ;;  %v2731_v47 = vadd.f32 1.0, %v5321_v24 }
 0x46d   : > { %v2732_v17 = vadd.f32 1.0, %v5323_v46 }
 0x46e   : > { %5324 = vrcp.f32 %v2731_v47 }
 0x46f   : > { %5326 = vrcp.f32 %v2732_v17 }
 0x48b   : > { %v2633_v7 = vpop.f32.mrb[20].mxu0  ;;  %v2674_v50 = vpop.f32.mrb[20].mxu1 }
 0x48c   : > { %v2693_v53 = vrot.slane %v2633_v7, 6  ;;  %v2695_v31 = vrot.slane %v2674_v50, 6  ;;  %v2635_v30 = vpop.f32.mrb[21].mxu0  ;;  %v2676_v14 = vpop.f32.mrb[21].mxu1 }
 0x48d   : > { %v2694_v6 = vrot.slane %v2635_v30, 6  ;;  %v2696_v8 = vrot.slane %v2676_v14, 6  ;;  %v2637_v56 = vpop.f32.mrb[22].mxu0  ;;  %v2678_v27 = vpop.f32.mrb[22].mxu1 }
 0x48e   : > { %v2709_v9 = vadd.f32 %v2693_v53, %v7078_v26  ;;  %v2711_v33 = vadd.f32 %v2695_v31, %v7080_v28  ;;  %v2638_v39 = vpop.f32.mrb[23].mxu0  ;;  %v2679_v40 = vpop.f32.mrb[23].mxu1 }
 0x48f   : > { %v2710_v41 = vadd.f32 %v2694_v6, %v7082_v22  ;;  %v2712_v24 = vadd.f32 %v2696_v8, %v7084_v15  ;;  %v5325_v7 = vpop.eup %5324 }
 0x490   : > { %v5039_v46 = vmul.f32 -1.442695, %v2709_v9  ;;  %5328 = vtanh.f32 %v2711_v33  ;;  %v5327_v30 = vpop.eup %5326 }
 0x491   : > { %v5040_v50 = vmul.f32 -1.442695, %v2710_v41  ;;  %5330 = vtanh.f32 %v2712_v24 }
 0x492   : > { %5332 = vpow2.f32 %v5039_v46 }
 0x493   : > { %5334 = vpow2.f32 %v5040_v50 }
 0x49a   : > { %v5329_v47 = vpop.eup %5328 }
 0x49b   : > { %v5331_v14 = vpop.eup %5330  ;;  %v2759_v53 = vmul.f32 %v5329_v47, %v5325_v7  ;;  %v8903_v47 = vld [vmem:[#allocation108_spill] sm:$0xff] }
 0x49c   : > { %v5333_v56 = vpop.eup %5332  ;;  %v2760_v31 = vmul.f32 %v5331_v14, %v5327_v30  ;;  %v8902_v30 = vld [vmem:[#allocation107_spill] sm:$0xff]  ;;  %v8904_v14 = vld [vmem:[#allocation109_spill] sm:$0xff] }
 0x49d   : > { %v5335_v27 = vpop.eup %5334  ;;  %v2735_v39 = vadd.f32 1.0, %v5333_v56  ;;  %v7248_v17 = vadd.f32 %v2759_v53, %v2757_v32  ;;  %v8905_v53 = vld [vmem:[#allocation110_spill] sm:$0xff]  ;;  %v8906_v56 = vld [vmem:[#allocation111_spill] sm:$0xff] }
 0x49e   : > { %v2736_v6 = vadd.f32 1.0, %v5335_v27  ;;  %v7250_v40 = vadd.f32 %v2760_v31, %v2758_v38  ;;  %v8907_v31 = vld [vmem:[#allocation112_spill] sm:$0xff]  ;;  %v8908_v27 = vld [vmem:[#allocation113_spill] sm:$0xff] }
 0x49f   : > { %5336 = vrcp.f32 %v2735_v39  ;;  %v8909_v39 = vld [vmem:[#allocation114_spill] sm:$0xff] }
 0x4a0   : > { %5338 = vtanh.f32 %v7248_v17 }
 0x4a1   : > { %5340 = vrcp.f32 %v2736_v6  ;;  %v8910_v6 = vld [vmem:[#allocation115_spill] sm:$0xff] }
 0x4a2   : > { %5342 = vtanh.f32 %v7250_v40 }
 0x4a9   : > { %v5337_v8 = vpop.eup %5336 }
 0x4aa   : > { %v5339_v9 = vpop.eup %5338 }
 0x4ab   : > { %v5341_v33 = vpop.eup %5340  ;;  %v7254_v41 = vmul.f32 %v5339_v9, %v5337_v8  ;;  %v8911_v8 = vld [vmem:[#allocation116_spill] sm:$0xff]  ;;  %v8912_v9 = vld [vmem:[#allocation117_spill] sm:$0xff] }
 0x4ac   : > { %v5343_v24 = vpop.eup %5342 }
 0x4ad   : > { %8900 = vst [vmem:[#allocation95_spill] sm:$0xff] %v7254_v41  ;;  %v7256_v46 = vmul.f32 %v5343_v24, %v5341_v33  ;;  %v2767_v32 = vpack.c.bf16 %v7254_v41, %v7254_v41  ;;  %v8913_v33 = vld [vmem:[#allocation118_spill] sm:$0xff]  ;;  %v8914_v24 = vld [vmem:[#allocation119_spill] sm:$0xff]  ;;  %v8919_v41 = vld [vmem:[#allocation124_spill] sm:$0xff] }
 0x4af   : > { %8901 = vst [vmem:[#allocation96_spill] sm:$0xff] %v7256_v46  ;;  %v2768_v38 = vpack.c.bf16 %v7256_v46, %v7256_v46  ;;  %v7262_v7 = vrot.slane %v2767_v32, 1  ;;  %v8915_v32 = vld [vmem:[#allocation120_spill] sm:$0xff]  ;;  %v8918_v46 = vld [vmem:[#allocation123_spill] sm:$0xff] }
 0x4b1   : > { %v2772_v50 = vrot.slane %v2768_v38, 1  ;;  %v8916_v38 = vld [vmem:[#allocation121_spill] sm:$0xff] }
 0x4b3   : > { %2807 = vmatprep.mubr.bf16.mxu0 %v2772_v50  ;;  %2848 = vmatprep.mubr.bf16.mxu1 %v2772_v50 }
 0x4b4   : > { %2808 = vmatmul.mubr.bf16.vlgmr.msra.gmra.mrb[24].mxu0 %v7262_v7  ;;  %2849 = vmatmul.mubr.bf16.vlgmr.msra.gmra.mrb[24].mxu1 %v7262_v7 }
 0x4b5   : > { %2858 = vmatpush1.bf16.msra.mxu0 %v8802_v61  ;;  %2899 = vmatpush1.bf16.msra.mxu1 %v8803_v12 }
 0x4b6   : > { %2889 = vmatprep.mubr.bf16.mxu0 %v2772_v50  ;;  %2930 = vmatprep.mubr.bf16.mxu1 %v2772_v50  ;;  %v8917_v50 = vld [vmem:[#allocation122_spill] sm:$0xff] }
 0x4b7   : > { %2859 = vmatprep.subr.bf16.mxu0 %v8804_v34  ;;  %2900 = vmatprep.subr.bf16.mxu1 %v8805_v0 }
 0x4b9   : > { %2860 = vmatpush1.bf16.msra.mxu0 %v8806_v54  ;;  %2901 = vmatpush1.bf16.msra.mxu1 %v8807_v63 }
 0x4ba   : > { %2861 = vmatprep.subr.bf16.mxu0 %v8808_v49  ;;  %2902 = vmatprep.subr.bf16.mxu1 %v8809_v25 }
 0x4bd   : > { %2862 = vmatpush1.bf16.msra.mxu0 %v8810_v11  ;;  %2903 = vmatpush1.bf16.msra.mxu1 %v8811_v16 }
 0x4be   : > { %2863 = vmatprep.subr.bf16.mxu0 %v8812_v36  ;;  %2904 = vmatprep.subr.bf16.mxu1 %v8813_v10 }
 0x4c1   : > { %2864 = vmatpush1.bf16.msra.mxu0 %v8902_v30  ;;  %2905 = vmatpush1.bf16.msra.mxu1 %v8903_v47 }
 0x4c2   : > { %2865 = vmatprep.subr.bf16.mxu0 %v8904_v14  ;;  %2906 = vmatprep.subr.bf16.mxu1 %v8905_v53 }
 0x4c5   : > { %2866 = vmatpush1.bf16.msra.mxu0 %v8906_v56  ;;  %2907 = vmatpush1.bf16.msra.mxu1 %v8907_v31 }
 0x4c6   : > { %2867 = vmatprep.subr.bf16.mxu0 %v8908_v27  ;;  %2908 = vmatprep.subr.bf16.mxu1 %v8909_v39  ;;  %v8920_v39 = vld [vmem:[#allocation125_spill] sm:$0xff] }
 0x4c9   : > { %2868 = vmatpush1.bf16.msra.mxu0 %v8910_v6  ;;  %2909 = vmatpush1.bf16.msra.mxu1 %v8911_v8  ;;  %v8921_v6 = vld [vmem:[#allocation126_spill] sm:$0xff]  ;;  %v8922_v8 = vld [vmem:[#allocation127_spill] sm:$0xff] }
 0x4ca   : > { %2869 = vmatprep.subr.bf16.mxu0 %v8912_v9  ;;  %2910 = vmatprep.subr.bf16.mxu1 %v8913_v33  ;;  %v8923_v9 = vld [vmem:[#allocation128_spill] sm:$0xff]  ;;  %v8924_v33 = vld [vmem:[#allocation129_spill] sm:$0xff] }
 0x4cd   : > { %2870 = vmatpush1.bf16.msra.mxu0 %v8914_v24  ;;  %2911 = vmatpush1.bf16.msra.mxu1 %v8915_v32  ;;  %v8925_v24 = vld [vmem:[#allocation130_spill] sm:$0xff]  ;;  %v8926_v32 = vld [vmem:[#allocation131_spill] sm:$0xff] }
 0x4ce   : > { %2871 = vmatprep.subr.bf16.mxu0 %v8916_v38  ;;  %2912 = vmatprep.subr.bf16.mxu1 %v8917_v50 }
 0x4d1   : > { %2872 = vmatpush1.bf16.msra.mxu0 %v8918_v46  ;;  %2913 = vmatpush1.bf16.msra.mxu1 %v8919_v41  ;;  %v8927_v41 = vld [vmem:[#allocation135_spill] sm:$0xff] }
 0x4d2   : > { %2873 = vmatprep.subr.bf16.mxu0 %v8920_v39  ;;  %2914 = vmatprep.subr.bf16.mxu1 %v8921_v6 }
 0x4d5   : > { %2874 = vmatpush1.bf16.msra.mxu0 %v8922_v8  ;;  %2915 = vmatpush1.bf16.msra.mxu1 %v8923_v9 }
 0x4d6   : > { %2875 = vmatprep.subr.bf16.mxu0 %v8924_v33  ;;  %2916 = vmatprep.subr.bf16.mxu1 %v8925_v24 }
 0x4d9   : > { %2876 = vmatpush1.bf16.msra.mxu0 %v8926_v32  ;;  %2917 = vmatpush1.bf16.msra.mxu1 %v8839_v57 }
 0x4da   : > { %2877 = vmatprep.subr.bf16.mxu0 %v8840_v20  ;;  %2918 = vmatprep.subr.bf16.mxu1 %v8841_v48 }
 0x4dd   : > { %2878 = vmatpush1.bf16.msra.mxu0 %v8927_v41  ;;  %2919 = vmatpush1.bf16.msra.mxu1 %v8843_v59 }
 0x4de   : > { %2879 = vmatprep.subr.bf16.mxu0 %v8844_v62  ;;  %2920 = vmatprep.subr.bf16.mxu1 %v8845_v37 }
 0x4e1   : > { %2880 = vmatpush1.bf16.msra.mxu0 %v8846_v44  ;;  %2921 = vmatpush1.bf16.msra.mxu1 %v8847_v1 }
 0x4e2   : > { %2881 = vmatprep.subr.bf16.mxu0 %v8848_v55  ;;  %2922 = vmatprep.subr.bf16.mxu1 %v8849_v58  ;;  %v8994_v58 = vld [vmem:[#allocation169_spill] sm:$0xff] }
 0x4e5   : > { %2882 = vmatpush1.bf16.msra.mxu0 %v6874_v52  ;;  %2923 = vmatpush1.bf16.msra.mxu1 %v6878_v60  ;;  %v8993_v60 = vld [vmem:[#allocation168_spill] sm:$0xff] }
 0x4e6   : > { %2883 = vmatprep.subr.bf16.mxu0 %v6880_v51  ;;  %2924 = vmatprep.subr.bf16.mxu1 %v8850_v5 }
 0x4e9   : > { %2884 = vmatpush1.bf16.msra.mxu0 %v6890_v29  ;;  %2925 = vmatpush1.bf16.msra.mxu1 %v6894_v21  ;;  %v8928_v29 = vld [vmem:[#allocation30_spill] sm:$0xff] }
 0x4ea   : > { %2885 = vmatprep.subr.bf16.mxu0 %v6896_v13  ;;  %2926 = vmatprep.subr.bf16.mxu1 %v6899_v18  ;;  %v8929_v18 = vld [vmem:[#allocation31_spill] sm:$0xff]  ;;  %v8938_v13 = vld [vmem:[#allocation40_spill] sm:$0xff] }
 0x4ed   : > { %2886 = vmatpush1.bf16.msra.mxu0 %v6906_v35  ;;  %2927 = vmatpush1.bf16.msra.mxu1 %v6910_v3  ;;  %v8930_v35 = vld [vmem:[#allocation32_spill] sm:$0xff]  ;;  %v8931_v3 = vld [vmem:[#allocation33_spill] sm:$0xff] }
 0x4ee   : > { %2887 = vmatprep.subr.bf16.mxu0 %v6912_v19  ;;  %2928 = vmatprep.subr.bf16.mxu1 %v6915_v43  ;;  %v8932_v19 = vld [vmem:[#allocation34_spill] sm:$0xff]  ;;  %v8933_v43 = vld [vmem:[#allocation35_spill] sm:$0xff] }
 0x4f1   : > { %2888 = vmatpush1.bf16.msra.mxu0 %v6918_v45  ;;  %2929 = vmatpush1.bf16.msra.mxu1 %v6922_v2  ;;  %v8934_v45 = vld [vmem:[#allocation36_spill] sm:$0xff]  ;;  %v8935_v2 = vld [vmem:[#allocation37_spill] sm:$0xff] }
 0x4f2   : > { %3033 = vmatprep.subr.bf16.mxu0 %v6411_v23  ;;  %3074 = vmatprep.subr.bf16.mxu1 %v8928_v29  ;;  %v8936_v23 = vld [vmem:[#allocation38_spill] sm:$0xff]  ;;  %v8937_v29 = vld [vmem:[#allocation39_spill] sm:$0xff] }
 0x4f4   : > { %2890 = vmatmul.mubr.bf16.vlgmr.msra.gmra.mrb[28].mxu0 %v7262_v7  ;;  %2931 = vmatmul.mubr.bf16.vlgmr.msra.gmra.mrb[28].mxu1 %v7262_v7  ;;  %v8939_v7 = vld [vmem:[#allocation41_spill] sm:$0xff] }
 0x4f5   : > { %3034 = vmatpush1.bf16.msra.mxu0 %v8929_v18  ;;  %3075 = vmatpush1.bf16.msra.mxu1 %v8930_v35  ;;  %v8940_v18 = vld [vmem:[#allocation42_spill] sm:$0xff]  ;;  %v8941_v35 = vld [vmem:[#allocation43_spill] sm:$0xff] }
 0x4f6   : > { %3035 = vmatprep.subr.bf16.mxu0 %v8931_v3  ;;  %3076 = vmatprep.subr.bf16.mxu1 %v8932_v19  ;;  %v8942_v3 = vld [vmem:[#allocation44_spill] sm:$0xff]  ;;  %v8943_v19 = vld [vmem:[#allocation45_spill] sm:$0xff] }
 0x4f9   : > { %3036 = vmatpush1.bf16.msra.mxu0 %v8933_v43  ;;  %3077 = vmatpush1.bf16.msra.mxu1 %v8934_v45  ;;  %v8944_v43 = vld [vmem:[#allocation46_spill] sm:$0xff]  ;;  %v8945_v45 = vld [vmem:[#allocation47_spill] sm:$0xff] }
 0x4fa   : > { %3037 = vmatprep.subr.bf16.mxu0 %v8935_v2  ;;  %3078 = vmatprep.subr.bf16.mxu1 %v8936_v23  ;;  %v8946_v2 = vld [vmem:[#allocation48_spill] sm:$0xff]  ;;  %v8947_v23 = vld [vmem:[#allocation49_spill] sm:$0xff] }
 0x4fd   : > { %3038 = vmatpush1.bf16.msra.mxu0 %v8937_v29  ;;  %3079 = vmatpush1.bf16.msra.mxu1 %v8938_v13  ;;  %v8948_v29 = vld [vmem:[#allocation50_spill] sm:$0xff]  ;;  %v8949_v13 = vld [vmem:[#allocation51_spill] sm:$0xff] }
 0x4fe   : > { %3039 = vmatprep.subr.bf16.mxu0 %v8939_v7  ;;  %3080 = vmatprep.subr.bf16.mxu1 %v8940_v18  ;;  %v8950_v7 = vld [vmem:[#allocation52_spill] sm:$0xff]  ;;  %v8951_v18 = vld [vmem:[#allocation53_spill] sm:$0xff] }
 0x501   : > { %3040 = vmatpush1.bf16.msra.mxu0 %v8941_v35  ;;  %3081 = vmatpush1.bf16.msra.mxu1 %v8942_v3  ;;  %v8952_v35 = vld [vmem:[#allocation54_spill] sm:$0xff]  ;;  %v8953_v3 = vld [vmem:[#allocation55_spill] sm:$0xff] }
 0x502   : > { %3041 = vmatprep.subr.bf16.mxu0 %v8943_v19  ;;  %3082 = vmatprep.subr.bf16.mxu1 %v8944_v43  ;;  %v8954_v19 = vld [vmem:[#allocation56_spill] sm:$0xff]  ;;  %v8955_v43 = vld [vmem:[#allocation57_spill] sm:$0xff] }
 0x505   : > { %3042 = vmatpush1.bf16.msra.mxu0 %v8945_v45  ;;  %3083 = vmatpush1.bf16.msra.mxu1 %v8946_v2  ;;  %v8956_v45 = vld [vmem:[#allocation58_spill] sm:$0xff]  ;;  %v8957_v2 = vld [vmem:[#allocation59_spill] sm:$0xff] }
 0x506   : > { %3043 = vmatprep.subr.bf16.mxu0 %v8947_v23  ;;  %3084 = vmatprep.subr.bf16.mxu1 %v8948_v29  ;;  %v8958_v23 = vld [vmem:[#allocation60_spill] sm:$0xff]  ;;  %v8959_v29 = vld [vmem:[#allocation61_spill] sm:$0xff] }
 0x509   : > { %3044 = vmatpush1.bf16.msra.mxu0 %v8949_v13  ;;  %3085 = vmatpush1.bf16.msra.mxu1 %v8950_v7  ;;  %v8960_v13 = vld [vmem:[#allocation62_spill] sm:$0xff]  ;;  %v8961_v7 = vld [vmem:[#allocation63_spill] sm:$0xff] }
 0x50a   : > { %3045 = vmatprep.subr.bf16.mxu0 %v8951_v18  ;;  %3086 = vmatprep.subr.bf16.mxu1 %v8952_v35  ;;  %v8962_v18 = vld [vmem:[#allocation64_spill] sm:$0xff]  ;;  %v8963_v35 = vld [vmem:[#allocation65_spill] sm:$0xff] }
 0x50d   : > { %3046 = vmatpush1.bf16.msra.mxu0 %v8953_v3  ;;  %3087 = vmatpush1.bf16.msra.mxu1 %v8954_v19  ;;  %v8964_v3 = vld [vmem:[#allocation66_spill] sm:$0xff]  ;;  %v8965_v19 = vld [vmem:[#allocation67_spill] sm:$0xff] }
 0x50e   : > { %3047 = vmatprep.subr.bf16.mxu0 %v8955_v43  ;;  %3088 = vmatprep.subr.bf16.mxu1 %v8956_v45  ;;  %v8966_v43 = vld [vmem:[#allocation68_spill] sm:$0xff]  ;;  %v8967_v45 = vld [vmem:[#allocation69_spill] sm:$0xff] }
 0x511   : > { %3048 = vmatpush1.bf16.msra.mxu0 %v8957_v2  ;;  %3089 = vmatpush1.bf16.msra.mxu1 %v8958_v23  ;;  %v8968_v2 = vld [vmem:[#allocation70_spill] sm:$0xff]  ;;  %v8969_v23 = vld [vmem:[#allocation71_spill] sm:$0xff] }
 0x512   : > { %3049 = vmatprep.subr.bf16.mxu0 %v8959_v29  ;;  %3090 = vmatprep.subr.bf16.mxu1 %v8960_v13  ;;  %v8970_v29 = vld [vmem:[#allocation72_spill] sm:$0xff]  ;;  %v8971_v13 = vld [vmem:[#allocation73_spill] sm:$0xff] }
 0x515   : > { %3050 = vmatpush1.bf16.msra.mxu0 %v8961_v7  ;;  %3091 = vmatpush1.bf16.msra.mxu1 %v8962_v18  ;;  %v8972_v7 = vld [vmem:[#allocation74_spill] sm:$0xff]  ;;  %v8973_v18 = vld [vmem:[#allocation75_spill] sm:$0xff] }
 0x516   : > { %3051 = vmatprep.subr.bf16.mxu0 %v8963_v35  ;;  %3092 = vmatprep.subr.bf16.mxu1 %v8964_v3  ;;  %v8974_v35 = vld [vmem:[#allocation76_spill] sm:$0xff]  ;;  %v8975_v3 = vld [vmem:[#allocation77_spill] sm:$0xff] }
 0x519   : > { %3052 = vmatpush1.bf16.msra.mxu0 %v8965_v19  ;;  %3093 = vmatpush1.bf16.msra.mxu1 %v8966_v43  ;;  %v8976_v19 = vld [vmem:[#allocation78_spill] sm:$0xff]  ;;  %v8977_v43 = vld [vmem:[#allocation79_spill] sm:$0xff] }
 0x51a   : > { %3053 = vmatprep.subr.bf16.mxu0 %v8967_v45  ;;  %3094 = vmatprep.subr.bf16.mxu1 %v8968_v2  ;;  %v8978_v45 = vld [vmem:[#allocation80_spill] sm:$0xff]  ;;  %v8979_v2 = vld [vmem:[#allocation81_spill] sm:$0xff] }
 0x51d   : > { %3054 = vmatpush1.bf16.msra.mxu0 %v8969_v23  ;;  %3095 = vmatpush1.bf16.msra.mxu1 %v8970_v29  ;;  %v8980_v23 = vld [vmem:[#allocation82_spill] sm:$0xff]  ;;  %v8981_v29 = vld [vmem:[#allocation83_spill] sm:$0xff] }
 0x51e   : > { %3055 = vmatprep.subr.bf16.mxu0 %v8971_v13  ;;  %3096 = vmatprep.subr.bf16.mxu1 %v8972_v7  ;;  %v8982_v13 = vld [vmem:[#allocation84_spill] sm:$0xff]  ;;  %v8983_v7 = vld [vmem:[#allocation85_spill] sm:$0xff] }
 0x521   : > { %3056 = vmatpush1.bf16.msra.mxu0 %v8973_v18  ;;  %3097 = vmatpush1.bf16.msra.mxu1 %v8974_v35  ;;  %v8984_v18 = vld [vmem:[#allocation86_spill] sm:$0xff]  ;;  %v8985_v35 = vld [vmem:[#allocation87_spill] sm:$0xff] }
 0x522   : > { %3057 = vmatprep.subr.bf16.mxu0 %v8975_v3  ;;  %3098 = vmatprep.subr.bf16.mxu1 %v8976_v19  ;;  %v8986_v3 = vld [vmem:[#allocation88_spill] sm:$0xff]  ;;  %v8987_v19 = vld [vmem:[#allocation89_spill] sm:$0xff] }
 0x525   : > { %3058 = vmatpush1.bf16.msra.mxu0 %v8977_v43  ;;  %3099 = vmatpush1.bf16.msra.mxu1 %v8978_v45  ;;  %v8988_v43 = vld [vmem:[#allocation90_spill] sm:$0xff]  ;;  %v8989_v45 = vld [vmem:[#allocation91_spill] sm:$0xff] }
 0x526   : > { %3059 = vmatprep.subr.bf16.mxu0 %v8979_v2  ;;  %3100 = vmatprep.subr.bf16.mxu1 %v8980_v23  ;;  %v8990_v2 = vld [vmem:[#allocation92_spill] sm:$0xff]  ;;  %v8991_v23 = vld [vmem:[#allocation93_spill] sm:$0xff] }
 0x529   : > { %3060 = vmatpush1.bf16.msra.mxu0 %v8981_v29  ;;  %3101 = vmatpush1.bf16.msra.mxu1 %v8982_v13  ;;  %v8992_v29 = vld [vmem:[#allocation94_spill] sm:$0xff] }
 0x52a   : > { %3061 = vmatprep.subr.bf16.mxu0 %v8983_v7  ;;  %3102 = vmatprep.subr.bf16.mxu1 %v8984_v18 }
 0x52d   : > { %3062 = vmatpush1.bf16.msra.mxu0 %v8985_v35  ;;  %3103 = vmatpush1.bf16.msra.mxu1 %v8986_v3 }
 0x52e   : > { %3063 = vmatprep.subr.bf16.mxu0 %v8987_v19  ;;  %3104 = vmatprep.subr.bf16.mxu1 %v8988_v43 }
 0x531   : > { %3064 = vmatpush1.bf16.msra.mxu0 %v8989_v45  ;;  %3105 = vmatpush1.bf16.msra.mxu1 %v8990_v2 }
 0x532   : > { %3115 = vmatprep.subr.bf16.mxu0 %v8991_v23  ;;  %3156 = vmatprep.subr.bf16.mxu1 %v8992_v29 }
 0x587   : > { %v2809_v13 = vpop.f32.mrb[24].mxu0  ;;  %v2850_v7 = vpop.f32.mrb[24].mxu1 }
 0x588   : > { %v2949_v21 = vrot.slane %v2850_v7, 4  ;;  %v2811_v18 = vpop.f32.mrb[25].mxu0  ;;  %v2852_v5 = vpop.f32.mrb[25].mxu1 }
 0x589   : > { %v2950_v35 = vrot.slane %v2852_v5, 4  ;;  %v2813_v51 = vpop.f32.mrb[26].mxu0  ;;  %v2854_v3 = vpop.f32.mrb[26].mxu1  ;;  %v3011_v5 = vrot.slane %v7248_v17, 6 }
 0x58a   : > { %v2965_v19 = vadd.f32 %v2949_v21, %v8993_v60  ;;  %v2814_v52 = vpop.f32.mrb[27].mxu0  ;;  %v2855_v43 = vpop.f32.mrb[27].mxu1  ;;  %v3012_v3 = vrot.slane %v7250_v40, 6  ;;  %v2947_v60 = vrot.slane %v2809_v13, 4 }
 0x58b   : > { %v2966_v45 = vadd.f32 %v2950_v35, %v8994_v58  ;;  %v2948_v35 = vrot.slane %v2811_v18, 4 }
 0x58c   : > { %v5043_v55 = vmul.f32 -1.442695, %v2965_v19 }
 0x58d   : > { %v5044_v2 = vmul.f32 -1.442695, %v2966_v45  ;;  %v2963_v45 = vadd.f32 %v2947_v60, %v7060_v4  ;;  %v2964_v19 = vadd.f32 %v2948_v35, %v7068_v42 }
 0x58e   : > { %5344 = vpow2.f32 %v5043_v55 }
 0x58f   : > { %5346 = vpow2.f32 %v5044_v2  ;;  %v5041_v2 = vmul.f32 -1.442695, %v2963_v45 }
 0x598   : > { %v5345_v23 = vpop.eup %5344 }
 0x599   : > { %v2991_v29 = vadd.f32 1.0, %v5345_v23  ;;  %v5347_v1 = vpop.eup %5346  ;;  %v5042_v23 = vmul.f32 -1.442695, %v2964_v19 }
 0x59a   : > { %v2992_v7 = vadd.f32 1.0, %v5347_v1 }
 0x59b   : > { %5348 = vrcp.f32 %v2991_v29 }
 0x59c   : > { %5350 = vrcp.f32 %v2992_v7 }
 0x59d   : > { %5352 = vpow2.f32 %v5041_v2 }
 0x59e   : > { %5354 = vpow2.f32 %v5042_v23 }
 0x5a5   : > { %v5349_v51 = vpop.eup %5348 }
 0x5a6   : > { %v3015_v21 = vmul.f32 %v5349_v51, %v3011_v5  ;;  %v5351_v52 = vpop.eup %5350 }
 0x5a7   : > { %v3016_v43 = vmul.f32 %v5351_v52, %v3012_v3  ;;  %v5353_v29 = vpop.eup %5352 }
 0x5a8   : > { %v5355_v1 = vpop.eup %5354  ;;  %v2989_v55 = vadd.f32 1.0, %v5353_v29 }
 0x5a9   : > { %v2990_v17 = vadd.f32 1.0, %v5355_v1 }
 0x5aa   : > { %5356 = vrcp.f32 %v2989_v55 }
 0x5ab   : > { %5358 = vrcp.f32 %v2990_v17 }
 0x5c7   : > { %v2891_v7 = vpop.f32.mrb[28].mxu0  ;;  %v2932_v58 = vpop.f32.mrb[28].mxu1 }
 0x5c8   : > { %v2951_v40 = vrot.slane %v2891_v7, 4  ;;  %v2953_v5 = vrot.slane %v2932_v58, 4  ;;  %v2893_v51 = vpop.f32.mrb[29].mxu0  ;;  %v2934_v3 = vpop.f32.mrb[29].mxu1 }
 0x5c9   : > { %v2952_v13 = vrot.slane %v2893_v51, 4  ;;  %v2954_v18 = vrot.slane %v2934_v3, 4  ;;  %v2895_v52 = vpop.f32.mrb[30].mxu0  ;;  %v2936_v60 = vpop.f32.mrb[30].mxu1 }
 0x5ca   : > { %v2967_v35 = vadd.f32 %v2951_v40, %v7078_v26  ;;  %v2969_v45 = vadd.f32 %v2953_v5, %v7080_v28  ;;  %v2896_v19 = vpop.f32.mrb[31].mxu0  ;;  %v2937_v2 = vpop.f32.mrb[31].mxu1 }
 0x5cb   : > { %v2968_v23 = vadd.f32 %v2952_v13, %v7082_v22  ;;  %v2970_v29 = vadd.f32 %v2954_v18, %v7084_v15  ;;  %v5357_v7 = vpop.eup %5356 }
 0x5cc   : > { %v5045_v1 = vmul.f32 -1.442695, %v2967_v35  ;;  %5360 = vtanh.f32 %v2969_v45  ;;  %v5359_v51 = vpop.eup %5358 }
 0x5cd   : > { %v5046_v58 = vmul.f32 -1.442695, %v2968_v23  ;;  %5362 = vtanh.f32 %v2970_v29 }
 0x5ce   : > { %5364 = vpow2.f32 %v5045_v1 }
 0x5cf   : > { %5366 = vpow2.f32 %v5046_v58 }
 0x5d6   : > { %v5361_v55 = vpop.eup %5360 }
 0x5d7   : > { %v5363_v3 = vpop.eup %5362  ;;  %v3017_v40 = vmul.f32 %v5361_v55, %v5357_v7  ;;  %v8998_v55 = vld [vmem:[#allocation115_spill] sm:$0xff] }
 0x5d8   : > { %v5365_v52 = vpop.eup %5364  ;;  %v3018_v5 = vmul.f32 %v5363_v3, %v5359_v51  ;;  %v8997_v51 = vld [vmem:[#allocation114_spill] sm:$0xff]  ;;  %v8999_v3 = vld [vmem:[#allocation116_spill] sm:$0xff] }
 0x5d9   : > { %v5367_v60 = vpop.eup %5366  ;;  %v2993_v19 = vadd.f32 1.0, %v5365_v52  ;;  %v7406_v17 = vadd.f32 %v3017_v40, %v3015_v21  ;;  %v9000_v40 = vld [vmem:[#allocation117_spill] sm:$0xff]  ;;  %v9001_v52 = vld [vmem:[#allocation118_spill] sm:$0xff] }
 0x5da   : > { %v2994_v13 = vadd.f32 1.0, %v5367_v60  ;;  %v7408_v2 = vadd.f32 %v3018_v5, %v3016_v43  ;;  %v9002_v5 = vld [vmem:[#allocation119_spill] sm:$0xff]  ;;  %v9003_v60 = vld [vmem:[#allocation120_spill] sm:$0xff] }
 0x5db   : > { %5368 = vrcp.f32 %v2993_v19  ;;  %v9004_v19 = vld [vmem:[#allocation124_spill] sm:$0xff] }
 0x5dc   : > { %5370 = vtanh.f32 %v7406_v17 }
 0x5dd   : > { %5372 = vrcp.f32 %v2994_v13  ;;  %v9005_v13 = vld [vmem:[#allocation140_spill] sm:$0xff] }
 0x5de   : > { %5374 = vtanh.f32 %v7408_v2 }
 0x5e5   : > { %v5369_v18 = vpop.eup %5368 }
 0x5e6   : > { %v5371_v35 = vpop.eup %5370 }
 0x5e7   : > { %v5373_v45 = vpop.eup %5372  ;;  %v7412_v23 = vmul.f32 %v5371_v35, %v5369_v18  ;;  %v9006_v18 = vld [vmem:[#allocation141_spill] sm:$0xff]  ;;  %v9007_v35 = vld [vmem:[#allocation142_spill] sm:$0xff] }
 0x5e8   : > { %v5375_v29 = vpop.eup %5374 }
 0x5e9   : > { %8995 = vst [vmem:[#allocation97_spill] sm:$0xff] %v7412_v23  ;;  %v7414_v1 = vmul.f32 %v5375_v29, %v5373_v45  ;;  %v3025_v21 = vpack.c.bf16 %v7412_v23, %v7412_v23  ;;  %v9008_v45 = vld [vmem:[#allocation143_spill] sm:$0xff]  ;;  %v9009_v29 = vld [vmem:[#allocation144_spill] sm:$0xff]  ;;  %v9014_v23 = vld [vmem:[#allocation149_spill] sm:$0xff] }
 0x5eb   : > { %8996 = vst [vmem:[#allocation98_spill] sm:$0xff] %v7414_v1  ;;  %v3026_v43 = vpack.c.bf16 %v7414_v1, %v7414_v1  ;;  %v7420_v7 = vrot.slane %v3025_v21, 2  ;;  %v9010_v21 = vld [vmem:[#allocation145_spill] sm:$0xff]  ;;  %v9013_v1 = vld [vmem:[#allocation148_spill] sm:$0xff] }
 0x5ed   : > { %v3030_v58 = vrot.slane %v3026_v43, 2  ;;  %v9011_v43 = vld [vmem:[#allocation146_spill] sm:$0xff] }
 0x5ef   : > { %3065 = vmatprep.mubr.bf16.mxu0 %v3030_v58  ;;  %3106 = vmatprep.mubr.bf16.mxu1 %v3030_v58 }
 0x5f0   : > { %3066 = vmatmul.mubr.bf16.vlgmr.msra.gmra.mrb[32].mxu0 %v7420_v7  ;;  %3107 = vmatmul.mubr.bf16.vlgmr.msra.gmra.mrb[32].mxu1 %v7420_v7 }
 0x5f1   : > { %3116 = vmatpush1.bf16.msra.mxu0 %v8802_v61  ;;  %3157 = vmatpush1.bf16.msra.mxu1 %v8803_v12 }
 0x5f2   : > { %3147 = vmatprep.mubr.bf16.mxu0 %v3030_v58  ;;  %3188 = vmatprep.mubr.bf16.mxu1 %v3030_v58  ;;  %v9012_v58 = vld [vmem:[#allocation147_spill] sm:$0xff] }
 0x5f3   : > { %3117 = vmatprep.subr.bf16.mxu0 %v8804_v34  ;;  %3158 = vmatprep.subr.bf16.mxu1 %v8805_v0 }
 0x5f5   : > { %3118 = vmatpush1.bf16.msra.mxu0 %v8806_v54  ;;  %3159 = vmatpush1.bf16.msra.mxu1 %v8807_v63 }
 0x5f6   : > { %3119 = vmatprep.subr.bf16.mxu0 %v8808_v49  ;;  %3160 = vmatprep.subr.bf16.mxu1 %v8809_v25 }
 0x5f9   : > { %3120 = vmatpush1.bf16.msra.mxu0 %v8810_v11  ;;  %3161 = vmatpush1.bf16.msra.mxu1 %v8811_v16 }
 0x5fa   : > { %3121 = vmatprep.subr.bf16.mxu0 %v8812_v36  ;;  %3162 = vmatprep.subr.bf16.mxu1 %v8813_v10 }
 0x5fd   : > { %3122 = vmatpush1.bf16.msra.mxu0 %v8902_v30  ;;  %3163 = vmatpush1.bf16.msra.mxu1 %v8903_v47 }
 0x5fe   : > { %3123 = vmatprep.subr.bf16.mxu0 %v8904_v14  ;;  %3164 = vmatprep.subr.bf16.mxu1 %v8905_v53 }
 0x601   : > { %3124 = vmatpush1.bf16.msra.mxu0 %v8906_v56  ;;  %3165 = vmatpush1.bf16.msra.mxu1 %v8907_v31 }
 0x602   : > { %3125 = vmatprep.subr.bf16.mxu0 %v8908_v27  ;;  %3166 = vmatprep.subr.bf16.mxu1 %v8997_v51 }
 0x605   : > { %3126 = vmatpush1.bf16.msra.mxu0 %v8998_v55  ;;  %3167 = vmatpush1.bf16.msra.mxu1 %v8999_v3 }
 0x606   : > { %3127 = vmatprep.subr.bf16.mxu0 %v9000_v40  ;;  %3168 = vmatprep.subr.bf16.mxu1 %v9001_v52 }
 0x609   : > { %3128 = vmatpush1.bf16.msra.mxu0 %v9002_v5  ;;  %3169 = vmatpush1.bf16.msra.mxu1 %v9003_v60 }
 0x60a   : > { %3129 = vmatprep.subr.bf16.mxu0 %v8916_v38  ;;  %3170 = vmatprep.subr.bf16.mxu1 %v8917_v50 }
 0x60d   : > { %3130 = vmatpush1.bf16.msra.mxu0 %v8918_v46  ;;  %3171 = vmatpush1.bf16.msra.mxu1 %v9004_v19 }
 0x60e   : > { %3131 = vmatprep.subr.bf16.mxu0 %v8920_v39  ;;  %3172 = vmatprep.subr.bf16.mxu1 %v8921_v6 }
 0x611   : > { %3132 = vmatpush1.bf16.msra.mxu0 %v8922_v8  ;;  %3173 = vmatpush1.bf16.msra.mxu1 %v8923_v9 }
 0x612   : > { %3133 = vmatprep.subr.bf16.mxu0 %v8924_v33  ;;  %3174 = vmatprep.subr.bf16.mxu1 %v8925_v24 }
 0x615   : > { %3134 = vmatpush1.bf16.msra.mxu0 %v8926_v32  ;;  %3175 = vmatpush1.bf16.msra.mxu1 %v8839_v57 }
 0x616   : > { %3135 = vmatprep.subr.bf16.mxu0 %v8840_v20  ;;  %3176 = vmatprep.subr.bf16.mxu1 %v8841_v48  ;;  %v9089_v48 = vld [vmem:[#allocation169_spill] sm:$0xff] }
 0x619   : > { %3136 = vmatpush1.bf16.msra.mxu0 %v8927_v41  ;;  %3177 = vmatpush1.bf16.msra.mxu1 %v8843_v59  ;;  %v9088_v59 = vld [vmem:[#allocation168_spill] sm:$0xff] }
 0x61a   : > { %3137 = vmatprep.subr.bf16.mxu0 %v8844_v62  ;;  %3178 = vmatprep.subr.bf16.mxu1 %v8845_v37 }
 0x61d   : > { %3138 = vmatpush1.bf16.msra.mxu0 %v8846_v44  ;;  %3179 = vmatpush1.bf16.msra.mxu1 %v9005_v13  ;;  %v9015_v44 = vld [vmem:[#allocation150_spill] sm:$0xff]  ;;  %v9016_v13 = vld [vmem:[#allocation151_spill] sm:$0xff] }
 0x61e   : > { %3139 = vmatprep.subr.bf16.mxu0 %v9006_v18  ;;  %3180 = vmatprep.subr.bf16.mxu1 %v9007_v35  ;;  %v9017_v18 = vld [vmem:[#allocation152_spill] sm:$0xff]  ;;  %v9018_v35 = vld [vmem:[#allocation153_spill] sm:$0xff] }
 0x621   : > { %3140 = vmatpush1.bf16.msra.mxu0 %v9008_v45  ;;  %3181 = vmatpush1.bf16.msra.mxu1 %v9009_v29  ;;  %v9019_v45 = vld [vmem:[#allocation154_spill] sm:$0xff]  ;;  %v9020_v29 = vld [vmem:[#allocation155_spill] sm:$0xff] }
 0x622   : > { %3141 = vmatprep.subr.bf16.mxu0 %v9010_v21  ;;  %3182 = vmatprep.subr.bf16.mxu1 %v9011_v43  ;;  %v9021_v21 = vld [vmem:[#allocation156_spill] sm:$0xff]  ;;  %v9022_v43 = vld [vmem:[#allocation29_spill] sm:$0xff] }
 0x625   : > { %3142 = vmatpush1.bf16.msra.mxu0 %v9012_v58  ;;  %3183 = vmatpush1.bf16.msra.mxu1 %v9013_v1  ;;  %v9023_v58 = vld [vmem:[#allocation30_spill] sm:$0xff] }
 0x626   : > { %3143 = vmatprep.subr.bf16.mxu0 %v9014_v23  ;;  %3184 = vmatprep.subr.bf16.mxu1 %v9015_v44  ;;  %v9024_v44 = vld [vmem:[#allocation31_spill] sm:$0xff]  ;;  %v9033_v23 = vld [vmem:[#allocation40_spill] sm:$0xff] }
 0x629   : > { %3144 = vmatpush1.bf16.msra.mxu0 %v9016_v13  ;;  %3185 = vmatpush1.bf16.msra.mxu1 %v9017_v18  ;;  %v9025_v13 = vld [vmem:[#allocation32_spill] sm:$0xff]  ;;  %v9026_v18 = vld [vmem:[#allocation33_spill] sm:$0xff] }
 0x62a   : > { %3145 = vmatprep.subr.bf16.mxu0 %v9018_v35  ;;  %3186 = vmatprep.subr.bf16.mxu1 %v9019_v45  ;;  %v9027_v35 = vld [vmem:[#allocation34_spill] sm:$0xff]  ;;  %v9028_v45 = vld [vmem:[#allocation35_spill] sm:$0xff] }
 0x62d   : > { %3146 = vmatpush1.bf16.msra.mxu0 %v9020_v29  ;;  %3187 = vmatpush1.bf16.msra.mxu1 %v9021_v21  ;;  %v9029_v29 = vld [vmem:[#allocation36_spill] sm:$0xff]  ;;  %v9030_v21 = vld [vmem:[#allocation37_spill] sm:$0xff] }
 0x62e   : > { %3291 = vmatprep.subr.bf16.mxu0 %v9022_v43  ;;  %3332 = vmatprep.subr.bf16.mxu1 %v9023_v58  ;;  %v9031_v43 = vld [vmem:[#allocation38_spill] sm:$0xff]  ;;  %v9032_v58 = vld [vmem:[#allocation39_spill] sm:$0xff] }
 0x630   : > { %3148 = vmatmul.mubr.bf16.vlgmr.msra.gmra.mrb[36].mxu0 %v7420_v7  ;;  %3189 = vmatmul.mubr.bf16.vlgmr.msra.gmra.mrb[36].mxu1 %v7420_v7  ;;  %v9034_v7 = vld [vmem:[#allocation41_spill] sm:$0xff] }
 0x631   : > { %3292 = vmatpush1.bf16.msra.mxu0 %v9024_v44  ;;  %3333 = vmatpush1.bf16.msra.mxu1 %v9025_v13  ;;  %v9035_v44 = vld [vmem:[#allocation42_spill] sm:$0xff]  ;;  %v9036_v13 = vld [vmem:[#allocation43_spill] sm:$0xff] }
 0x632   : > { %3293 = vmatprep.subr.bf16.mxu0 %v9026_v18  ;;  %3334 = vmatprep.subr.bf16.mxu1 %v9027_v35  ;;  %v9037_v18 = vld [vmem:[#allocation44_spill] sm:$0xff]  ;;  %v9038_v35 = vld [vmem:[#allocation45_spill] sm:$0xff] }
 0x635   : > { %3294 = vmatpush1.bf16.msra.mxu0 %v9028_v45  ;;  %3335 = vmatpush1.bf16.msra.mxu1 %v9029_v29  ;;  %v9039_v45 = vld [vmem:[#allocation46_spill] sm:$0xff]  ;;  %v9040_v29 = vld [vmem:[#allocation47_spill] sm:$0xff] }
 0x636   : > { %3295 = vmatprep.subr.bf16.mxu0 %v9030_v21  ;;  %3336 = vmatprep.subr.bf16.mxu1 %v9031_v43  ;;  %v9041_v21 = vld [vmem:[#allocation48_spill] sm:$0xff]  ;;  %v9042_v43 = vld [vmem:[#allocation49_spill] sm:$0xff] }
 0x639   : > { %3296 = vmatpush1.bf16.msra.mxu0 %v9032_v58  ;;  %3337 = vmatpush1.bf16.msra.mxu1 %v9033_v23  ;;  %v9043_v58 = vld [vmem:[#allocation50_spill] sm:$0xff]  ;;  %v9044_v23 = vld [vmem:[#allocation51_spill] sm:$0xff] }
 0x63a   : > { %3297 = vmatprep.subr.bf16.mxu0 %v9034_v7  ;;  %3338 = vmatprep.subr.bf16.mxu1 %v9035_v44  ;;  %v9045_v7 = vld [vmem:[#allocation52_spill] sm:$0xff]  ;;  %v9046_v44 = vld [vmem:[#allocation53_spill] sm:$0xff] }
 0x63d   : > { %3298 = vmatpush1.bf16.msra.mxu0 %v9036_v13  ;;  %3339 = vmatpush1.bf16.msra.mxu1 %v9037_v18  ;;  %v9047_v13 = vld [vmem:[#allocation54_spill] sm:$0xff]  ;;  %v9048_v18 = vld [vmem:[#allocation55_spill] sm:$0xff] }
 0x63e   : > { %3299 = vmatprep.subr.bf16.mxu0 %v9038_v35  ;;  %3340 = vmatprep.subr.bf16.mxu1 %v9039_v45  ;;  %v9049_v35 = vld [vmem:[#allocation56_spill] sm:$0xff]  ;;  %v9050_v45 = vld [vmem:[#allocation57_spill] sm:$0xff] }
 0x641   : > { %3300 = vmatpush1.bf16.msra.mxu0 %v9040_v29  ;;  %3341 = vmatpush1.bf16.msra.mxu1 %v9041_v21  ;;  %v9051_v29 = vld [vmem:[#allocation58_spill] sm:$0xff]  ;;  %v9052_v21 = vld [vmem:[#allocation59_spill] sm:$0xff] }
 0x642   : > { %3301 = vmatprep.subr.bf16.mxu0 %v9042_v43  ;;  %3342 = vmatprep.subr.bf16.mxu1 %v9043_v58  ;;  %v9053_v43 = vld [vmem:[#allocation60_spill] sm:$0xff]  ;;  %v9054_v58 = vld [vmem:[#allocation61_spill] sm:$0xff] }
 0x645   : > { %3302 = vmatpush1.bf16.msra.mxu0 %v9044_v23  ;;  %3343 = vmatpush1.bf16.msra.mxu1 %v9045_v7  ;;  %v9055_v23 = vld [vmem:[#allocation62_spill] sm:$0xff]  ;;  %v9056_v7 = vld [vmem:[#allocation63_spill] sm:$0xff] }
 0x646   : > { %3303 = vmatprep.subr.bf16.mxu0 %v9046_v44  ;;  %3344 = vmatprep.subr.bf16.mxu1 %v9047_v13  ;;  %v9057_v44 = vld [vmem:[#allocation64_spill] sm:$0xff]  ;;  %v9058_v13 = vld [vmem:[#allocation65_spill] sm:$0xff] }
 0x649   : > { %3304 = vmatpush1.bf16.msra.mxu0 %v9048_v18  ;;  %3345 = vmatpush1.bf16.msra.mxu1 %v9049_v35  ;;  %v9059_v18 = vld [vmem:[#allocation66_spill] sm:$0xff]  ;;  %v9060_v35 = vld [vmem:[#allocation67_spill] sm:$0xff] }
 0x64a   : > { %3305 = vmatprep.subr.bf16.mxu0 %v9050_v45  ;;  %3346 = vmatprep.subr.bf16.mxu1 %v9051_v29  ;;  %v9061_v45 = vld [vmem:[#allocation68_spill] sm:$0xff]  ;;  %v9062_v29 = vld [vmem:[#allocation69_spill] sm:$0xff] }
 0x64d   : > { %3306 = vmatpush1.bf16.msra.mxu0 %v9052_v21  ;;  %3347 = vmatpush1.bf16.msra.mxu1 %v9053_v43  ;;  %v9063_v21 = vld [vmem:[#allocation70_spill] sm:$0xff]  ;;  %v9064_v43 = vld [vmem:[#allocation71_spill] sm:$0xff] }
 0x64e   : > { %3307 = vmatprep.subr.bf16.mxu0 %v9054_v58  ;;  %3348 = vmatprep.subr.bf16.mxu1 %v9055_v23  ;;  %v9065_v58 = vld [vmem:[#allocation72_spill] sm:$0xff]  ;;  %v9066_v23 = vld [vmem:[#allocation73_spill] sm:$0xff] }
 0x651   : > { %3308 = vmatpush1.bf16.msra.mxu0 %v9056_v7  ;;  %3349 = vmatpush1.bf16.msra.mxu1 %v9057_v44  ;;  %v9067_v7 = vld [vmem:[#allocation74_spill] sm:$0xff]  ;;  %v9068_v44 = vld [vmem:[#allocation75_spill] sm:$0xff] }
 0x652   : > { %3309 = vmatprep.subr.bf16.mxu0 %v9058_v13  ;;  %3350 = vmatprep.subr.bf16.mxu1 %v9059_v18  ;;  %v9069_v13 = vld [vmem:[#allocation76_spill] sm:$0xff]  ;;  %v9070_v18 = vld [vmem:[#allocation77_spill] sm:$0xff] }
 0x655   : > { %3310 = vmatpush1.bf16.msra.mxu0 %v9060_v35  ;;  %3351 = vmatpush1.bf16.msra.mxu1 %v9061_v45  ;;  %v9071_v35 = vld [vmem:[#allocation78_spill] sm:$0xff]  ;;  %v9072_v45 = vld [vmem:[#allocation79_spill] sm:$0xff] }
 0x656   : > { %3311 = vmatprep.subr.bf16.mxu0 %v9062_v29  ;;  %3352 = vmatprep.subr.bf16.mxu1 %v9063_v21  ;;  %v9073_v29 = vld [vmem:[#allocation80_spill] sm:$0xff]  ;;  %v9074_v21 = vld [vmem:[#allocation81_spill] sm:$0xff] }
 0x659   : > { %3312 = vmatpush1.bf16.msra.mxu0 %v9064_v43  ;;  %3353 = vmatpush1.bf16.msra.mxu1 %v9065_v58  ;;  %v9075_v43 = vld [vmem:[#allocation82_spill] sm:$0xff]  ;;  %v9076_v58 = vld [vmem:[#allocation83_spill] sm:$0xff] }
 0x65a   : > { %3313 = vmatprep.subr.bf16.mxu0 %v9066_v23  ;;  %3354 = vmatprep.subr.bf16.mxu1 %v9067_v7  ;;  %v9077_v23 = vld [vmem:[#allocation84_spill] sm:$0xff]  ;;  %v9078_v7 = vld [vmem:[#allocation85_spill] sm:$0xff] }
 0x65d   : > { %3314 = vmatpush1.bf16.msra.mxu0 %v9068_v44  ;;  %3355 = vmatpush1.bf16.msra.mxu1 %v9069_v13  ;;  %v9079_v44 = vld [vmem:[#allocation86_spill] sm:$0xff]  ;;  %v9080_v13 = vld [vmem:[#allocation87_spill] sm:$0xff] }
 0x65e   : > { %3315 = vmatprep.subr.bf16.mxu0 %v9070_v18  ;;  %3356 = vmatprep.subr.bf16.mxu1 %v9071_v35  ;;  %v9081_v18 = vld [vmem:[#allocation88_spill] sm:$0xff]  ;;  %v9082_v35 = vld [vmem:[#allocation89_spill] sm:$0xff] }
 0x661   : > { %3316 = vmatpush1.bf16.msra.mxu0 %v9072_v45  ;;  %3357 = vmatpush1.bf16.msra.mxu1 %v9073_v29  ;;  %v9083_v45 = vld [vmem:[#allocation90_spill] sm:$0xff]  ;;  %v9084_v29 = vld [vmem:[#allocation91_spill] sm:$0xff] }
 0x662   : > { %3317 = vmatprep.subr.bf16.mxu0 %v9074_v21  ;;  %3358 = vmatprep.subr.bf16.mxu1 %v9075_v43  ;;  %v9085_v21 = vld [vmem:[#allocation92_spill] sm:$0xff]  ;;  %v9086_v43 = vld [vmem:[#allocation93_spill] sm:$0xff] }
 0x665   : > { %3318 = vmatpush1.bf16.msra.mxu0 %v9076_v58  ;;  %3359 = vmatpush1.bf16.msra.mxu1 %v9077_v23  ;;  %v9087_v58 = vld [vmem:[#allocation94_spill] sm:$0xff] }
 0x666   : > { %3319 = vmatprep.subr.bf16.mxu0 %v9078_v7  ;;  %3360 = vmatprep.subr.bf16.mxu1 %v9079_v44 }
 0x669   : > { %3320 = vmatpush1.bf16.msra.mxu0 %v9080_v13  ;;  %3361 = vmatpush1.bf16.msra.mxu1 %v9081_v18 }
 0x66a   : > { %3321 = vmatprep.subr.bf16.mxu0 %v9082_v35  ;;  %3362 = vmatprep.subr.bf16.mxu1 %v9083_v45 }
 0x66d   : > { %3322 = vmatpush1.bf16.msra.mxu0 %v9084_v29  ;;  %3363 = vmatpush1.bf16.msra.mxu1 %v9085_v21 }
 0x66e   : > { %3373 = vmatprep.subr.bf16.mxu0 %v9086_v43  ;;  %3414 = vmatprep.subr.bf16.mxu1 %v9087_v58 }
 0x6c3   : > { %v3067_v23 = vpop.f32.mrb[32].mxu0  ;;  %v3108_v7 = vpop.f32.mrb[32].mxu1 }
 0x6c4   : > { %v3207_v1 = vrot.slane %v3108_v7, 2  ;;  %v3069_v44 = vpop.f32.mrb[33].mxu0  ;;  %v3110_v37 = vpop.f32.mrb[33].mxu1 }
 0x6c5   : > { %v3208_v13 = vrot.slane %v3110_v37, 2  ;;  %v3071_v62 = vpop.f32.mrb[34].mxu0  ;;  %v3112_v18 = vpop.f32.mrb[34].mxu1  ;;  %v3269_v37 = vrot.slane %v7406_v17, 6 }
 0x6c6   : > { %v3223_v35 = vadd.f32 %v3207_v1, %v9088_v59  ;;  %v3072_v41 = vpop.f32.mrb[35].mxu0  ;;  %v3113_v45 = vpop.f32.mrb[35].mxu1  ;;  %v3270_v18 = vrot.slane %v7408_v2, 6 }
 0x6c7   : > { %v3224_v29 = vadd.f32 %v3208_v13, %v9089_v48  ;;  %v3205_v45 = vrot.slane %v3067_v23, 2  ;;  %v3206_v48 = vrot.slane %v3069_v44, 2 }
 0x6c8   : > { %v5049_v20 = vmul.f32 -1.442695, %v3223_v35 }
 0x6c9   : > { %v5050_v21 = vmul.f32 -1.442695, %v3224_v29  ;;  %v3221_v13 = vadd.f32 %v3205_v45, %v7060_v4 }
 0x6ca   : > { %5376 = vpow2.f32 %v5049_v20  ;;  %v3222_v20 = vadd.f32 %v3206_v48, %v7068_v42 }
 0x6cb   : > { %5378 = vpow2.f32 %v5050_v21  ;;  %v5047_v35 = vmul.f32 -1.442695, %v3221_v13 }
 0x6cc   : > { %v5048_v29 = vmul.f32 -1.442695, %v3222_v20 }
 0x6d4   : > { %v5377_v43 = vpop.eup %5376 }
 0x6d5   : > { %v3249_v58 = vadd.f32 1.0, %v5377_v43  ;;  %v5379_v57 = vpop.eup %5378 }
 0x6d6   : > { %v3250_v7 = vadd.f32 1.0, %v5379_v57 }
 0x6d7   : > { %5380 = vrcp.f32 %v3249_v58 }
 0x6d8   : > { %5382 = vrcp.f32 %v3250_v7 }
 0x6d9   : > { %5384 = vpow2.f32 %v5047_v35 }
 0x6da   : > { %5386 = vpow2.f32 %v5048_v29 }
 0x6e1   : > { %v5381_v62 = vpop.eup %5380 }
 0x6e2   : > { %v3273_v59 = vmul.f32 %v5381_v62, %v3269_v37  ;;  %v5383_v41 = vpop.eup %5382 }
 0x6e3   : > { %v3274_v1 = vmul.f32 %v5383_v41, %v3270_v18  ;;  %v5385_v57 = vpop.eup %5384 }
 0x6e4   : > { %v5387_v21 = vpop.eup %5386  ;;  %v3247_v43 = vadd.f32 1.0, %v5385_v57 }
 0x6e5   : > { %v3248_v17 = vadd.f32 1.0, %v5387_v21 }
 0x6e6   : > { %5388 = vrcp.f32 %v3247_v43 }
 0x6e7   : > { %5390 = vrcp.f32 %v3248_v17 }
 0x6f0   : > { %v5389_v21 = vpop.eup %5388 }
 0x703   : > { %v3149_v58 = vpop.f32.mrb[36].mxu0  ;;  %v3190_v7 = vpop.f32.mrb[36].mxu1 }
 0x704   : > { %v3209_v2 = vrot.slane %v3149_v58, 2  ;;  %v3211_v37 = vrot.slane %v3190_v7, 2  ;;  %v3151_v62 = vpop.f32.mrb[37].mxu0  ;;  %v3192_v18 = vpop.f32.mrb[37].mxu1 }
 0x705   : > { %v3210_v23 = vrot.slane %v3151_v62, 2  ;;  %v3212_v44 = vrot.slane %v3192_v18, 2  ;;  %v3153_v41 = vpop.f32.mrb[38].mxu0  ;;  %v3194_v4 = vpop.f32.mrb[38].mxu1 }
 0x706   : > { %v3225_v42 = vadd.f32 %v3209_v2, %v7078_v26  ;;  %v3227_v45 = vadd.f32 %v3211_v37, %v7080_v28  ;;  %v3154_v48 = vpop.f32.mrb[39].mxu0  ;;  %v3195_v13 = vpop.f32.mrb[39].mxu1 }
 0x707   : > { %v3226_v20 = vadd.f32 %v3210_v23, %v7082_v22  ;;  %v3228_v35 = vadd.f32 %v3212_v44, %v7084_v15  ;;  %v5391_v58 = vpop.eup %5390  ;;  %v9092_v13 = vld [vmem:[#allocation132_spill] sm:$0xff] }
 0x708   : > { %v5051_v29 = vmul.f32 -1.442695, %v3225_v42  ;;  %5392 = vtanh.f32 %v3227_v45 }
 0x709   : > { %v5052_v57 = vmul.f32 -1.442695, %v3226_v20  ;;  %5394 = vtanh.f32 %v3228_v35  ;;  %v9093_v20 = vld [vmem:[#allocation133_spill] sm:$0xff]  ;;  %v9094_v35 = vld [vmem:[#allocation134_spill] sm:$0xff] }
 0x70a   : > { %5396 = vpow2.f32 %v5051_v29  ;;  %v9095_v29 = vld [vmem:[#allocation135_spill] sm:$0xff] }
 0x70b   : > { %5398 = vpow2.f32 %v5052_v57  ;;  %v9096_v57 = vld [vmem:[#allocation136_spill] sm:$0xff] }
 0x712   : > { %v5393_v43 = vpop.eup %5392 }
 0x713   : > { %v5395_v7 = vpop.eup %5394  ;;  %v3275_v26 = vmul.f32 %v5393_v43, %v5389_v21  ;;  %v9097_v21 = vld [vmem:[#allocation137_spill] sm:$0xff]  ;;  %v9099_v43 = vld [vmem:[#allocation139_spill] sm:$0xff] }
 0x714   : > { %v5397_v2 = vpop.eup %5396  ;;  %v3276_v28 = vmul.f32 %v5395_v7, %v5391_v58  ;;  %v9098_v58 = vld [vmem:[#allocation138_spill] sm:$0xff]  ;;  %v9100_v7 = vld [vmem:[#allocation140_spill] sm:$0xff] }
 0x715   : > { %v5399_v37 = vpop.eup %5398  ;;  %v3251_v62 = vadd.f32 1.0, %v5397_v2  ;;  %v7564_v17 = vadd.f32 %v3275_v26, %v3273_v59  ;;  %v9101_v26 = vld [vmem:[#allocation141_spill] sm:$0xff]  ;;  %v9102_v2 = vld [vmem:[#allocation142_spill] sm:$0xff] }
 0x716   : > { %v3252_v22 = vadd.f32 1.0, %v5399_v37  ;;  %v7566_v18 = vadd.f32 %v3276_v28, %v3274_v1  ;;  %v9103_v28 = vld [vmem:[#allocation143_spill] sm:$0xff]  ;;  %v9104_v37 = vld [vmem:[#allocation144_spill] sm:$0xff] }
 0x717   : > { %5400 = vrcp.f32 %v3251_v62  ;;  %v9105_v62 = vld [vmem:[#allocation145_spill] sm:$0xff] }
 0x718   : > { %5402 = vtanh.f32 %v7564_v17 }
 0x719   : > { %5404 = vrcp.f32 %v3252_v22  ;;  %v9106_v22 = vld [vmem:[#allocation146_spill] sm:$0xff] }
 0x71a   : > { %5406 = vtanh.f32 %v7566_v18 }
 0x721   : > { %v5401_v15 = vpop.eup %5400 }
 0x722   : > { %v5403_v23 = vpop.eup %5402 }
 0x723   : > { %v5405_v44 = vpop.eup %5404  ;;  %v7570_v41 = vmul.f32 %v5403_v23, %v5401_v15  ;;  %v9107_v15 = vld [vmem:[#allocation147_spill] sm:$0xff]  ;;  %v9108_v23 = vld [vmem:[#allocation148_spill] sm:$0xff] }
 0x724   : > { %v5407_v4 = vpop.eup %5406 }
 0x725   : > { %9090 = vst [vmem:[#allocation99_spill] sm:$0xff] %v7570_v41  ;;  %v7572_v42 = vmul.f32 %v5407_v4, %v5405_v44  ;;  %v3283_v59 = vpack.c.bf16 %v7570_v41, %v7570_v41  ;;  %v9109_v44 = vld [vmem:[#allocation149_spill] sm:$0xff]  ;;  %v9110_v4 = vld [vmem:[#allocation150_spill] sm:$0xff]  ;;  %v9115_v41 = vld [vmem:[#allocation155_spill] sm:$0xff] }
 0x727   : > { %9091 = vst [vmem:[#allocation100_spill] sm:$0xff] %v7572_v42  ;;  %v3284_v1 = vpack.c.bf16 %v7572_v42, %v7572_v42  ;;  %v7578_v48 = vrot.slane %v3283_v59, 3  ;;  %v9111_v59 = vld [vmem:[#allocation151_spill] sm:$0xff]  ;;  %v9114_v42 = vld [vmem:[#allocation154_spill] sm:$0xff] }
 0x729   : > { %v3288_v45 = vrot.slane %v3284_v1, 3  ;;  %v9112_v1 = vld [vmem:[#allocation152_spill] sm:$0xff] }
 0x72b   : > { %3323 = vmatprep.mubr.bf16.mxu0 %v3288_v45  ;;  %3364 = vmatprep.mubr.bf16.mxu1 %v3288_v45 }
 0x72c   : > { %3324 = vmatmul.mubr.bf16.vlgmr.msra.gmra.mrb[40].mxu0 %v7578_v48  ;;  %3365 = vmatmul.mubr.bf16.vlgmr.msra.gmra.mrb[40].mxu1 %v7578_v48 }
 0x72d   : > { %3374 = vmatpush1.bf16.msra.mxu0 %v8802_v61  ;;  %3415 = vmatpush1.bf16.msra.mxu1 %v8803_v12 }
 0x72e   : > { %3405 = vmatprep.mubr.bf16.mxu0 %v3288_v45  ;;  %3446 = vmatprep.mubr.bf16.mxu1 %v3288_v45  ;;  %v9113_v45 = vld [vmem:[#allocation153_spill] sm:$0xff] }
 0x72f   : > { %3375 = vmatprep.subr.bf16.mxu0 %v8804_v34  ;;  %3416 = vmatprep.subr.bf16.mxu1 %v8805_v0 }
 0x731   : > { %3376 = vmatpush1.bf16.msra.mxu0 %v8806_v54  ;;  %3417 = vmatpush1.bf16.msra.mxu1 %v8807_v63 }
 0x732   : > { %3377 = vmatprep.subr.bf16.mxu0 %v8808_v49  ;;  %3418 = vmatprep.subr.bf16.mxu1 %v8809_v25 }
 0x735   : > { %3378 = vmatpush1.bf16.msra.mxu0 %v8810_v11  ;;  %3419 = vmatpush1.bf16.msra.mxu1 %v8811_v16 }
 0x736   : > { %3379 = vmatprep.subr.bf16.mxu0 %v8812_v36  ;;  %3420 = vmatprep.subr.bf16.mxu1 %v8813_v10 }
 0x739   : > { %3380 = vmatpush1.bf16.msra.mxu0 %v8902_v30  ;;  %3421 = vmatpush1.bf16.msra.mxu1 %v8903_v47 }
 0x73a   : > { %3381 = vmatprep.subr.bf16.mxu0 %v8904_v14  ;;  %3422 = vmatprep.subr.bf16.mxu1 %v8905_v53 }
 0x73d   : > { %3382 = vmatpush1.bf16.msra.mxu0 %v8906_v56  ;;  %3423 = vmatpush1.bf16.msra.mxu1 %v8907_v31 }
 0x73e   : > { %3383 = vmatprep.subr.bf16.mxu0 %v8908_v27  ;;  %3424 = vmatprep.subr.bf16.mxu1 %v8997_v51 }
 0x741   : > { %3384 = vmatpush1.bf16.msra.mxu0 %v8998_v55  ;;  %3425 = vmatpush1.bf16.msra.mxu1 %v8999_v3 }
 0x742   : > { %3385 = vmatprep.subr.bf16.mxu0 %v9000_v40  ;;  %3426 = vmatprep.subr.bf16.mxu1 %v9001_v52 }
 0x745   : > { %3386 = vmatpush1.bf16.msra.mxu0 %v9002_v5  ;;  %3427 = vmatpush1.bf16.msra.mxu1 %v9003_v60 }
 0x746   : > { %3387 = vmatprep.subr.bf16.mxu0 %v8916_v38  ;;  %3428 = vmatprep.subr.bf16.mxu1 %v8917_v50 }
 0x749   : > { %3388 = vmatpush1.bf16.msra.mxu0 %v8918_v46  ;;  %3429 = vmatpush1.bf16.msra.mxu1 %v9004_v19 }
 0x74a   : > { %3389 = vmatprep.subr.bf16.mxu0 %v8920_v39  ;;  %3430 = vmatprep.subr.bf16.mxu1 %v8921_v6 }
 0x74d   : > { %3390 = vmatpush1.bf16.msra.mxu0 %v8922_v8  ;;  %3431 = vmatpush1.bf16.msra.mxu1 %v8923_v9 }
 0x74e   : > { %3391 = vmatprep.subr.bf16.mxu0 %v8924_v33  ;;  %3432 = vmatprep.subr.bf16.mxu1 %v8925_v24 }
 0x751   : > { %3392 = vmatpush1.bf16.msra.mxu0 %v8926_v32  ;;  %3433 = vmatpush1.bf16.msra.mxu1 %v9092_v13 }
 0x752   : > { %3393 = vmatprep.subr.bf16.mxu0 %v9093_v20  ;;  %3434 = vmatprep.subr.bf16.mxu1 %v9094_v35 }
 0x755   : > { %3394 = vmatpush1.bf16.msra.mxu0 %v9095_v29  ;;  %3435 = vmatpush1.bf16.msra.mxu1 %v9096_v57 }
 0x756   : > { %3395 = vmatprep.subr.bf16.mxu0 %v9097_v21  ;;  %3436 = vmatprep.subr.bf16.mxu1 %v9098_v58 }
 0x759   : > { %3396 = vmatpush1.bf16.msra.mxu0 %v9099_v43  ;;  %3437 = vmatpush1.bf16.msra.mxu1 %v9100_v7 }
 0x75a   : > { %3397 = vmatprep.subr.bf16.mxu0 %v9101_v26  ;;  %3438 = vmatprep.subr.bf16.mxu1 %v9102_v2 }
 0x75d   : > { %3398 = vmatpush1.bf16.msra.mxu0 %v9103_v28  ;;  %3439 = vmatpush1.bf16.msra.mxu1 %v9104_v37  ;;  %v9184_v28 = vld [vmem:[#allocation163_spill] sm:$0xff] }
 0x75e   : > { %3399 = vmatprep.subr.bf16.mxu0 %v9105_v62  ;;  %3440 = vmatprep.subr.bf16.mxu1 %v9106_v22  ;;  %v9116_v62 = vld [vmem:[#allocation156_spill] sm:$0xff]  ;;  %v9117_v22 = vld [vmem:[#allocation29_spill] sm:$0xff] }
 0x761   : > { %3400 = vmatpush1.bf16.msra.mxu0 %v9107_v15  ;;  %3441 = vmatpush1.bf16.msra.mxu1 %v9108_v23  ;;  %v9118_v15 = vld [vmem:[#allocation30_spill] sm:$0xff]  ;;  %v9183_v23 = vld [vmem:[#allocation161_spill] sm:$0xff] }
 0x762   : > { %3401 = vmatprep.subr.bf16.mxu0 %v9109_v44  ;;  %3442 = vmatprep.subr.bf16.mxu1 %v9110_v4  ;;  %v9119_v4 = vld [vmem:[#allocation31_spill] sm:$0xff]  ;;  %v9128_v44 = vld [vmem:[#allocation40_spill] sm:$0xff] }
 0x765   : > { %3402 = vmatpush1.bf16.msra.mxu0 %v9111_v59  ;;  %3443 = vmatpush1.bf16.msra.mxu1 %v9112_v1  ;;  %v9120_v59 = vld [vmem:[#allocation32_spill] sm:$0xff]  ;;  %v9121_v1 = vld [vmem:[#allocation33_spill] sm:$0xff] }
 0x766   : > { %3403 = vmatprep.subr.bf16.mxu0 %v9113_v45  ;;  %3444 = vmatprep.subr.bf16.mxu1 %v9114_v42  ;;  %v9122_v45 = vld [vmem:[#allocation34_spill] sm:$0xff]  ;;  %v9123_v42 = vld [vmem:[#allocation35_spill] sm:$0xff] }
 0x769   : > { %3404 = vmatpush1.bf16.msra.mxu0 %v9115_v41  ;;  %3445 = vmatpush1.bf16.msra.mxu1 %v9116_v62  ;;  %v9124_v41 = vld [vmem:[#allocation36_spill] sm:$0xff]  ;;  %v9125_v62 = vld [vmem:[#allocation37_spill] sm:$0xff] }
 0x76a   : > { %3519 = vmatprep.subr.bf16.mxu0 %v9117_v22  ;;  %3560 = vmatprep.subr.bf16.mxu1 %v9118_v15  ;;  %v9126_v22 = vld [vmem:[#allocation38_spill] sm:$0xff]  ;;  %v9127_v15 = vld [vmem:[#allocation39_spill] sm:$0xff] }
 0x76c   : > { %3406 = vmatmul.mubr.bf16.vlgmr.msra.gmra.mrb[44].mxu0 %v7578_v48  ;;  %3447 = vmatmul.mubr.bf16.vlgmr.msra.gmra.mrb[44].mxu1 %v7578_v48  ;;  %v9129_v48 = vld [vmem:[#allocation41_spill] sm:$0xff] }
 0x76d   : > { %3520 = vmatpush1.bf16.msra.mxu0 %v9119_v4  ;;  %3561 = vmatpush1.bf16.msra.mxu1 %v9120_v59  ;;  %v9130_v4 = vld [vmem:[#allocation42_spill] sm:$0xff]  ;;  %v9131_v59 = vld [vmem:[#allocation43_spill] sm:$0xff] }
 0x76e   : > { %3521 = vmatprep.subr.bf16.mxu0 %v9121_v1  ;;  %3562 = vmatprep.subr.bf16.mxu1 %v9122_v45  ;;  %v9132_v1 = vld [vmem:[#allocation44_spill] sm:$0xff]  ;;  %v9133_v45 = vld [vmem:[#allocation45_spill] sm:$0xff] }
 0x771   : > { %3522 = vmatpush1.bf16.msra.mxu0 %v9123_v42  ;;  %3563 = vmatpush1.bf16.msra.mxu1 %v9124_v41  ;;  %v9134_v42 = vld [vmem:[#allocation46_spill] sm:$0xff]  ;;  %v9135_v41 = vld [vmem:[#allocation47_spill] sm:$0xff] }
 0x772   : > { %3523 = vmatprep.subr.bf16.mxu0 %v9125_v62  ;;  %3564 = vmatprep.subr.bf16.mxu1 %v9126_v22  ;;  %v9136_v62 = vld [vmem:[#allocation48_spill] sm:$0xff]  ;;  %v9137_v22 = vld [vmem:[#allocation49_spill] sm:$0xff] }
 0x775   : > { %3524 = vmatpush1.bf16.msra.mxu0 %v9127_v15  ;;  %3565 = vmatpush1.bf16.msra.mxu1 %v9128_v44  ;;  %v9138_v15 = vld [vmem:[#allocation50_spill] sm:$0xff]  ;;  %v9139_v44 = vld [vmem:[#allocation51_spill] sm:$0xff] }
 0x776   : > { %3525 = vmatprep.subr.bf16.mxu0 %v9129_v48  ;;  %3566 = vmatprep.subr.bf16.mxu1 %v9130_v4  ;;  %v9140_v48 = vld [vmem:[#allocation52_spill] sm:$0xff]  ;;  %v9141_v4 = vld [vmem:[#allocation53_spill] sm:$0xff] }
 0x779   : > { %3526 = vmatpush1.bf16.msra.mxu0 %v9131_v59  ;;  %3567 = vmatpush1.bf16.msra.mxu1 %v9132_v1  ;;  %v9142_v59 = vld [vmem:[#allocation54_spill] sm:$0xff]  ;;  %v9143_v1 = vld [vmem:[#allocation55_spill] sm:$0xff] }
 0x77a   : > { %3527 = vmatprep.subr.bf16.mxu0 %v9133_v45  ;;  %3568 = vmatprep.subr.bf16.mxu1 %v9134_v42  ;;  %v9144_v45 = vld [vmem:[#allocation56_spill] sm:$0xff]  ;;  %v9145_v42 = vld [vmem:[#allocation57_spill] sm:$0xff] }
 0x77d   : > { %3528 = vmatpush1.bf16.msra.mxu0 %v9135_v41  ;;  %3569 = vmatpush1.bf16.msra.mxu1 %v9136_v62  ;;  %v9146_v41 = vld [vmem:[#allocation58_spill] sm:$0xff]  ;;  %v9147_v62 = vld [vmem:[#allocation59_spill] sm:$0xff] }
 0x77e   : > { %3529 = vmatprep.subr.bf16.mxu0 %v9137_v22  ;;  %3570 = vmatprep.subr.bf16.mxu1 %v9138_v15  ;;  %v9148_v22 = vld [vmem:[#allocation60_spill] sm:$0xff]  ;;  %v9149_v15 = vld [vmem:[#allocation61_spill] sm:$0xff] }
 0x781   : > { %3530 = vmatpush1.bf16.msra.mxu0 %v9139_v44  ;;  %3571 = vmatpush1.bf16.msra.mxu1 %v9140_v48  ;;  %v9150_v44 = vld [vmem:[#allocation62_spill] sm:$0xff]  ;;  %v9151_v48 = vld [vmem:[#allocation63_spill] sm:$0xff] }
 0x782   : > { %3531 = vmatprep.subr.bf16.mxu0 %v9141_v4  ;;  %3572 = vmatprep.subr.bf16.mxu1 %v9142_v59  ;;  %v9152_v4 = vld [vmem:[#allocation64_spill] sm:$0xff]  ;;  %v9153_v59 = vld [vmem:[#allocation65_spill] sm:$0xff] }
 0x785   : > { %3532 = vmatpush1.bf16.msra.mxu0 %v9143_v1  ;;  %3573 = vmatpush1.bf16.msra.mxu1 %v9144_v45  ;;  %v9154_v1 = vld [vmem:[#allocation66_spill] sm:$0xff]  ;;  %v9155_v45 = vld [vmem:[#allocation67_spill] sm:$0xff] }
 0x786   : > { %3533 = vmatprep.subr.bf16.mxu0 %v9145_v42  ;;  %3574 = vmatprep.subr.bf16.mxu1 %v9146_v41  ;;  %v9156_v42 = vld [vmem:[#allocation68_spill] sm:$0xff]  ;;  %v9157_v41 = vld [vmem:[#allocation69_spill] sm:$0xff] }
 0x789   : > { %3534 = vmatpush1.bf16.msra.mxu0 %v9147_v62  ;;  %3575 = vmatpush1.bf16.msra.mxu1 %v9148_v22  ;;  %v9158_v62 = vld [vmem:[#allocation70_spill] sm:$0xff]  ;;  %v9159_v22 = vld [vmem:[#allocation71_spill] sm:$0xff] }
 0x78a   : > { %3535 = vmatprep.subr.bf16.mxu0 %v9149_v15  ;;  %3576 = vmatprep.subr.bf16.mxu1 %v9150_v44  ;;  %v9160_v15 = vld [vmem:[#allocation72_spill] sm:$0xff]  ;;  %v9161_v44 = vld [vmem:[#allocation73_spill] sm:$0xff] }
 0x78d   : > { %3536 = vmatpush1.bf16.msra.mxu0 %v9151_v48  ;;  %3577 = vmatpush1.bf16.msra.mxu1 %v9152_v4  ;;  %v9162_v48 = vld [vmem:[#allocation74_spill] sm:$0xff]  ;;  %v9163_v4 = vld [vmem:[#allocation75_spill] sm:$0xff] }
 0x78e   : > { %3537 = vmatprep.subr.bf16.mxu0 %v9153_v59  ;;  %3578 = vmatprep.subr.bf16.mxu1 %v9154_v1  ;;  %v9164_v59 = vld [vmem:[#allocation76_spill] sm:$0xff]  ;;  %v9165_v1 = vld [vmem:[#allocation77_spill] sm:$0xff] }
 0x791   : > { %3538 = vmatpush1.bf16.msra.mxu0 %v9155_v45  ;;  %3579 = vmatpush1.bf16.msra.mxu1 %v9156_v42  ;;  %v9166_v45 = vld [vmem:[#allocation78_spill] sm:$0xff]  ;;  %v9167_v42 = vld [vmem:[#allocation79_spill] sm:$0xff] }
 0x792   : > { %3539 = vmatprep.subr.bf16.mxu0 %v9157_v41  ;;  %3580 = vmatprep.subr.bf16.mxu1 %v9158_v62  ;;  %v9168_v41 = vld [vmem:[#allocation80_spill] sm:$0xff]  ;;  %v9169_v62 = vld [vmem:[#allocation81_spill] sm:$0xff] }
 0x795   : > { %3540 = vmatpush1.bf16.msra.mxu0 %v9159_v22  ;;  %3581 = vmatpush1.bf16.msra.mxu1 %v9160_v15  ;;  %v9170_v22 = vld [vmem:[#allocation82_spill] sm:$0xff]  ;;  %v9171_v15 = vld [vmem:[#allocation83_spill] sm:$0xff] }
 0x796   : > { %3541 = vmatprep.subr.bf16.mxu0 %v9161_v44  ;;  %3582 = vmatprep.subr.bf16.mxu1 %v9162_v48  ;;  %v9172_v44 = vld [vmem:[#allocation84_spill] sm:$0xff]  ;;  %v9173_v48 = vld [vmem:[#allocation85_spill] sm:$0xff] }
 0x799   : > { %3542 = vmatpush1.bf16.msra.mxu0 %v9163_v4  ;;  %3583 = vmatpush1.bf16.msra.mxu1 %v9164_v59  ;;  %v9174_v4 = vld [vmem:[#allocation86_spill] sm:$0xff]  ;;  %v9175_v59 = vld [vmem:[#allocation87_spill] sm:$0xff] }
 0x79a   : > { %3543 = vmatprep.subr.bf16.mxu0 %v9165_v1  ;;  %3584 = vmatprep.subr.bf16.mxu1 %v9166_v45  ;;  %v9176_v1 = vld [vmem:[#allocation88_spill] sm:$0xff]  ;;  %v9177_v45 = vld [vmem:[#allocation89_spill] sm:$0xff] }
 0x79d   : > { %3544 = vmatpush1.bf16.msra.mxu0 %v9167_v42  ;;  %3585 = vmatpush1.bf16.msra.mxu1 %v9168_v41  ;;  %v9178_v42 = vld [vmem:[#allocation90_spill] sm:$0xff]  ;;  %v9179_v41 = vld [vmem:[#allocation91_spill] sm:$0xff] }
 0x79e   : > { %3545 = vmatprep.subr.bf16.mxu0 %v9169_v62  ;;  %3586 = vmatprep.subr.bf16.mxu1 %v9170_v22  ;;  %v9180_v62 = vld [vmem:[#allocation92_spill] sm:$0xff]  ;;  %v9181_v22 = vld [vmem:[#allocation93_spill] sm:$0xff] }
 0x7a1   : > { %3546 = vmatpush1.bf16.msra.mxu0 %v9171_v15  ;;  %3587 = vmatpush1.bf16.msra.mxu1 %v9172_v44  ;;  %v9182_v15 = vld [vmem:[#allocation94_spill] sm:$0xff] }
 0x7a2   : > { %3547 = vmatprep.subr.bf16.mxu0 %v9173_v48  ;;  %3588 = vmatprep.subr.bf16.mxu1 %v9174_v4 }
 0x7a5   : > { %3548 = vmatpush1.bf16.msra.mxu0 %v9175_v59  ;;  %3589 = vmatpush1.bf16.msra.mxu1 %v9176_v1 }
 0x7a6   : > { %3549 = vmatprep.subr.bf16.mxu0 %v9177_v45  ;;  %3590 = vmatprep.subr.bf16.mxu1 %v9178_v42 }
 0x7a9   : > { %3550 = vmatpush1.bf16.msra.mxu0 %v9179_v41  ;;  %3591 = vmatpush1.bf16.msra.mxu1 %v9180_v62 }
 0x7aa   : > { %3601 = vmatprep.subr.bf16.mxu0 %v9181_v22  ;;  %3642 = vmatprep.subr.bf16.mxu1 %v9182_v15 }
 0x7ff   : > { %v3325_v44 = vpop.f32.mrb[40].mxu0  ;;  %v3366_v48 = vpop.f32.mrb[40].mxu1 }
 0x800   : > { %v3457_v4 = vadd.f32 %v3366_v48, %v9183_v23  ;;  %v3327_v37 = vpop.f32.mrb[41].mxu0  ;;  %v3368_v59 = vpop.f32.mrb[41].mxu1  ;;  %v3503_v48 = vrot.slane %v7564_v17, 6 }
 0x801   : > { %v3458_v1 = vadd.f32 %v3368_v59, %v9184_v28  ;;  %v3329_v2 = vpop.f32.mrb[42].mxu0  ;;  %v3370_v45 = vpop.f32.mrb[42].mxu1  ;;  %v3504_v59 = vrot.slane %v7566_v18, 6  ;;  %v9188_v18 = vld [vmem:[#allocation165_spill] sm:$0xff] }
 0x802   : > { %v5055_v26 = vmul.f32 -1.442695, %v3457_v4  ;;  %v3330_v42 = vpop.f32.mrb[43].mxu0  ;;  %v3371_v7 = vpop.f32.mrb[43].mxu1  ;;  %v9185_v4 = vld [vmem:[#allocation160_spill] sm:$0xff] }
 0x803   : > { %v5056_v41 = vmul.f32 -1.442695, %v3458_v1  ;;  %v3455_v42 = vadd.f32 %v3325_v44, %v9185_v4  ;;  %v9186_v7 = vld [vmem:[#allocation162_spill] sm:$0xff] }
 0x804   : > { %5408 = vpow2.f32 %v5055_v26  ;;  %v3456_v1 = vadd.f32 %v3327_v37, %v9186_v7  ;;  %v9189_v44 = vld [vmem:[#allocation166_spill] sm:$0xff] }
 0x805   : > { %5410 = vpow2.f32 %v5056_v41  ;;  %v5053_v26 = vmul.f32 -1.442695, %v3455_v42  ;;  %v9190_v42 = vld [vmem:[#allocation167_spill] sm:$0xff] }
 0x806   : > { %v5054_v41 = vmul.f32 -1.442695, %v3456_v1 }
 0x80e   : > { %v5409_v62 = vpop.eup %5408 }
 0x80f   : > { %v3483_v22 = vadd.f32 1.0, %v5409_v62  ;;  %v5411_v43 = vpop.eup %5410 }
 0x810   : > { %v3484_v15 = vadd.f32 1.0, %v5411_v43 }
 0x811   : > { %5412 = vrcp.f32 %v3483_v22 }
 0x812   : > { %5414 = vrcp.f32 %v3484_v15 }
 0x813   : > { %5416 = vpow2.f32 %v5053_v26 }
 0x814   : > { %5418 = vpow2.f32 %v5054_v41 }
 0x81b   : > { %v5413_v23 = vpop.eup %5412 }
 0x81c   : > { %v3507_v58 = vmul.f32 %v5413_v23, %v3503_v48  ;;  %v5415_v2 = vpop.eup %5414  ;;  %v9187_v23 = vld [vmem:[#allocation164_spill] sm:$0xff] }
 0x81d   : > { %v3508_v45 = vmul.f32 %v5415_v2, %v3504_v59  ;;  %v5417_v62 = vpop.eup %5416 }
 0x81e   : > { %v5419_v22 = vpop.eup %5418  ;;  %v3481_v43 = vadd.f32 1.0, %v5417_v62 }
 0x81f   : > { %v3482_v15 = vadd.f32 1.0, %v5419_v22 }
 0x820   : > { %5420 = vrcp.f32 %v3481_v43 }
 0x821   : > { %5422 = vrcp.f32 %v3482_v15 }
 0x83f   : > { %v3407_v28 = vpop.f32.mrb[44].mxu0  ;;  %v3448_v17 = vpop.f32.mrb[44].mxu1 }
 0x840   : > { %v3459_v48 = vadd.f32 %v3407_v28, %v9187_v23  ;;  %v3461_v21 = vadd.f32 %v3448_v17, %v9188_v18  ;;  %v3409_v59 = vpop.f32.mrb[45].mxu0  ;;  %v3450_v2 = vpop.f32.mrb[45].mxu1 }
 0x841   : > { %v3460_v37 = vadd.f32 %v3409_v59, %v9189_v44  ;;  %v3462_v1 = vadd.f32 %v3450_v2, %v9190_v42  ;;  %v3411_v26 = vpop.f32.mrb[46].mxu0  ;;  %v3452_v41 = vpop.f32.mrb[46].mxu1 }
 0x842   : > { %v5057_v7 = vmul.f32 -1.442695, %v3459_v48  ;;  %5424 = vtanh.f32 %v3461_v21  ;;  %v3412_v62 = vpop.f32.mrb[47].mxu0  ;;  %v3453_v22 = vpop.f32.mrb[47].mxu1  ;;  %v9196_v41 = vld [vmem:[#allocation139_spill] sm:$0xff] }
 0x843   : > { %v5058_v4 = vmul.f32 -1.442695, %v3460_v37  ;;  %5426 = vtanh.f32 %v3462_v1  ;;  %v5421_v28 = vpop.eup %5420  ;;  %v9197_v62 = vld [vmem:[#allocation140_spill] sm:$0xff]  ;;  %v9198_v22 = vld [vmem:[#allocation141_spill] sm:$0xff] }
 0x844   : > { %5428 = vpow2.f32 %v5057_v7  ;;  %v5423_v43 = vpop.eup %5422 }
 0x845   : > { %5430 = vpow2.f32 %v5058_v4 }
 0x84c   : > { %v5425_v17 = vpop.eup %5424 }
 0x84d   : > { %v5427_v18 = vpop.eup %5426  ;;  %v3509_v23 = vmul.f32 %v5425_v17, %v5421_v28  ;;  %v9199_v28 = vld [vmem:[#allocation142_spill] sm:$0xff]  ;;  %v9201_v17 = vld [vmem:[#allocation144_spill] sm:$0xff] }
 0x84e   : > { %v5429_v15 = vpop.eup %5428  ;;  %v3510_v57 = vmul.f32 %v5427_v18, %v5423_v43  ;;  %v9200_v43 = vld [vmem:[#allocation143_spill] sm:$0xff] }
 0x84f   : > { %v5431_v59 = vpop.eup %5430  ;;  %v3485_v44 = vadd.f32 1.0, %v5429_v15  ;;  %v7722_v2 = vadd.f32 %v3509_v23, %v3507_v58  ;;  %v9194_v23 = vld [vmem:[#allocation137_spill] sm:$0xff] }
 0x850   : > { %v3486_v26 = vadd.f32 1.0, %v5431_v59  ;;  %v7724_v48 = vadd.f32 %v3510_v57, %v3508_v45  ;;  %v9193_v45 = vld [vmem:[#allocation136_spill] sm:$0xff]  ;;  %v9202_v15 = vld [vmem:[#allocation145_spill] sm:$0xff]  ;;  %v9203_v59 = vld [vmem:[#allocation146_spill] sm:$0xff] }
 0x851   : > { %5432 = vrcp.f32 %v3485_v44  ;;  %v9195_v44 = vld [vmem:[#allocation138_spill] sm:$0xff] }
 0x852   : > { %5434 = vtanh.f32 %v7722_v2 }
 0x853   : > { %5436 = vrcp.f32 %v3486_v26  ;;  %v9204_v26 = vld [vmem:[#allocation147_spill] sm:$0xff] }
 0x854   : > { %5438 = vtanh.f32 %v7724_v48 }
 0x85b   : > { %v5433_v21 = vpop.eup %5432 }
 0x85c   : > { %v5435_v4 = vpop.eup %5434 }
 0x85d   : > { %v5437_v7 = vpop.eup %5436  ;;  %v7728_v37 = vmul.f32 %v5435_v4, %v5433_v21  ;;  %v9205_v21 = vld [vmem:[#allocation148_spill] sm:$0xff]  ;;  %v9206_v4 = vld [vmem:[#allocation149_spill] sm:$0xff] }
 0x85e   : > { %v5439_v1 = vpop.eup %5438 }
 0x85f   : > { %9191 = vst [vmem:[#allocation101_spill] sm:$0xff] %v7728_v37  ;;  %v7730_v18 = vmul.f32 %v5439_v1, %v5437_v7  ;;  %v7736_v57 = vpack.c.bf16 %v7728_v37, %v7728_v37  ;;  %v9207_v7 = vld [vmem:[#allocation150_spill] sm:$0xff]  ;;  %v9208_v1 = vld [vmem:[#allocation151_spill] sm:$0xff] }
 0x860   : > { %v9211_v37 = vld [vmem:[#allocation154_spill] sm:$0xff] }
 0x861   : > { %9192 = vst [vmem:[#allocation102_spill] sm:$0xff] %v7730_v18  ;;  %v3518_v58 = vpack.c.bf16 %v7730_v18, %v7730_v18  ;;  %v9210_v18 = vld [vmem:[#allocation153_spill] sm:$0xff] }
 0x863   : > { %3551 = vmatprep.mubr.bf16.mxu0 %v3518_v58  ;;  %3592 = vmatprep.mubr.bf16.mxu1 %v3518_v58 }
 0x864   : > { %3552 = vmatmul.mubr.bf16.vlgmr.msra.gmra.mrb[48].mxu0 %v7736_v57  ;;  %3593 = vmatmul.mubr.bf16.vlgmr.msra.gmra.mrb[48].mxu1 %v7736_v57 }
 0x865   : > { %3602 = vmatpush1.bf16.msra.mxu0 %v8802_v61  ;;  %3643 = vmatpush1.bf16.msra.mxu1 %v8803_v12 }
 0x866   : > { %3633 = vmatprep.mubr.bf16.mxu0 %v3518_v58  ;;  %3674 = vmatprep.mubr.bf16.mxu1 %v3518_v58  ;;  %v9209_v58 = vld [vmem:[#allocation152_spill] sm:$0xff] }
 0x867   : > { %3603 = vmatprep.subr.bf16.mxu0 %v8804_v34  ;;  %3644 = vmatprep.subr.bf16.mxu1 %v8805_v0 }
 0x869   : > { %3604 = vmatpush1.bf16.msra.mxu0 %v8806_v54  ;;  %3645 = vmatpush1.bf16.msra.mxu1 %v8807_v63 }
 0x86a   : > { %3605 = vmatprep.subr.bf16.mxu0 %v8808_v49  ;;  %3646 = vmatprep.subr.bf16.mxu1 %v8809_v25 }
 0x86d   : > { %3606 = vmatpush1.bf16.msra.mxu0 %v8810_v11  ;;  %3647 = vmatpush1.bf16.msra.mxu1 %v8811_v16 }
 0x86e   : > { %3607 = vmatprep.subr.bf16.mxu0 %v8812_v36  ;;  %3648 = vmatprep.subr.bf16.mxu1 %v8813_v10 }
 0x871   : > { %3608 = vmatpush1.bf16.msra.mxu0 %v8902_v30  ;;  %3649 = vmatpush1.bf16.msra.mxu1 %v8903_v47 }
 0x872   : > { %3609 = vmatprep.subr.bf16.mxu0 %v8904_v14  ;;  %3650 = vmatprep.subr.bf16.mxu1 %v8905_v53 }
 0x875   : > { %3610 = vmatpush1.bf16.msra.mxu0 %v8906_v56  ;;  %3651 = vmatpush1.bf16.msra.mxu1 %v8907_v31 }
 0x876   : > { %3611 = vmatprep.subr.bf16.mxu0 %v8908_v27  ;;  %3652 = vmatprep.subr.bf16.mxu1 %v8997_v51 }
 0x879   : > { %3612 = vmatpush1.bf16.msra.mxu0 %v8998_v55  ;;  %3653 = vmatpush1.bf16.msra.mxu1 %v8999_v3 }
 0x87a   : > { %3613 = vmatprep.subr.bf16.mxu0 %v9000_v40  ;;  %3654 = vmatprep.subr.bf16.mxu1 %v9001_v52 }
 0x87d   : > { %3614 = vmatpush1.bf16.msra.mxu0 %v9002_v5  ;;  %3655 = vmatpush1.bf16.msra.mxu1 %v9003_v60 }
 0x87e   : > { %3615 = vmatprep.subr.bf16.mxu0 %v8916_v38  ;;  %3656 = vmatprep.subr.bf16.mxu1 %v8917_v50 }
 0x881   : > { %3616 = vmatpush1.bf16.msra.mxu0 %v8918_v46  ;;  %3657 = vmatpush1.bf16.msra.mxu1 %v9004_v19 }
 0x882   : > { %3617 = vmatprep.subr.bf16.mxu0 %v8920_v39  ;;  %3658 = vmatprep.subr.bf16.mxu1 %v8921_v6 }
 0x885   : > { %3618 = vmatpush1.bf16.msra.mxu0 %v8922_v8  ;;  %3659 = vmatpush1.bf16.msra.mxu1 %v8923_v9 }
 0x886   : > { %3619 = vmatprep.subr.bf16.mxu0 %v8924_v33  ;;  %3660 = vmatprep.subr.bf16.mxu1 %v8925_v24 }
 0x889   : > { %3620 = vmatpush1.bf16.msra.mxu0 %v8926_v32  ;;  %3661 = vmatpush1.bf16.msra.mxu1 %v9092_v13 }
 0x88a   : > { %3621 = vmatprep.subr.bf16.mxu0 %v9093_v20  ;;  %3662 = vmatprep.subr.bf16.mxu1 %v9094_v35 }
 0x88d   : > { %3622 = vmatpush1.bf16.msra.mxu0 %v9095_v29  ;;  %3663 = vmatpush1.bf16.msra.mxu1 %v9193_v45 }
 0x88e   : > { %3623 = vmatprep.subr.bf16.mxu0 %v9194_v23  ;;  %3664 = vmatprep.subr.bf16.mxu1 %v9195_v44 }
 0x891   : > { %3624 = vmatpush1.bf16.msra.mxu0 %v9196_v41  ;;  %3665 = vmatpush1.bf16.msra.mxu1 %v9197_v62  ;;  %v9281_v41 = vld [vmem:[#allocation163_spill] sm:$0xff] }
 0x892   : > { %3625 = vmatprep.subr.bf16.mxu0 %v9198_v22  ;;  %3666 = vmatprep.subr.bf16.mxu1 %v9199_v28  ;;  %v9280_v22 = vld [vmem:[#allocation161_spill] sm:$0xff] }
 0x895   : > { %3626 = vmatpush1.bf16.msra.mxu0 %v9200_v43  ;;  %3667 = vmatpush1.bf16.msra.mxu1 %v9201_v17  ;;  %v9212_v17 = vld [vmem:[#allocation155_spill] sm:$0xff] }
 0x896   : > { %3627 = vmatprep.subr.bf16.mxu0 %v9202_v15  ;;  %3668 = vmatprep.subr.bf16.mxu1 %v9203_v59  ;;  %v9213_v15 = vld [vmem:[#allocation156_spill] sm:$0xff]  ;;  %v9214_v59 = vld [vmem:[#allocation29_spill] sm:$0xff] }
 0x899   : > { %3628 = vmatpush1.bf16.msra.mxu0 %v9204_v26  ;;  %3669 = vmatpush1.bf16.msra.mxu1 %v9205_v21  ;;  %v9215_v26 = vld [vmem:[#allocation30_spill] sm:$0xff] }
 0x89a   : > { %3629 = vmatprep.subr.bf16.mxu0 %v9206_v4  ;;  %3670 = vmatprep.subr.bf16.mxu1 %v9207_v7  ;;  %v9216_v7 = vld [vmem:[#allocation31_spill] sm:$0xff]  ;;  %v9225_v4 = vld [vmem:[#allocation40_spill] sm:$0xff] }
 0x89d   : > { %3630 = vmatpush1.bf16.msra.mxu0 %v9208_v1  ;;  %3671 = vmatpush1.bf16.msra.mxu1 %v9209_v58  ;;  %v9217_v1 = vld [vmem:[#allocation32_spill] sm:$0xff]  ;;  %v9218_v58 = vld [vmem:[#allocation33_spill] sm:$0xff] }
 0x89e   : > { %3631 = vmatprep.subr.bf16.mxu0 %v9210_v18  ;;  %3672 = vmatprep.subr.bf16.mxu1 %v9211_v37  ;;  %v9219_v18 = vld [vmem:[#allocation34_spill] sm:$0xff]  ;;  %v9220_v37 = vld [vmem:[#allocation35_spill] sm:$0xff] }
 0x8a1   : > { %3632 = vmatpush1.bf16.msra.mxu0 %v9212_v17  ;;  %3673 = vmatpush1.bf16.msra.mxu1 %v9213_v15  ;;  %v9221_v17 = vld [vmem:[#allocation36_spill] sm:$0xff]  ;;  %v9222_v15 = vld [vmem:[#allocation37_spill] sm:$0xff] }
 0x8a2   : > { %3777 = vmatprep.subr.bf16.mxu0 %v9214_v59  ;;  %3818 = vmatprep.subr.bf16.mxu1 %v9215_v26  ;;  %v9223_v59 = vld [vmem:[#allocation38_spill] sm:$0xff]  ;;  %v9224_v26 = vld [vmem:[#allocation39_spill] sm:$0xff] }
 0x8a4   : > { %3634 = vmatmul.mubr.bf16.vlgmr.msra.gmra.mrb[52].mxu0 %v7736_v57  ;;  %3675 = vmatmul.mubr.bf16.vlgmr.msra.gmra.mrb[52].mxu1 %v7736_v57  ;;  %v9226_v57 = vld [vmem:[#allocation41_spill] sm:$0xff] }
 0x8a5   : > { %3778 = vmatpush1.bf16.msra.mxu0 %v9216_v7  ;;  %3819 = vmatpush1.bf16.msra.mxu1 %v9217_v1  ;;  %v9227_v7 = vld [vmem:[#allocation42_spill] sm:$0xff]  ;;  %v9228_v1 = vld [vmem:[#allocation43_spill] sm:$0xff] }
 0x8a6   : > { %3779 = vmatprep.subr.bf16.mxu0 %v9218_v58  ;;  %3820 = vmatprep.subr.bf16.mxu1 %v9219_v18  ;;  %v9229_v58 = vld [vmem:[#allocation44_spill] sm:$0xff]  ;;  %v9230_v18 = vld [vmem:[#allocation45_spill] sm:$0xff] }
 0x8a9   : > { %3780 = vmatpush1.bf16.msra.mxu0 %v9220_v37  ;;  %3821 = vmatpush1.bf16.msra.mxu1 %v9221_v17  ;;  %v9231_v37 = vld [vmem:[#allocation46_spill] sm:$0xff]  ;;  %v9232_v17 = vld [vmem:[#allocation47_spill] sm:$0xff] }
 0x8aa   : > { %3781 = vmatprep.subr.bf16.mxu0 %v9222_v15  ;;  %3822 = vmatprep.subr.bf16.mxu1 %v9223_v59  ;;  %v9233_v15 = vld [vmem:[#allocation48_spill] sm:$0xff]  ;;  %v9234_v59 = vld [vmem:[#allocation49_spill] sm:$0xff] }
 0x8ad   : > { %3782 = vmatpush1.bf16.msra.mxu0 %v9224_v26  ;;  %3823 = vmatpush1.bf16.msra.mxu1 %v9225_v4  ;;  %v9235_v26 = vld [vmem:[#allocation50_spill] sm:$0xff]  ;;  %v9236_v4 = vld [vmem:[#allocation51_spill] sm:$0xff] }
 0x8ae   : > { %3783 = vmatprep.subr.bf16.mxu0 %v9226_v57  ;;  %3824 = vmatprep.subr.bf16.mxu1 %v9227_v7  ;;  %v9237_v57 = vld [vmem:[#allocation52_spill] sm:$0xff]  ;;  %v9238_v7 = vld [vmem:[#allocation53_spill] sm:$0xff] }
 0x8b1   : > { %3784 = vmatpush1.bf16.msra.mxu0 %v9228_v1  ;;  %3825 = vmatpush1.bf16.msra.mxu1 %v9229_v58  ;;  %v9239_v1 = vld [vmem:[#allocation54_spill] sm:$0xff]  ;;  %v9240_v58 = vld [vmem:[#allocation55_spill] sm:$0xff] }
 0x8b2   : > { %3785 = vmatprep.subr.bf16.mxu0 %v9230_v18  ;;  %3826 = vmatprep.subr.bf16.mxu1 %v9231_v37  ;;  %v9241_v18 = vld [vmem:[#allocation56_spill] sm:$0xff]  ;;  %v9242_v37 = vld [vmem:[#allocation57_spill] sm:$0xff] }
 0x8b5   : > { %3786 = vmatpush1.bf16.msra.mxu0 %v9232_v17  ;;  %3827 = vmatpush1.bf16.msra.mxu1 %v9233_v15  ;;  %v9243_v17 = vld [vmem:[#allocation58_spill] sm:$0xff]  ;;  %v9244_v15 = vld [vmem:[#allocation59_spill] sm:$0xff] }
 0x8b6   : > { %3787 = vmatprep.subr.bf16.mxu0 %v9234_v59  ;;  %3828 = vmatprep.subr.bf16.mxu1 %v9235_v26  ;;  %v9245_v59 = vld [vmem:[#allocation60_spill] sm:$0xff]  ;;  %v9246_v26 = vld [vmem:[#allocation61_spill] sm:$0xff] }
 0x8b9   : > { %3788 = vmatpush1.bf16.msra.mxu0 %v9236_v4  ;;  %3829 = vmatpush1.bf16.msra.mxu1 %v9237_v57  ;;  %v9247_v4 = vld [vmem:[#allocation62_spill] sm:$0xff]  ;;  %v9248_v57 = vld [vmem:[#allocation63_spill] sm:$0xff] }
 0x8ba   : > { %3789 = vmatprep.subr.bf16.mxu0 %v9238_v7  ;;  %3830 = vmatprep.subr.bf16.mxu1 %v9239_v1  ;;  %v9249_v7 = vld [vmem:[#allocation64_spill] sm:$0xff]  ;;  %v9250_v1 = vld [vmem:[#allocation65_spill] sm:$0xff] }
 0x8bd   : > { %3790 = vmatpush1.bf16.msra.mxu0 %v9240_v58  ;;  %3831 = vmatpush1.bf16.msra.mxu1 %v9241_v18  ;;  %v9251_v58 = vld [vmem:[#allocation66_spill] sm:$0xff]  ;;  %v9252_v18 = vld [vmem:[#allocation67_spill] sm:$0xff] }
 0x8be   : > { %3791 = vmatprep.subr.bf16.mxu0 %v9242_v37  ;;  %3832 = vmatprep.subr.bf16.mxu1 %v9243_v17  ;;  %v9253_v37 = vld [vmem:[#allocation68_spill] sm:$0xff]  ;;  %v9254_v17 = vld [vmem:[#allocation69_spill] sm:$0xff] }
 0x8c1   : > { %3792 = vmatpush1.bf16.msra.mxu0 %v9244_v15  ;;  %3833 = vmatpush1.bf16.msra.mxu1 %v9245_v59  ;;  %v9255_v15 = vld [vmem:[#allocation70_spill] sm:$0xff]  ;;  %v9256_v59 = vld [vmem:[#allocation71_spill] sm:$0xff] }
 0x8c2   : > { %3793 = vmatprep.subr.bf16.mxu0 %v9246_v26  ;;  %3834 = vmatprep.subr.bf16.mxu1 %v9247_v4  ;;  %v9257_v26 = vld [vmem:[#allocation72_spill] sm:$0xff]  ;;  %v9258_v4 = vld [vmem:[#allocation73_spill] sm:$0xff] }
 0x8c5   : > { %3794 = vmatpush1.bf16.msra.mxu0 %v9248_v57  ;;  %3835 = vmatpush1.bf16.msra.mxu1 %v9249_v7  ;;  %v9259_v57 = vld [vmem:[#allocation74_spill] sm:$0xff]  ;;  %v9260_v7 = vld [vmem:[#allocation75_spill] sm:$0xff] }
 0x8c6   : > { %3795 = vmatprep.subr.bf16.mxu0 %v9250_v1  ;;  %3836 = vmatprep.subr.bf16.mxu1 %v9251_v58  ;;  %v9261_v1 = vld [vmem:[#allocation76_spill] sm:$0xff]  ;;  %v9262_v58 = vld [vmem:[#allocation77_spill] sm:$0xff] }
 0x8c9   : > { %3796 = vmatpush1.bf16.msra.mxu0 %v9252_v18  ;;  %3837 = vmatpush1.bf16.msra.mxu1 %v9253_v37  ;;  %v9263_v18 = vld [vmem:[#allocation78_spill] sm:$0xff]  ;;  %v9264_v37 = vld [vmem:[#allocation79_spill] sm:$0xff] }
 0x8ca   : > { %3797 = vmatprep.subr.bf16.mxu0 %v9254_v17  ;;  %3838 = vmatprep.subr.bf16.mxu1 %v9255_v15  ;;  %v9265_v17 = vld [vmem:[#allocation80_spill] sm:$0xff]  ;;  %v9266_v15 = vld [vmem:[#allocation81_spill] sm:$0xff] }
 0x8cd   : > { %3798 = vmatpush1.bf16.msra.mxu0 %v9256_v59  ;;  %3839 = vmatpush1.bf16.msra.mxu1 %v9257_v26  ;;  %v9267_v59 = vld [vmem:[#allocation82_spill] sm:$0xff]  ;;  %v9268_v26 = vld [vmem:[#allocation83_spill] sm:$0xff] }
 0x8ce   : > { %3799 = vmatprep.subr.bf16.mxu0 %v9258_v4  ;;  %3840 = vmatprep.subr.bf16.mxu1 %v9259_v57  ;;  %v9269_v4 = vld [vmem:[#allocation84_spill] sm:$0xff]  ;;  %v9270_v57 = vld [vmem:[#allocation85_spill] sm:$0xff] }
 0x8d1   : > { %3800 = vmatpush1.bf16.msra.mxu0 %v9260_v7  ;;  %3841 = vmatpush1.bf16.msra.mxu1 %v9261_v1  ;;  %v9271_v7 = vld [vmem:[#allocation86_spill] sm:$0xff]  ;;  %v9272_v1 = vld [vmem:[#allocation87_spill] sm:$0xff] }
 0x8d2   : > { %3801 = vmatprep.subr.bf16.mxu0 %v9262_v58  ;;  %3842 = vmatprep.subr.bf16.mxu1 %v9263_v18  ;;  %v9273_v58 = vld [vmem:[#allocation88_spill] sm:$0xff]  ;;  %v9274_v18 = vld [vmem:[#allocation89_spill] sm:$0xff] }
 0x8d5   : > { %3802 = vmatpush1.bf16.msra.mxu0 %v9264_v37  ;;  %3843 = vmatpush1.bf16.msra.mxu1 %v9265_v17  ;;  %v9275_v37 = vld [vmem:[#allocation90_spill] sm:$0xff]  ;;  %v9276_v17 = vld [vmem:[#allocation91_spill] sm:$0xff] }
 0x8d6   : > { %3803 = vmatprep.subr.bf16.mxu0 %v9266_v15  ;;  %3844 = vmatprep.subr.bf16.mxu1 %v9267_v59  ;;  %v9277_v15 = vld [vmem:[#allocation92_spill] sm:$0xff]  ;;  %v9278_v59 = vld [vmem:[#allocation93_spill] sm:$0xff] }
 0x8d9   : > { %3804 = vmatpush1.bf16.msra.mxu0 %v9268_v26  ;;  %3845 = vmatpush1.bf16.msra.mxu1 %v9269_v4  ;;  %v9279_v26 = vld [vmem:[#allocation94_spill] sm:$0xff] }
 0x8da   : > { %3805 = vmatprep.subr.bf16.mxu0 %v9270_v57  ;;  %3846 = vmatprep.subr.bf16.mxu1 %v9271_v7 }
 0x8dd   : > { %3806 = vmatpush1.bf16.msra.mxu0 %v9272_v1  ;;  %3847 = vmatpush1.bf16.msra.mxu1 %v9273_v58 }
 0x8de   : > { %3807 = vmatprep.subr.bf16.mxu0 %v9274_v18  ;;  %3848 = vmatprep.subr.bf16.mxu1 %v9275_v37 }
 0x8e1   : > { %3808 = vmatpush1.bf16.msra.mxu0 %v9276_v17  ;;  %3849 = vmatpush1.bf16.msra.mxu1 %v9277_v15 }
 0x8e2   : > { %3859 = vmatprep.subr.bf16.mxu0 %v9278_v59  ;;  %3900 = vmatprep.subr.bf16.mxu1 %v9279_v26 }
 0x937   : > { %v3553_v4 = vpop.f32.mrb[48].mxu0  ;;  %v3594_v57 = vpop.f32.mrb[48].mxu1 }
 0x938   : > { %v3693_v21 = vrot.slane %v3594_v57, 6  ;;  %v3555_v7 = vpop.f32.mrb[49].mxu0  ;;  %v3596_v43 = vpop.f32.mrb[49].mxu1 }
 0x939   : > { %v3694_v1 = vrot.slane %v3596_v43, 6  ;;  %v3557_v28 = vpop.f32.mrb[50].mxu0  ;;  %v3598_v58 = vpop.f32.mrb[50].mxu1  ;;  %v3755_v43 = vrot.slane %v7722_v2, 6 }
 0x93a   : > { %v3709_v18 = vadd.f32 %v3693_v21, %v9280_v22  ;;  %v3558_v62 = vpop.f32.mrb[51].mxu0  ;;  %v3599_v37 = vpop.f32.mrb[51].mxu1  ;;  %v3756_v58 = vrot.slane %v7724_v48, 6  ;;  %v3691_v22 = vrot.slane %v3553_v4, 6 }
 0x93b   : > { %v3710_v17 = vadd.f32 %v3694_v1, %v9281_v41  ;;  %v3692_v1 = vrot.slane %v3555_v7, 6 }
 0x93c   : > { %v5061_v44 = vmul.f32 -1.442695, %v3709_v18  ;;  %v9282_v18 = vld [vmem:[#allocation160_spill] sm:$0xff] }
 0x93d   : > { %v5062_v15 = vmul.f32 -1.442695, %v3710_v17  ;;  %v3707_v17 = vadd.f32 %v3691_v22, %v9282_v18 }
 0x93e   : > { %5440 = vpow2.f32 %v5061_v44  ;;  %v9283_v44 = vld [vmem:[#allocation162_spill] sm:$0xff] }
 0x93f   : > { %5442 = vpow2.f32 %v5062_v15  ;;  %v3708_v15 = vadd.f32 %v3692_v1, %v9283_v44  ;;  %v5059_v41 = vmul.f32 -1.442695, %v3707_v17  ;;  %v9284_v1 = vld [vmem:[#allocation164_spill] sm:$0xff] }
 0x948   : > { %v5441_v59 = vpop.eup %5440 }
 0x949   : > { %v3735_v26 = vadd.f32 1.0, %v5441_v59  ;;  %v5443_v23 = vpop.eup %5442  ;;  %v5060_v59 = vmul.f32 -1.442695, %v3708_v15  ;;  %v9285_v15 = vld [vmem:[#allocation165_spill] sm:$0xff] }
 0x94a   : > { %v3736_v57 = vadd.f32 1.0, %v5443_v23 }
 0x94b   : > { %5444 = vrcp.f32 %v3735_v26 }
 0x94c   : > { %5446 = vrcp.f32 %v3736_v57 }
 0x94d   : > { %5448 = vpow2.f32 %v5059_v41 }
 0x94e   : > { %5450 = vpow2.f32 %v5060_v59 }
 0x955   : > { %v5445_v28 = vpop.eup %5444 }
 0x956   : > { %v3759_v21 = vmul.f32 %v5445_v28, %v3755_v43  ;;  %v5447_v62 = vpop.eup %5446 }
 0x957   : > { %v3760_v37 = vmul.f32 %v5447_v62, %v3756_v58  ;;  %v5449_v23 = vpop.eup %5448 }
 0x958   : > { %v5451_v26 = vpop.eup %5450  ;;  %v3733_v57 = vadd.f32 1.0, %v5449_v23  ;;  %v9286_v23 = vld [vmem:[#allocation166_spill] sm:$0xff] }
 0x959   : > { %v3734_v2 = vadd.f32 1.0, %v5451_v26 }
 0x95a   : > { %5452 = vrcp.f32 %v3733_v57 }
 0x95b   : > { %5454 = vrcp.f32 %v3734_v2 }
 0x977   : > { %v3635_v45 = vpop.f32.mrb[52].mxu0  ;;  %v3676_v29 = vpop.f32.mrb[52].mxu1 }
 0x978   : > { %v3695_v48 = vrot.slane %v3635_v45, 6  ;;  %v3697_v43 = vrot.slane %v3676_v29, 6  ;;  %v3637_v28 = vpop.f32.mrb[53].mxu0  ;;  %v3678_v58 = vpop.f32.mrb[53].mxu1 }
 0x979   : > { %v3696_v4 = vrot.slane %v3637_v28, 6  ;;  %v3698_v7 = vrot.slane %v3678_v58, 6  ;;  %v3639_v62 = vpop.f32.mrb[54].mxu0  ;;  %v3680_v22 = vpop.f32.mrb[54].mxu1 }
 0x97a   : > { %v3711_v17 = vadd.f32 %v3695_v48, %v9284_v1  ;;  %v3713_v41 = vadd.f32 %v3697_v43, %v9285_v15  ;;  %v3640_v59 = vpop.f32.mrb[55].mxu0  ;;  %v3681_v44 = vpop.f32.mrb[55].mxu1 }
 0x97b   : > { %v3712_v26 = vadd.f32 %v3696_v4, %v9286_v23  ;;  %v3714_v18 = vadd.f32 %v3698_v7, %v9190_v42  ;;  %v5453_v28 = vpop.eup %5452 }
 0x97c   : > { %v5063_v45 = vmul.f32 -1.442695, %v3711_v17  ;;  %5456 = vtanh.f32 %v3713_v41  ;;  %v5455_v58 = vpop.eup %5454 }
 0x97d   : > { %v5064_v29 = vmul.f32 -1.442695, %v3712_v26  ;;  %5458 = vtanh.f32 %v3714_v18 }
 0x97e   : > { %5460 = vpow2.f32 %v5063_v45 }
 0x97f   : > { %5462 = vpow2.f32 %v5064_v29 }
 0x986   : > { %v5457_v57 = vpop.eup %5456 }
 0x987   : > { %v5459_v62 = vpop.eup %5458  ;;  %v3761_v48 = vmul.f32 %v5457_v57, %v5453_v28  ;;  %v9290_v57 = vld [vmem:[#allocation136_spill] sm:$0xff] }
 0x988   : > { %v5461_v22 = vpop.eup %5460  ;;  %v3762_v43 = vmul.f32 %v5459_v62, %v5455_v58  ;;  %v9289_v58 = vld [vmem:[#allocation135_spill] sm:$0xff]  ;;  %v9291_v62 = vld [vmem:[#allocation137_spill] sm:$0xff] }
 0x989   : > { %v5463_v59 = vpop.eup %5462  ;;  %v3737_v44 = vadd.f32 1.0, %v5461_v22  ;;  %v7880_v2 = vadd.f32 %v3761_v48, %v3759_v21  ;;  %v9292_v48 = vld [vmem:[#allocation138_spill] sm:$0xff]  ;;  %v9293_v22 = vld [vmem:[#allocation139_spill] sm:$0xff] }
 0x98a   : > { %v3738_v4 = vadd.f32 1.0, %v5463_v59  ;;  %v7882_v23 = vadd.f32 %v3762_v43, %v3760_v37  ;;  %v9294_v43 = vld [vmem:[#allocation140_spill] sm:$0xff]  ;;  %v9295_v59 = vld [vmem:[#allocation141_spill] sm:$0xff] }
 0x98b   : > { %5464 = vrcp.f32 %v3737_v44  ;;  %v9296_v44 = vld [vmem:[#allocation142_spill] sm:$0xff] }
 0x98c   : > { %5466 = vtanh.f32 %v7880_v2 }
 0x98d   : > { %5468 = vrcp.f32 %v3738_v4  ;;  %v9297_v4 = vld [vmem:[#allocation143_spill] sm:$0xff] }
 0x98e   : > { %5470 = vtanh.f32 %v7882_v23 }
 0x995   : > { %v5465_v18 = vpop.eup %5464 }
 0x996   : > { %v5467_v7 = vpop.eup %5466 }
 0x997   : > { %v5469_v17 = vpop.eup %5468  ;;  %v7886_v41 = vmul.f32 %v5467_v7, %v5465_v18  ;;  %v9298_v18 = vld [vmem:[#allocation144_spill] sm:$0xff]  ;;  %v9299_v7 = vld [vmem:[#allocation145_spill] sm:$0xff] }
 0x998   : > { %v5471_v26 = vpop.eup %5470 }
 0x999   : > { %9287 = vst [vmem:[#allocation103_spill] sm:$0xff] %v7886_v41  ;;  %v7888_v45 = vmul.f32 %v5471_v26, %v5469_v17  ;;  %v3769_v21 = vpack.c.bf16 %v7886_v41, %v7886_v41  ;;  %v9300_v17 = vld [vmem:[#allocation146_spill] sm:$0xff]  ;;  %v9301_v26 = vld [vmem:[#allocation147_spill] sm:$0xff]  ;;  %v9306_v41 = vld [vmem:[#allocation152_spill] sm:$0xff] }
 0x99b   : > { %9288 = vst [vmem:[#allocation104_spill] sm:$0xff] %v7888_v45  ;;  %v3770_v37 = vpack.c.bf16 %v7888_v45, %v7888_v45  ;;  %v7894_v28 = vrot.slane %v3769_v21, 1  ;;  %v9302_v21 = vld [vmem:[#allocation148_spill] sm:$0xff]  ;;  %v9305_v45 = vld [vmem:[#allocation151_spill] sm:$0xff] }
 0x99d   : > { %v3774_v29 = vrot.slane %v3770_v37, 1  ;;  %v9303_v37 = vld [vmem:[#allocation149_spill] sm:$0xff] }
 0x99f   : > { %3809 = vmatprep.mubr.bf16.mxu0 %v3774_v29  ;;  %3850 = vmatprep.mubr.bf16.mxu1 %v3774_v29 }
 0x9a0   : > { %3810 = vmatmul.mubr.bf16.vlgmr.msra.gmra.mrb[56].mxu0 %v7894_v28  ;;  %3851 = vmatmul.mubr.bf16.vlgmr.msra.gmra.mrb[56].mxu1 %v7894_v28 }
 0x9a1   : > { %3860 = vmatpush1.bf16.msra.mxu0 %v8802_v61  ;;  %3901 = vmatpush1.bf16.msra.mxu1 %v8803_v12 }
 0x9a2   : > { %3891 = vmatprep.mubr.bf16.mxu0 %v3774_v29  ;;  %3932 = vmatprep.mubr.bf16.mxu1 %v3774_v29  ;;  %v9304_v29 = vld [vmem:[#allocation150_spill] sm:$0xff] }
 0x9a3   : > { %3861 = vmatprep.subr.bf16.mxu0 %v8804_v34  ;;  %3902 = vmatprep.subr.bf16.mxu1 %v8805_v0 }
 0x9a5   : > { %3862 = vmatpush1.bf16.msra.mxu0 %v8806_v54  ;;  %3903 = vmatpush1.bf16.msra.mxu1 %v8807_v63 }
 0x9a6   : > { %3863 = vmatprep.subr.bf16.mxu0 %v8808_v49  ;;  %3904 = vmatprep.subr.bf16.mxu1 %v8809_v25 }
 0x9a9   : > { %3864 = vmatpush1.bf16.msra.mxu0 %v8810_v11  ;;  %3905 = vmatpush1.bf16.msra.mxu1 %v8811_v16 }
 0x9aa   : > { %3865 = vmatprep.subr.bf16.mxu0 %v8812_v36  ;;  %3906 = vmatprep.subr.bf16.mxu1 %v8813_v10 }
 0x9ad   : > { %3866 = vmatpush1.bf16.msra.mxu0 %v8902_v30  ;;  %3907 = vmatpush1.bf16.msra.mxu1 %v8903_v47 }
 0x9ae   : > { %3867 = vmatprep.subr.bf16.mxu0 %v8904_v14  ;;  %3908 = vmatprep.subr.bf16.mxu1 %v8905_v53 }
 0x9b1   : > { %3868 = vmatpush1.bf16.msra.mxu0 %v8906_v56  ;;  %3909 = vmatpush1.bf16.msra.mxu1 %v8907_v31 }
 0x9b2   : > { %3869 = vmatprep.subr.bf16.mxu0 %v8908_v27  ;;  %3910 = vmatprep.subr.bf16.mxu1 %v8997_v51 }
 0x9b5   : > { %3870 = vmatpush1.bf16.msra.mxu0 %v8998_v55  ;;  %3911 = vmatpush1.bf16.msra.mxu1 %v8999_v3 }
 0x9b6   : > { %3871 = vmatprep.subr.bf16.mxu0 %v9000_v40  ;;  %3912 = vmatprep.subr.bf16.mxu1 %v9001_v52 }
 0x9b9   : > { %3872 = vmatpush1.bf16.msra.mxu0 %v9002_v5  ;;  %3913 = vmatpush1.bf16.msra.mxu1 %v9003_v60 }
 0x9ba   : > { %3873 = vmatprep.subr.bf16.mxu0 %v8916_v38  ;;  %3914 = vmatprep.subr.bf16.mxu1 %v8917_v50 }
 0x9bd   : > { %3874 = vmatpush1.bf16.msra.mxu0 %v8918_v46  ;;  %3915 = vmatpush1.bf16.msra.mxu1 %v9004_v19 }
 0x9be   : > { %3875 = vmatprep.subr.bf16.mxu0 %v8920_v39  ;;  %3916 = vmatprep.subr.bf16.mxu1 %v8921_v6 }
 0x9c1   : > { %3876 = vmatpush1.bf16.msra.mxu0 %v8922_v8  ;;  %3917 = vmatpush1.bf16.msra.mxu1 %v8923_v9 }
 0x9c2   : > { %3877 = vmatprep.subr.bf16.mxu0 %v8924_v33  ;;  %3918 = vmatprep.subr.bf16.mxu1 %v8925_v24 }
 0x9c5   : > { %3878 = vmatpush1.bf16.msra.mxu0 %v8926_v32  ;;  %3919 = vmatpush1.bf16.msra.mxu1 %v9092_v13 }
 0x9c6   : > { %3879 = vmatprep.subr.bf16.mxu0 %v9093_v20  ;;  %3920 = vmatprep.subr.bf16.mxu1 %v9094_v35 }
 0x9c9   : > { %3880 = vmatpush1.bf16.msra.mxu0 %v9289_v58  ;;  %3921 = vmatpush1.bf16.msra.mxu1 %v9290_v57 }
 0x9ca   : > { %3881 = vmatprep.subr.bf16.mxu0 %v9291_v62  ;;  %3922 = vmatprep.subr.bf16.mxu1 %v9292_v48  ;;  %v9378_v62 = vld [vmem:[#allocation163_spill] sm:$0xff] }
 0x9cd   : > { %3882 = vmatpush1.bf16.msra.mxu0 %v9293_v22  ;;  %3923 = vmatpush1.bf16.msra.mxu1 %v9294_v43  ;;  %v9377_v22 = vld [vmem:[#allocation161_spill] sm:$0xff] }
 0x9ce   : > { %3883 = vmatprep.subr.bf16.mxu0 %v9295_v59  ;;  %3924 = vmatprep.subr.bf16.mxu1 %v9296_v44  ;;  %v9307_v44 = vld [vmem:[#allocation153_spill] sm:$0xff] }
 0x9d1   : > { %3884 = vmatpush1.bf16.msra.mxu0 %v9297_v4  ;;  %3925 = vmatpush1.bf16.msra.mxu1 %v9298_v18  ;;  %v9308_v4 = vld [vmem:[#allocation154_spill] sm:$0xff]  ;;  %v9309_v18 = vld [vmem:[#allocation155_spill] sm:$0xff] }
 0x9d2   : > { %3885 = vmatprep.subr.bf16.mxu0 %v9299_v7  ;;  %3926 = vmatprep.subr.bf16.mxu1 %v9300_v17  ;;  %v9310_v7 = vld [vmem:[#allocation156_spill] sm:$0xff]  ;;  %v9311_v17 = vld [vmem:[#allocation29_spill] sm:$0xff] }
 0x9d5   : > { %3886 = vmatpush1.bf16.msra.mxu0 %v9301_v26  ;;  %3927 = vmatpush1.bf16.msra.mxu1 %v9302_v21  ;;  %v9312_v26 = vld [vmem:[#allocation30_spill] sm:$0xff] }
 0x9d6   : > { %3887 = vmatprep.subr.bf16.mxu0 %v9303_v37  ;;  %3928 = vmatprep.subr.bf16.mxu1 %v9304_v29  ;;  %v9313_v29 = vld [vmem:[#allocation31_spill] sm:$0xff]  ;;  %v9322_v37 = vld [vmem:[#allocation40_spill] sm:$0xff] }
 0x9d9   : > { %3888 = vmatpush1.bf16.msra.mxu0 %v9305_v45  ;;  %3929 = vmatpush1.bf16.msra.mxu1 %v9306_v41  ;;  %v9314_v45 = vld [vmem:[#allocation32_spill] sm:$0xff]  ;;  %v9315_v41 = vld [vmem:[#allocation33_spill] sm:$0xff] }
 0x9da   : > { %3889 = vmatprep.subr.bf16.mxu0 %v9307_v44  ;;  %3930 = vmatprep.subr.bf16.mxu1 %v9308_v4  ;;  %v9316_v44 = vld [vmem:[#allocation34_spill] sm:$0xff]  ;;  %v9317_v4 = vld [vmem:[#allocation35_spill] sm:$0xff] }
 0x9dd   : > { %3890 = vmatpush1.bf16.msra.mxu0 %v9309_v18  ;;  %3931 = vmatpush1.bf16.msra.mxu1 %v9310_v7  ;;  %v9318_v18 = vld [vmem:[#allocation36_spill] sm:$0xff]  ;;  %v9319_v7 = vld [vmem:[#allocation37_spill] sm:$0xff] }
 0x9de   : > { %4035 = vmatprep.subr.bf16.mxu0 %v9311_v17  ;;  %4076 = vmatprep.subr.bf16.mxu1 %v9312_v26  ;;  %v9320_v17 = vld [vmem:[#allocation38_spill] sm:$0xff]  ;;  %v9321_v26 = vld [vmem:[#allocation39_spill] sm:$0xff] }
 0x9e0   : > { %3892 = vmatmul.mubr.bf16.vlgmr.msra.gmra.mrb[60].mxu0 %v7894_v28  ;;  %3933 = vmatmul.mubr.bf16.vlgmr.msra.gmra.mrb[60].mxu1 %v7894_v28  ;;  %v9323_v28 = vld [vmem:[#allocation41_spill] sm:$0xff] }
 0x9e1   : > { %4036 = vmatpush1.bf16.msra.mxu0 %v9313_v29  ;;  %4077 = vmatpush1.bf16.msra.mxu1 %v9314_v45  ;;  %v9324_v29 = vld [vmem:[#allocation42_spill] sm:$0xff]  ;;  %v9325_v45 = vld [vmem:[#allocation43_spill] sm:$0xff] }
 0x9e2   : > { %4037 = vmatprep.subr.bf16.mxu0 %v9315_v41  ;;  %4078 = vmatprep.subr.bf16.mxu1 %v9316_v44  ;;  %v9326_v41 = vld [vmem:[#allocation44_spill] sm:$0xff]  ;;  %v9327_v44 = vld [vmem:[#allocation45_spill] sm:$0xff] }
 0x9e5   : > { %4038 = vmatpush1.bf16.msra.mxu0 %v9317_v4  ;;  %4079 = vmatpush1.bf16.msra.mxu1 %v9318_v18  ;;  %v9328_v4 = vld [vmem:[#allocation46_spill] sm:$0xff]  ;;  %v9329_v18 = vld [vmem:[#allocation47_spill] sm:$0xff] }
 0x9e6   : > { %4039 = vmatprep.subr.bf16.mxu0 %v9319_v7  ;;  %4080 = vmatprep.subr.bf16.mxu1 %v9320_v17  ;;  %v9330_v7 = vld [vmem:[#allocation48_spill] sm:$0xff]  ;;  %v9331_v17 = vld [vmem:[#allocation49_spill] sm:$0xff] }
 0x9e9   : > { %4040 = vmatpush1.bf16.msra.mxu0 %v9321_v26  ;;  %4081 = vmatpush1.bf16.msra.mxu1 %v9322_v37  ;;  %v9332_v26 = vld [vmem:[#allocation50_spill] sm:$0xff]  ;;  %v9333_v37 = vld [vmem:[#allocation51_spill] sm:$0xff] }
 0x9ea   : > { %4041 = vmatprep.subr.bf16.mxu0 %v9323_v28  ;;  %4082 = vmatprep.subr.bf16.mxu1 %v9324_v29  ;;  %v9334_v28 = vld [vmem:[#allocation52_spill] sm:$0xff]  ;;  %v9335_v29 = vld [vmem:[#allocation53_spill] sm:$0xff] }
 0x9ed   : > { %4042 = vmatpush1.bf16.msra.mxu0 %v9325_v45  ;;  %4083 = vmatpush1.bf16.msra.mxu1 %v9326_v41  ;;  %v9336_v45 = vld [vmem:[#allocation54_spill] sm:$0xff]  ;;  %v9337_v41 = vld [vmem:[#allocation55_spill] sm:$0xff] }
 0x9ee   : > { %4043 = vmatprep.subr.bf16.mxu0 %v9327_v44  ;;  %4084 = vmatprep.subr.bf16.mxu1 %v9328_v4  ;;  %v9338_v44 = vld [vmem:[#allocation56_spill] sm:$0xff]  ;;  %v9339_v4 = vld [vmem:[#allocation57_spill] sm:$0xff] }
 0x9f1   : > { %4044 = vmatpush1.bf16.msra.mxu0 %v9329_v18  ;;  %4085 = vmatpush1.bf16.msra.mxu1 %v9330_v7  ;;  %v9340_v18 = vld [vmem:[#allocation58_spill] sm:$0xff]  ;;  %v9341_v7 = vld [vmem:[#allocation59_spill] sm:$0xff] }
 0x9f2   : > { %4045 = vmatprep.subr.bf16.mxu0 %v9331_v17  ;;  %4086 = vmatprep.subr.bf16.mxu1 %v9332_v26  ;;  %v9342_v17 = vld [vmem:[#allocation60_spill] sm:$0xff]  ;;  %v9343_v26 = vld [vmem:[#allocation61_spill] sm:$0xff] }
 0x9f5   : > { %4046 = vmatpush1.bf16.msra.mxu0 %v9333_v37  ;;  %4087 = vmatpush1.bf16.msra.mxu1 %v9334_v28  ;;  %v9344_v37 = vld [vmem:[#allocation62_spill] sm:$0xff]  ;;  %v9345_v28 = vld [vmem:[#allocation63_spill] sm:$0xff] }
 0x9f6   : > { %4047 = vmatprep.subr.bf16.mxu0 %v9335_v29  ;;  %4088 = vmatprep.subr.bf16.mxu1 %v9336_v45  ;;  %v9346_v29 = vld [vmem:[#allocation64_spill] sm:$0xff]  ;;  %v9347_v45 = vld [vmem:[#allocation65_spill] sm:$0xff] }
 0x9f9   : > { %4048 = vmatpush1.bf16.msra.mxu0 %v9337_v41  ;;  %4089 = vmatpush1.bf16.msra.mxu1 %v9338_v44  ;;  %v9348_v41 = vld [vmem:[#allocation66_spill] sm:$0xff]  ;;  %v9349_v44 = vld [vmem:[#allocation67_spill] sm:$0xff] }
 0x9fa   : > { %4049 = vmatprep.subr.bf16.mxu0 %v9339_v4  ;;  %4090 = vmatprep.subr.bf16.mxu1 %v9340_v18  ;;  %v9350_v4 = vld [vmem:[#allocation68_spill] sm:$0xff]  ;;  %v9351_v18 = vld [vmem:[#allocation69_spill] sm:$0xff] }
 0x9fd   : > { %4050 = vmatpush1.bf16.msra.mxu0 %v9341_v7  ;;  %4091 = vmatpush1.bf16.msra.mxu1 %v9342_v17  ;;  %v9352_v7 = vld [vmem:[#allocation70_spill] sm:$0xff]  ;;  %v9353_v17 = vld [vmem:[#allocation71_spill] sm:$0xff] }
 0x9fe   : > { %4051 = vmatprep.subr.bf16.mxu0 %v9343_v26  ;;  %4092 = vmatprep.subr.bf16.mxu1 %v9344_v37  ;;  %v9354_v26 = vld [vmem:[#allocation72_spill] sm:$0xff]  ;;  %v9355_v37 = vld [vmem:[#allocation73_spill] sm:$0xff] }
 0xa01   : > { %4052 = vmatpush1.bf16.msra.mxu0 %v9345_v28  ;;  %4093 = vmatpush1.bf16.msra.mxu1 %v9346_v29  ;;  %v9356_v28 = vld [vmem:[#allocation74_spill] sm:$0xff]  ;;  %v9357_v29 = vld [vmem:[#allocation75_spill] sm:$0xff] }
 0xa02   : > { %4053 = vmatprep.subr.bf16.mxu0 %v9347_v45  ;;  %4094 = vmatprep.subr.bf16.mxu1 %v9348_v41  ;;  %v9358_v45 = vld [vmem:[#allocation76_spill] sm:$0xff]  ;;  %v9359_v41 = vld [vmem:[#allocation77_spill] sm:$0xff] }
 0xa05   : > { %4054 = vmatpush1.bf16.msra.mxu0 %v9349_v44  ;;  %4095 = vmatpush1.bf16.msra.mxu1 %v9350_v4  ;;  %v9360_v44 = vld [vmem:[#allocation78_spill] sm:$0xff]  ;;  %v9361_v4 = vld [vmem:[#allocation79_spill] sm:$0xff] }
 0xa06   : > { %4055 = vmatprep.subr.bf16.mxu0 %v9351_v18  ;;  %4096 = vmatprep.subr.bf16.mxu1 %v9352_v7  ;;  %v9362_v18 = vld [vmem:[#allocation80_spill] sm:$0xff]  ;;  %v9363_v7 = vld [vmem:[#allocation81_spill] sm:$0xff] }
 0xa09   : > { %4056 = vmatpush1.bf16.msra.mxu0 %v9353_v17  ;;  %4097 = vmatpush1.bf16.msra.mxu1 %v9354_v26  ;;  %v9364_v17 = vld [vmem:[#allocation82_spill] sm:$0xff]  ;;  %v9365_v26 = vld [vmem:[#allocation83_spill] sm:$0xff] }
 0xa0a   : > { %4057 = vmatprep.subr.bf16.mxu0 %v9355_v37  ;;  %4098 = vmatprep.subr.bf16.mxu1 %v9356_v28  ;;  %v9366_v37 = vld [vmem:[#allocation84_spill] sm:$0xff]  ;;  %v9367_v28 = vld [vmem:[#allocation85_spill] sm:$0xff] }
 0xa0d   : > { %4058 = vmatpush1.bf16.msra.mxu0 %v9357_v29  ;;  %4099 = vmatpush1.bf16.msra.mxu1 %v9358_v45  ;;  %v9368_v29 = vld [vmem:[#allocation86_spill] sm:$0xff]  ;;  %v9369_v45 = vld [vmem:[#allocation87_spill] sm:$0xff] }
 0xa0e   : > { %4059 = vmatprep.subr.bf16.mxu0 %v9359_v41  ;;  %4100 = vmatprep.subr.bf16.mxu1 %v9360_v44  ;;  %v9370_v41 = vld [vmem:[#allocation88_spill] sm:$0xff]  ;;  %v9371_v44 = vld [vmem:[#allocation89_spill] sm:$0xff] }
 0xa11   : > { %4060 = vmatpush1.bf16.msra.mxu0 %v9361_v4  ;;  %4101 = vmatpush1.bf16.msra.mxu1 %v9362_v18  ;;  %v9372_v4 = vld [vmem:[#allocation90_spill] sm:$0xff]  ;;  %v9373_v18 = vld [vmem:[#allocation91_spill] sm:$0xff] }
 0xa12   : > { %4061 = vmatprep.subr.bf16.mxu0 %v9363_v7  ;;  %4102 = vmatprep.subr.bf16.mxu1 %v9364_v17  ;;  %v9374_v7 = vld [vmem:[#allocation92_spill] sm:$0xff]  ;;  %v9375_v17 = vld [vmem:[#allocation93_spill] sm:$0xff] }
 0xa15   : > { %4062 = vmatpush1.bf16.msra.mxu0 %v9365_v26  ;;  %4103 = vmatpush1.bf16.msra.mxu1 %v9366_v37  ;;  %v9376_v26 = vld [vmem:[#allocation94_spill] sm:$0xff] }
 0xa16   : > { %4063 = vmatprep.subr.bf16.mxu0 %v9367_v28  ;;  %4104 = vmatprep.subr.bf16.mxu1 %v9368_v29 }
 0xa19   : > { %4064 = vmatpush1.bf16.msra.mxu0 %v9369_v45  ;;  %4105 = vmatpush1.bf16.msra.mxu1 %v9370_v41 }
 0xa1a   : > { %4065 = vmatprep.subr.bf16.mxu0 %v9371_v44  ;;  %4106 = vmatprep.subr.bf16.mxu1 %v9372_v4 }
 0xa1d   : > { %4066 = vmatpush1.bf16.msra.mxu0 %v9373_v18  ;;  %4107 = vmatpush1.bf16.msra.mxu1 %v9374_v7 }
 0xa1e   : > { %4117 = vmatprep.subr.bf16.mxu0 %v9375_v17  ;;  %4158 = vmatprep.subr.bf16.mxu1 %v9376_v26 }
 0xa73   : > { %v3811_v37 = vpop.f32.mrb[56].mxu0  ;;  %v3852_v28 = vpop.f32.mrb[56].mxu1 }
 0xa74   : > { %v3951_v21 = vrot.slane %v3852_v28, 4  ;;  %v3813_v29 = vpop.f32.mrb[57].mxu0  ;;  %v3854_v59 = vpop.f32.mrb[57].mxu1 }
 0xa75   : > { %v3952_v45 = vrot.slane %v3854_v59, 4  ;;  %v3815_v43 = vpop.f32.mrb[58].mxu0  ;;  %v3856_v41 = vpop.f32.mrb[58].mxu1  ;;  %v4013_v59 = vrot.slane %v7880_v2, 6 }
 0xa76   : > { %v3967_v44 = vadd.f32 %v3951_v21, %v9377_v22  ;;  %v3816_v48 = vpop.f32.mrb[59].mxu0  ;;  %v3857_v4 = vpop.f32.mrb[59].mxu1  ;;  %v4014_v41 = vrot.slane %v7882_v23, 6  ;;  %v3949_v22 = vrot.slane %v3811_v37, 4 }
 0xa77   : > { %v3968_v18 = vadd.f32 %v3952_v45, %v9378_v62  ;;  %v3950_v45 = vrot.slane %v3813_v29, 4 }
 0xa78   : > { %v5067_v57 = vmul.f32 -1.442695, %v3967_v44  ;;  %v9379_v44 = vld [vmem:[#allocation160_spill] sm:$0xff] }
 0xa79   : > { %v5068_v7 = vmul.f32 -1.442695, %v3968_v18  ;;  %v3965_v18 = vadd.f32 %v3949_v22, %v9379_v44 }
 0xa7a   : > { %5472 = vpow2.f32 %v5067_v57  ;;  %v9380_v57 = vld [vmem:[#allocation162_spill] sm:$0xff] }
 0xa7b   : > { %5474 = vpow2.f32 %v5068_v7  ;;  %v3966_v7 = vadd.f32 %v3950_v45, %v9380_v57  ;;  %v5065_v62 = vmul.f32 -1.442695, %v3965_v18 }
 0xa84   : > { %v5473_v17 = vpop.eup %5472 }
 0xa85   : > { %v3993_v26 = vadd.f32 1.0, %v5473_v17  ;;  %v5475_v58 = vpop.eup %5474  ;;  %v5066_v17 = vmul.f32 -1.442695, %v3966_v7 }
 0xa86   : > { %v3994_v28 = vadd.f32 1.0, %v5475_v58 }
 0xa87   : > { %5476 = vrcp.f32 %v3993_v26 }
 0xa88   : > { %5478 = vrcp.f32 %v3994_v28 }
 0xa89   : > { %5480 = vpow2.f32 %v5065_v62 }
 0xa8a   : > { %5482 = vpow2.f32 %v5066_v17  ;;  %v9381_v17 = vld [vmem:[#allocation166_spill] sm:$0xff] }
 0xa91   : > { %v5477_v43 = vpop.eup %5476 }
 0xa92   : > { %v4017_v21 = vmul.f32 %v5477_v43, %v4013_v59  ;;  %v5479_v48 = vpop.eup %5478 }
 0xa93   : > { %v4018_v4 = vmul.f32 %v5479_v48, %v4014_v41  ;;  %v5481_v58 = vpop.eup %5480 }
 0xa94   : > { %v5483_v26 = vpop.eup %5482  ;;  %v3991_v28 = vadd.f32 1.0, %v5481_v58 }
 0xa95   : > { %v3992_v2 = vadd.f32 1.0, %v5483_v26 }
 0xa96   : > { %5484 = vrcp.f32 %v3991_v28 }
 0xa97   : > { %5486 = vrcp.f32 %v3992_v2 }
 0xab3   : > { %v3893_v35 = vpop.f32.mrb[60].mxu0  ;;  %v3934_v20 = vpop.f32.mrb[60].mxu1 }
 0xab4   : > { %v3953_v23 = vrot.slane %v3893_v35, 4  ;;  %v3955_v59 = vrot.slane %v3934_v20, 4  ;;  %v3895_v43 = vpop.f32.mrb[61].mxu0  ;;  %v3936_v41 = vpop.f32.mrb[61].mxu1 }
 0xab5   : > { %v3954_v37 = vrot.slane %v3895_v43, 4  ;;  %v3956_v29 = vrot.slane %v3936_v41, 4  ;;  %v3897_v48 = vpop.f32.mrb[62].mxu0  ;;  %v3938_v22 = vpop.f32.mrb[62].mxu1 }
 0xab6   : > { %v3969_v45 = vadd.f32 %v3953_v23, %v9284_v1  ;;  %v3971_v62 = vadd.f32 %v3955_v59, %v9285_v15  ;;  %v3898_v18 = vpop.f32.mrb[63].mxu0  ;;  %v3939_v7 = vpop.f32.mrb[63].mxu1 }
 0xab7   : > { %v3970_v58 = vadd.f32 %v3954_v37, %v9381_v17  ;;  %v3972_v26 = vadd.f32 %v3956_v29, %v9190_v42  ;;  %v5485_v43 = vpop.eup %5484 }
 0xab8   : > { %v5069_v35 = vmul.f32 -1.442695, %v3969_v45  ;;  %5488 = vtanh.f32 %v3971_v62  ;;  %v5487_v41 = vpop.eup %5486 }
 0xab9   : > { %v5070_v20 = vmul.f32 -1.442695, %v3970_v58  ;;  %5490 = vtanh.f32 %v3972_v26 }
 0xaba   : > { %5492 = vpow2.f32 %v5069_v35 }
 0xabb   : > { %5494 = vpow2.f32 %v5070_v20 }
 0xac2   : > { %v5489_v28 = vpop.eup %5488 }
 0xac3   : > { %v5491_v48 = vpop.eup %5490  ;;  %v4019_v23 = vmul.f32 %v5489_v28, %v5485_v43 }
 0xac4   : > { %v5493_v22 = vpop.eup %5492  ;;  %v4020_v59 = vmul.f32 %v5491_v48, %v5487_v41 }
 0xac5   : > { %v5495_v18 = vpop.eup %5494  ;;  %v3995_v7 = vadd.f32 1.0, %v5493_v22  ;;  %v8038_v2 = vadd.f32 %v4019_v23, %v4017_v21 }
 0xac6   : > { %v3996_v37 = vadd.f32 1.0, %v5495_v18  ;;  %v8040_v17 = vadd.f32 %v4020_v59, %v4018_v4 }
 0xac7   : > { %5496 = vrcp.f32 %v3995_v7  ;;  %v4271_v18 = vrot.slane %v8038_v2, 6 }
 0xac8   : > { %5498 = vtanh.f32 %v8038_v2 }
 0xac9   : > { %5500 = vrcp.f32 %v3996_v37  ;;  %v4272_v37 = vrot.slane %v8040_v17, 6 }
 0xaca   : > { %5502 = vtanh.f32 %v8040_v17 }
 0xad1   : > { %v5497_v29 = vpop.eup %5496 }
 0xad2   : > { %v5499_v45 = vpop.eup %5498 }
 0xad3   : > { %v5501_v62 = vpop.eup %5500  ;;  %v8044_v58 = vmul.f32 %v5499_v45, %v5497_v29 }
 0xad4   : > { %v5503_v26 = vpop.eup %5502 }
 0xad5   : > { %v8046_v35 = vmul.f32 %v5503_v26, %v5501_v62  ;;  %v4027_v21 = vpack.c.bf16 %v8044_v58, %v8044_v58 }
 0xad7   : > { %v4028_v4 = vpack.c.bf16 %v8046_v35, %v8046_v35  ;;  %v8052_v43 = vrot.slane %v4027_v21, 2 }
 0xad9   : > { %v4032_v20 = vrot.slane %v4028_v4, 2 }
 0xadb   : > { %4067 = vmatprep.mubr.bf16.mxu0 %v4032_v20  ;;  %4108 = vmatprep.mubr.bf16.mxu1 %v4032_v20 }
 0xadc   : > { %4068 = vmatmul.mubr.bf16.vlgmr.msra.gmra.mrb[64].mxu0 %v8052_v43  ;;  %4109 = vmatmul.mubr.bf16.vlgmr.msra.gmra.mrb[64].mxu1 %v8052_v43 }
 0xadd   : > { %4118 = vmatpush1.bf16.msra.mxu0 %v8802_v61  ;;  %4159 = vmatpush1.bf16.msra.mxu1 %v8803_v12  ;;  %v9382_v61 = vld [vmem:[#allocation133_spill] sm:$0xff]  ;;  %v9383_v12 = vld [vmem:[#allocation134_spill] sm:$0xff] }
 0xade   : > { %4149 = vmatprep.mubr.bf16.mxu0 %v4032_v20  ;;  %4190 = vmatprep.mubr.bf16.mxu1 %v4032_v20 }
 0xadf   : > { %4119 = vmatprep.subr.bf16.mxu0 %v8804_v34  ;;  %4160 = vmatprep.subr.bf16.mxu1 %v8805_v0  ;;  %v9384_v34 = vld [vmem:[#allocation135_spill] sm:$0xff]  ;;  %v9385_v0 = vld [vmem:[#allocation136_spill] sm:$0xff] }
 0xae1   : > { %4120 = vmatpush1.bf16.msra.mxu0 %v8806_v54  ;;  %4161 = vmatpush1.bf16.msra.mxu1 %v8807_v63  ;;  %v9386_v54 = vld [vmem:[#allocation137_spill] sm:$0xff]  ;;  %v9387_v63 = vld [vmem:[#allocation138_spill] sm:$0xff] }
 0xae2   : > { %4121 = vmatprep.subr.bf16.mxu0 %v8808_v49  ;;  %4162 = vmatprep.subr.bf16.mxu1 %v8809_v25  ;;  %v9388_v49 = vld [vmem:[#allocation139_spill] sm:$0xff]  ;;  %v9389_v25 = vld [vmem:[#allocation140_spill] sm:$0xff] }
 0xae5   : > { %4122 = vmatpush1.bf16.msra.mxu0 %v8810_v11  ;;  %4163 = vmatpush1.bf16.msra.mxu1 %v8811_v16  ;;  %v9390_v11 = vld [vmem:[#allocation141_spill] sm:$0xff]  ;;  %v9391_v16 = vld [vmem:[#allocation142_spill] sm:$0xff] }
 0xae6   : > { %4123 = vmatprep.subr.bf16.mxu0 %v8812_v36  ;;  %4164 = vmatprep.subr.bf16.mxu1 %v8813_v10  ;;  %v9392_v36 = vld [vmem:[#allocation143_spill] sm:$0xff]  ;;  %v9393_v10 = vld [vmem:[#allocation144_spill] sm:$0xff] }
 0xae9   : > { %4124 = vmatpush1.bf16.msra.mxu0 %v8902_v30  ;;  %4165 = vmatpush1.bf16.msra.mxu1 %v8903_v47  ;;  %v9395_v30 = vld [vmem:[#allocation146_spill] sm:$0xff]  ;;  %v9396_v47 = vld [vmem:[#allocation147_spill] sm:$0xff] }
 0xaea   : > { %4125 = vmatprep.subr.bf16.mxu0 %v8904_v14  ;;  %4166 = vmatprep.subr.bf16.mxu1 %v8905_v53  ;;  %v9397_v14 = vld [vmem:[#allocation148_spill] sm:$0xff]  ;;  %v9398_v53 = vld [vmem:[#allocation149_spill] sm:$0xff] }
 0xaed   : > { %4126 = vmatpush1.bf16.msra.mxu0 %v8906_v56  ;;  %4167 = vmatpush1.bf16.msra.mxu1 %v8907_v31  ;;  %v9399_v56 = vld [vmem:[#allocation150_spill] sm:$0xff]  ;;  %v9400_v31 = vld [vmem:[#allocation151_spill] sm:$0xff] }
 0xaee   : > { %4127 = vmatprep.subr.bf16.mxu0 %v8908_v27  ;;  %4168 = vmatprep.subr.bf16.mxu1 %v8997_v51  ;;  %v9401_v27 = vld [vmem:[#allocation152_spill] sm:$0xff] }
 0xaf1   : > { %4128 = vmatpush1.bf16.msra.mxu0 %v8998_v55  ;;  %4169 = vmatpush1.bf16.msra.mxu1 %v8999_v3 }
 0xaf2   : > { %4129 = vmatprep.subr.bf16.mxu0 %v9000_v40  ;;  %4170 = vmatprep.subr.bf16.mxu1 %v9001_v52  ;;  %v9406_v40 = vld [vmem:[#allocation161_spill] sm:$0xff] }
 0xaf5   : > { %4130 = vmatpush1.bf16.msra.mxu0 %v9002_v5  ;;  %4171 = vmatpush1.bf16.msra.mxu1 %v9003_v60 }
 0xaf6   : > { %4131 = vmatprep.subr.bf16.mxu0 %v8916_v38  ;;  %4172 = vmatprep.subr.bf16.mxu1 %v8917_v50 }
 0xaf9   : > { %4132 = vmatpush1.bf16.msra.mxu0 %v8918_v46  ;;  %4173 = vmatpush1.bf16.msra.mxu1 %v9004_v19  ;;  %v9394_v46 = vld [vmem:[#allocation145_spill] sm:$0xff]  ;;  %v9407_v19 = vld [vmem:[#allocation163_spill] sm:$0xff] }
 0xafa   : > { %4133 = vmatprep.subr.bf16.mxu0 %v8920_v39  ;;  %4174 = vmatprep.subr.bf16.mxu1 %v8921_v6  ;;  %v9402_v39 = vld [vmem:[#allocation153_spill] sm:$0xff]  ;;  %v9403_v6 = vld [vmem:[#allocation154_spill] sm:$0xff] }
 0xafd   : > { %4134 = vmatpush1.bf16.msra.mxu0 %v8922_v8  ;;  %4175 = vmatpush1.bf16.msra.mxu1 %v8923_v9  ;;  %v9404_v8 = vld [vmem:[#allocation155_spill] sm:$0xff]  ;;  %v9405_v9 = vld [vmem:[#allocation156_spill] sm:$0xff] }
 0xafe   : > { %4135 = vmatprep.subr.bf16.mxu0 %v8924_v33  ;;  %4176 = vmatprep.subr.bf16.mxu1 %v8925_v24 }
 0xb01   : > { %4136 = vmatpush1.bf16.msra.mxu0 %v8926_v32  ;;  %4177 = vmatpush1.bf16.msra.mxu1 %v9092_v13 }
 0xb02   : > { %4137 = vmatprep.subr.bf16.mxu0 %v9382_v61  ;;  %4178 = vmatprep.subr.bf16.mxu1 %v9383_v12 }
 0xb05   : > { %4138 = vmatpush1.bf16.msra.mxu0 %v9384_v34  ;;  %4179 = vmatpush1.bf16.msra.mxu1 %v9385_v0 }
 0xb06   : > { %4139 = vmatprep.subr.bf16.mxu0 %v9386_v54  ;;  %4180 = vmatprep.subr.bf16.mxu1 %v9387_v63 }
 0xb09   : > { %4140 = vmatpush1.bf16.msra.mxu0 %v9388_v49  ;;  %4181 = vmatpush1.bf16.msra.mxu1 %v9389_v25 }
 0xb0a   : > { %4141 = vmatprep.subr.bf16.mxu0 %v9390_v11  ;;  %4182 = vmatprep.subr.bf16.mxu1 %v9391_v16 }
 0xb0d   : > { %4142 = vmatpush1.bf16.msra.mxu0 %v9392_v36  ;;  %4183 = vmatpush1.bf16.msra.mxu1 %v9393_v10 }
 0xb0e   : > { %4143 = vmatprep.subr.bf16.mxu0 %v9394_v46  ;;  %4184 = vmatprep.subr.bf16.mxu1 %v9395_v30 }
 0xb11   : > { %4144 = vmatpush1.bf16.msra.mxu0 %v9396_v47  ;;  %4185 = vmatpush1.bf16.msra.mxu1 %v9397_v14  ;;  %v9408_v14 = vld [vmem:[#allocation166_spill] sm:$0xff] }
 0xb12   : > { %4145 = vmatprep.subr.bf16.mxu0 %v9398_v53  ;;  %4186 = vmatprep.subr.bf16.mxu1 %v9399_v56 }
 0xb15   : > { %4146 = vmatpush1.bf16.msra.mxu0 %v9400_v31  ;;  %4187 = vmatpush1.bf16.msra.mxu1 %v9401_v27 }
 0xb16   : > { %4147 = vmatprep.subr.bf16.mxu0 %v9402_v39  ;;  %4188 = vmatprep.subr.bf16.mxu1 %v9403_v6  ;;  %v5892_v39 = vmov 1983009808  }
 0xb17   : > { %v4289_v6 = vunpack.c.l.s4 %v5892_v39 }
 0xb19   : > { %4148 = vmatpush1.bf16.msra.mxu0 %v9404_v8  ;;  %4189 = vmatpush1.bf16.msra.mxu1 %v9405_v9 }
 0xb1c   : > { %4150 = vmatmul.mubr.bf16.vlgmr.msra.gmra.mrb[68].mxu0 %v8052_v43  ;;  %4191 = vmatmul.mubr.bf16.vlgmr.msra.gmra.mrb[68].mxu1 %v8052_v43 }
 0xbaf   : > { %v4069_v33 = vpop.f32.mrb[64].mxu0  ;;  %v4110_v24 = vpop.f32.mrb[64].mxu1 }
 0xbb0   : > { %v4209_v32 = vrot.slane %v4110_v24, 2  ;;  %v4071_v38 = vpop.f32.mrb[65].mxu0  ;;  %v4112_v50 = vpop.f32.mrb[65].mxu1  ;;  %v4207_v26 = vrot.slane %v4069_v33, 2  ;;  %v4290_v33 = vunpack.c.0.s8 %v4289_v6 }
 0xbb1   : > { %v4210_v51 = vrot.slane %v4112_v50, 2  ;;  %v4073_v55 = vpop.f32.mrb[66].mxu0  ;;  %v4114_v3 = vpop.f32.mrb[66].mxu1  ;;  %v4208_v21 = vrot.slane %v4071_v38, 2 }
 0xbb2   : > { %v4225_v52 = vadd.f32 %v4209_v32, %v9406_v40  ;;  %v4074_v5 = vpop.f32.mrb[67].mxu0  ;;  %v4115_v60 = vpop.f32.mrb[67].mxu1  ;;  %v4223_v4 = vadd.f32 %v4207_v26, %v9379_v44  ;;  %v9409_v40 = vld [vmem:[#allocation157_spill] sm:$0xff] }
 0xbb3   : > { %v4226_v13 = vadd.f32 %v4210_v51, %v9407_v19  ;;  %v4224_v20 = vadd.f32 %v4208_v21, %v9380_v57  ;;  %v9413_v26 = vld [vmem:[#allocation101_spill] sm:$0xff] (!%p5077_p5) }
 0xbb4   : > { %v5073_v41 = vmul.f32 -1.442695, %v4225_v52  ;;  %v5071_v43 = vmul.f32 -1.442695, %v4223_v4  ;;  %v4293_v52 = vsub.s32 %v4290_v33, %v9409_v40  ;;  %v9414_v4 = vld [vmem:[#allocation96_spill] sm:$0xff] (!%p5077_p5) }
 0xbb5   : > { %v5074_v28 = vmul.f32 -1.442695, %v4226_v13  ;;  %v5072_v61 = vmul.f32 -1.442695, %v4224_v20  ;;  %v9415_v20 = vld [vmem:[#allocation171_spill] sm:$0xff] (!%p5077_p5) }
 0xbb6   : > { %5504 = vpow2.f32 %v5073_v41 }
 0xbb7   : > { %5506 = vpow2.f32 %v5074_v28 }
 0xbc0   : > { %v5505_v48 = vpop.eup %5504 }
 0xbc1   : > { %v4251_v23 = vadd.f32 1.0, %v5505_v48  ;;  %v5507_v22 = vpop.eup %5506 }
 0xbc2   : > { %v4252_v59 = vadd.f32 1.0, %v5507_v22 }
 0xbc3   : > { %5508 = vrcp.f32 %v4251_v23 }
 0xbc4   : > { %5510 = vrcp.f32 %v4252_v59 }
 0xbc5   : > { %5512 = vpow2.f32 %v5071_v43  ;;  %v4317_v43 = vsel (!%p5077_p5), %vm4315_vm4, %v9415_v20, %v9414_v4 }
 0xbc6   : > { %5514 = vpow2.f32 %v5072_v61  ;;  %v9416_v61 = vld [vmem:[#allocation104_spill] sm:$0xff] (!%p5077_p5) }
 0xbcd   : > { %v5509_v7 = vpop.eup %5508 }
 0xbce   : > { %v4275_v29 = vmul.f32 %v5509_v7, %v4271_v18  ;;  %v5511_v45 = vpop.eup %5510 }
 0xbcf   : > { %v4276_v62 = vmul.f32 %v5511_v45, %v4272_v37  ;;  %v5513_v12 = vpop.eup %5512  ;;  %v9410_v37 = vld [vmem:[#allocation95_spill] sm:$0xff] (!%p5077_p5) }
 0xbd0   : > { %v5515_v34 = vpop.eup %5514  ;;  %v4249_v0 = vadd.f32 1.0, %v5513_v12  ;;  %v9417_v12 = vld [vmem:[#allocation102_spill] sm:$0xff] (!%p5077_p5) }
 0xbd1   : > { %v4250_v2 = vadd.f32 1.0, %v5515_v34  ;;  %v4325_v34 = vsel (!%p5077_p5), %vm4315_vm4, %v9417_v12, %v9416_v61 }
 0xbd2   : > { %5516 = vrcp.f32 %v4249_v0  ;;  %v9418_v0 = vld [vmem:[#allocation97_spill] sm:$0xff] (!%p5077_p5) }
 0xbd3   : > { %5518 = vrcp.f32 %v4250_v2 }
 0xbdc   : > { %v5517_v8 = vpop.eup %5516 }
 0xbdd   : > { %v5519_v9 = vpop.eup %5518 }
 0xbef   : > { %v4151_v54 = vpop.f32.mrb[68].mxu0  ;;  %v4192_v63 = vpop.f32.mrb[68].mxu1 }
 0xbf0   : > { %v4211_v17 = vrot.slane %v4151_v54, 2  ;;  %v4213_v49 = vrot.slane %v4192_v63, 2  ;;  %v4153_v25 = vpop.f32.mrb[69].mxu0  ;;  %v4194_v11 = vpop.f32.mrb[69].mxu1  ;;  %v9419_v63 = vld [vmem:[#allocation98_spill] sm:$0xff] (!%p5077_p5) }
 0xbf1   : > { %v4212_v16 = vrot.slane %v4153_v25, 2  ;;  %v4214_v36 = vrot.slane %v4194_v11, 2  ;;  %v4155_v10 = vpop.f32.mrb[70].mxu0  ;;  %v4196_v44 = vpop.f32.mrb[70].mxu1  ;;  %v9420_v25 = vld [vmem:[#allocation99_spill] sm:$0xff] (!%p5077_p5) }
 0xbf2   : > { %v4227_v57 = vadd.f32 %v4211_v17, %v9284_v1  ;;  %v4229_v46 = vadd.f32 %v4213_v49, %v9285_v15  ;;  %v4156_v30 = vpop.f32.mrb[71].mxu0  ;;  %v4197_v47 = vpop.f32.mrb[71].mxu1  ;;  %v4320_v17 = vsel (!%p5077_p5), %vm4318_vm5, %v4317_v43, %v9419_v63  ;;  %v4327_v49 = vsel (!%p5077_p5), %vm4318_vm5, %v4325_v34, %v8046_v35 }
 0xbf3   : > { %v4228_v53 = vadd.f32 %v4212_v16, %v9408_v14  ;;  %v4230_v56 = vadd.f32 %v4214_v36, %v9190_v42  ;;  %v9421_v36 = vld [vmem:[#allocation100_spill] sm:$0xff] (!%p5077_p5) }
 0xbf4   : > { %v5075_v31 = vmul.f32 -1.442695, %v4227_v57  ;;  %5520 = vtanh.f32 %v4229_v46  ;;  %v4323_v10 = vsel (!%p5077_p5), %vm4321_vm6, %v4320_v17, %v9421_v36 }
 0xbf5   : > { %v5076_v27 = vmul.f32 -1.442695, %v4228_v53  ;;  %5522 = vtanh.f32 %v4230_v56 }
 0xbf6   : > { %5524 = vpow2.f32 %v5075_v31 }
 0xbf7   : > { %5526 = vpow2.f32 %v5076_v27 }
 0xbfe   : > { %v5521_v1 = vpop.eup %5520 }
 0xbff   : > { %v5523_v15 = vpop.eup %5522  ;;  %v4277_v24 = vmul.f32 %v5521_v1, %v5517_v8 }
 0xc00   : > { %v5525_v32 = vpop.eup %5524  ;;  %v4278_v38 = vmul.f32 %v5523_v15, %v5519_v9 }
 0xc01   : > { %v5527_v50 = vpop.eup %5526  ;;  %v4253_v51 = vadd.f32 1.0, %v5525_v32  ;;  %v4279_v42 = vadd.f32 %v4277_v24, %v4275_v29  ;;  %v9411_v29 = vld [vmem:[#allocation170_spill] sm:$0xff] (!%p5077_p5) }
 0xc02   : > { %v4254_v55 = vadd.f32 1.0, %v5527_v50  ;;  %v4280_v3 = vadd.f32 %v4278_v38, %v4276_v62  ;;  %v4316_v45 = vsel (!%p5077_p5), %vm4315_vm4, %v9411_v29, %v9410_v37  ;;  %v9412_v62 = vld [vmem:[#allocation103_spill] sm:$0xff] (!%p5077_p5) }
 0xc03   : > { %5528 = vrcp.f32 %v4253_v51  ;;  %v4324_v21 = vsel (!%p5077_p5), %vm4315_vm4, %v9413_v26, %v9412_v62  ;;  %v4319_v2 = vsel (!%p5077_p5), %vm4318_vm5, %v4316_v45, %v9418_v0 }
 0xc04   : > { %5530 = vtanh.f32 %v4279_v42  ;;  %v4300_v5 = vcombine.high %v4279_v42, %v4280_v3  ;;  %v4326_v54 = vsel (!%p5077_p5), %vm4318_vm5, %v4324_v21, %v8044_v58  ;;  %v4322_v11 = vsel (!%p5077_p5), %vm4321_vm6, %v4319_v2, %v9420_v25 }
 0xc05   : > { %5532 = vrcp.f32 %v4254_v55 }
 0xc06   : > { %5534 = vtanh.f32 %v4280_v3  ;;  %v4307_v60 = vrot.slane %v4300_v5, %v4293_v52 }
 0xc08   : > { %v4308_v19 = vcombine.high %v4307_v60, %v4307_v60 }
 0xc0a   : > { %4310 = vst [vmem:[%s6259_s19] sm:$0xf] %v4308_v19 }
 0xc0d   : > { %v5529_v13 = vpop.eup %5528 }
 0xc0e   : > { %v5531_v41 = vpop.eup %5530 }
 0xc0f   : > { %v5533_v28 = vpop.eup %5532  ;;  %v4283_v48 = vmul.f32 %v5531_v41, %v5529_v13 }
 0xc10   : > { %v5535_v23 = vpop.eup %5534 }
 0xc11   : > { %v4284_v22 = vmul.f32 %v5535_v23, %v5533_v28  ;;  %v4328_v16 = vsel (!%p5077_p5), %vm4321_vm6, %v4326_v54, %v4283_v48 }
 0xc12   : > { %v4330_v57 = vpack.c.bf16 (!%p5077_p5), %v4328_v16, %v4322_v11 }
 0xc13   : > { %v4287_v59 = vcombine.high %v4283_v48, %v4284_v22  ;;  %4314 = sbr.rel (%p5077_p5) target bundleno = 3098 (0xc1a), region = 88  ;;  %v4329_v44 = vsel (!%p5077_p5), %vm4321_vm6, %v4327_v49, %v4284_v22 }
 0xc14   : > { %v4331_v46 = vpack.c.bf16 (!%p5077_p5), %v4329_v44, %v4323_v10  ;;  %4332 = vst [vmem:[#allocation2] sm:$0xff] (!%p5077_p5), %v4330_v57 }
 0xc15   : > { %v4294_v18 = vrot.slane %v4287_v59, %v4293_v52 }
 0xc16   : > { %4333 = vst [vmem:[#allocation2 + $0x8] sm:$0xff] (!%p5077_p5), %v4331_v46 }
 0xc17   : > { %v4295_v7 = vcombine.high %v4294_v18, %v4294_v18 }
 0xc19   : > { %4297 = vst [vmem:[%s6257_s24] sm:$0xf] %v4295_v7 }
 0xc1a PF: > { %p5078_p11 = scmp.ne.s32.totalorder %s5970_s17, 2 }
 0xc1b   : > { %vm4338_vm7 = vcmask (!%p5078_p11), 1047558   ;;  %v4404_v47 = vld [vmem:[#allocation12 + $0x80] sm:$0xff] (!%p5078_p11)  ;;  %v4405_v14 = vld [vmem:[#allocation12 + $0x88] sm:$0xff] (!%p5078_p11)  ;;  %v4406_v27 = vld [vmem:[#allocation12 + $0x90] sm:$0xff] (!%p5078_p11) }
 0xc1c   : > { %4337 = sbr.rel (%p5078_p11) target bundleno = 3638 (0xe36), region = 92  ;;  %v4339_v58 = vsel (!%p5078_p11), %vm4338_vm7, %v4283_v48, 0.0  ;;  %v4340_v30 = vsel (!%p5078_p11), %vm4338_vm7, %v4284_v22, 0.0  ;;  %v4388_v53 = vld [vmem:[#allocation12] sm:$0xff] (!%p5078_p11)  ;;  %v5130_v56 = vpack.c.bf16 (!%p5078_p11), %v4405_v14, %v4404_v47  ;;  %v4389_v31 = vld [vmem:[#allocation12 + $0x8] sm:$0xff] (!%p5078_p11)  ;;  %v4407_v39 = vld [vmem:[#allocation12 + $0x98] sm:$0xff] (!%p5078_p11) }
 0xc1d   : > { %v4341_v35 = vadd.f32 (!%p5078_p11), %v4340_v30, %v4339_v58  ;;  %v5132_v6 = vpack.c.bf16 (!%p5078_p11), %v4389_v31, %v4388_v53  ;;  %v5134_v8 = vpack.c.bf16 (!%p5078_p11), %v4407_v39, %v4406_v27  ;;  %v4390_v9 = vld [vmem:[#allocation12 + $0x10] sm:$0xff] (!%p5078_p11)  ;;  %v4391_v1 = vld [vmem:[#allocation12 + $0x18] sm:$0xff] (!%p5078_p11)  ;;  %v4408_v40 = vld [vmem:[#allocation12 + $0xa0] sm:$0xff] (!%p5078_p11) }
 0xc1e   : > { %5131 = vmatprep.subr.bf16.mxu0 (!%p5078_p11), %v5130_v56  ;;  %v5136_v33 = vpack.c.bf16 (!%p5078_p11), %v4391_v1, %v4390_v9  ;;  %v4409_v52 = vld [vmem:[#allocation12 + $0xa8] sm:$0xff] (!%p5078_p11)  ;;  %v4392_v60 = vld [vmem:[#allocation12 + $0x20] sm:$0xff] (!%p5078_p11)  ;;  %v4410_v41 = vld [vmem:[#allocation12 + $0xb0] sm:$0xff] (!%p5078_p11) }
 0xc1f   : > { %4342 = vadd.xlane.f32.xlu0 (!%p5078_p11), %v4341_v35  ;;  %5133 = vmatpush3.bf16.msra.mxu0 (!%p5078_p11), %v5132_v6  ;;  %v5138_v5 = vpack.c.bf16 (!%p5078_p11), %v4409_v52, %v4408_v40  ;;  %v4393_v19 = vld [vmem:[#allocation12 + $0x28] sm:$0xff] (!%p5078_p11)  ;;  %v4411_v28 = vld [vmem:[#allocation12 + $0xb8] sm:$0xff] (!%p5078_p11)  ;;  %v4394_v23 = vld [vmem:[#allocation12 + $0x30] sm:$0xff] (!%p5078_p11) }
 0xc20   : > { %5135 = vmatprep.subr.bf16.mxu0 (!%p5078_p11), %v5134_v8  ;;  %v5140_v13 = vpack.c.bf16 (!%p5078_p11), %v4393_v19, %v4392_v60  ;;  %v4412_v18 = vld [vmem:[#allocation12 + $0xc0] sm:$0xff] (!%p5078_p11)  ;;  %v4413_v7 = vld [vmem:[#allocation12 + $0xc8] sm:$0xff] (!%p5078_p11)  ;;  %v4414_v62 = vld [vmem:[#allocation12 + $0xd0] sm:$0xff] (!%p5078_p11) }
 0xc21   : > { %v4396_v37 = vld [vmem:[#allocation12 + $0x40] sm:$0xff] (!%p5078_p11)  ;;  %v5146_v29 = vpack.c.bf16 (!%p5078_p11), %v4413_v7, %v4412_v18  ;;  %v4397_v45 = vld [vmem:[#allocation12 + $0x48] sm:$0xff] (!%p5078_p11)  ;;  %v4415_v26 = vld [vmem:[#allocation12 + $0xd8] sm:$0xff] (!%p5078_p11) }
 0xc22   : > { %v5148_v21 = vpack.c.bf16 (!%p5078_p11), %v4397_v45, %v4396_v37  ;;  %v5150_v4 = vpack.c.bf16 (!%p5078_p11), %v4415_v26, %v4414_v62  ;;  %v4398_v20 = vld [vmem:[#allocation12 + $0x50] sm:$0xff] (!%p5078_p11)  ;;  %v4399_v43 = vld [vmem:[#allocation12 + $0x58] sm:$0xff] (!%p5078_p11)  ;;  %v4416_v61 = vld [vmem:[#allocation12 + $0xe0] sm:$0xff] (!%p5078_p11) }
 0xc23   : > { %5137 = vmatpush3.bf16.msra.mxu0 %v5136_v33  ;;  %v4417_v12 = vld [vmem:[#allocation12 + $0xe8] sm:$0xff]  ;;  %v5152_v34 = vpack.c.bf16 %v4399_v43, %v4398_v20  ;;  %v4400_v2 = vld [vmem:[#allocation12 + $0x60] sm:$0xff]  ;;  %v4418_v63 = vld [vmem:[#allocation12 + $0xf0] sm:$0xff] }
 0xc24   : > { %5139 = vmatprep.subr.bf16.mxu0 %v5138_v5  ;;  %v5154_v0 = vpack.c.bf16 %v4417_v12, %v4416_v61  ;;  %v4401_v54 = vld [vmem:[#allocation12 + $0x68] sm:$0xff]  ;;  %v4419_v17 = vld [vmem:[#allocation12 + $0xf8] sm:$0xff]  ;;  %v4402_v11 = vld [vmem:[#allocation12 + $0x70] sm:$0xff] }
 0xc25   : > { %v5156_v49 = vpack.c.bf16 %v4401_v54, %v4400_v2  ;;  %v5158_v25 = vpack.c.bf16 %v4419_v17, %v4418_v63  ;;  %v4403_v16 = vld [vmem:[#allocation12 + $0x78] sm:$0xff]  ;;  %v9423_v47 = vld [vmem:[#allocation159_spill] sm:$0xff] }
 0xc26   : > { %v5160_v36 = vpack.c.bf16 %v4403_v16, %v4402_v11  ;;  %v4360_v46 = vld [vmem:[#allocation9] sm:$0x3]  ;;  %v4374_v58 = vld [vmem:[#allocation11] sm:$0x3] }
 0xc27   : > { %5141 = vmatpush3.bf16.msra.mxu0 %v5140_v13  ;;  %v9422_v30 = vld [vmem:[#allocation158_spill] sm:$0xff]  ;;  %v4369_v14 = vrot.slane %v4360_v46, %v9423_v47  ;;  %v4383_v27 = vrot.slane %v4374_v58, %v9423_v47 }
 0xc28   : > { %v4365_v35 = vrot.slane %v4360_v46, %v9422_v30  ;;  %v4379_v31 = vrot.slane %v4374_v58, %v9422_v30 }
 0xcac   : > { %v4343_v15 = vpop.xlane.xlu0 %4342 }
 0xcad   : > { %v4345_v24 = vmul.f32 0.00390625, %v4343_v15 }
 0xcaf   : > { %v8151_v32 = vsub.f32 %v4283_v48, %v4345_v24  ;;  %v8153_v38 = vsub.f32 %v4284_v22, %v4345_v24  ;;  %v5142_v48 = vpack.c.bf16 %v4411_v28, %v4410_v41  ;;  %v4395_v22 = vld [vmem:[#allocation12 + $0x38] sm:$0xff] }
 0xcb0   : > { %v5144_v59 = vpack.c.bf16 %v4395_v22, %v4394_v23 }
 0xcb1   : > { %v4348_v50 = vmul.f32 %v8151_v32, %v8151_v32  ;;  %v4349_v51 = vmul.f32 %v8153_v38, %v8153_v38  ;;  %5143 = vmatprep.subr.bf16.mxu0 %v5142_v48 }
 0xcb2   : > { %5145 = vmatpush3.bf16.msra.mxu0 %v5144_v59 }
 0xcb3   : > { %v4350_v42 = vsel %vm4338_vm7, %v4348_v50, 0.0  ;;  %v4351_v55 = vsel %vm4338_vm7, %v4349_v51, 0.0  ;;  %5147 = vmatprep.subr.bf16.mxu0 %v5146_v29  ;;  %v5079_v50 = vld [vmem:[#allocation14] ss:$0 sm:$0xff] }
 0xcb4   : > { %v4352_v3 = vadd.f32 %v4351_v55, %v4350_v42 }
 0xcb6   : > { %4353 = vadd.xlane.f32.xlu0 %v4352_v3  ;;  %5149 = vmatpush3.bf16.msra.mxu0 %v5148_v21 }
 0xcb7   : > { %5151 = vmatprep.subr.bf16.mxu0 %v5150_v4 }
 0xcba   : > { %5153 = vmatpush3.bf16.msra.mxu0 %v5152_v34 }
 0xcbb   : > { %5155 = vmatprep.subr.bf16.mxu0 %v5154_v0 }
 0xcbe   : > { %5157 = vmatpush3.bf16.msra.mxu0 %v5156_v49 }
 0xcbf   : > { %5159 = vmatprep.subr.bf16.mxu0 %v5158_v25 }
 0xcc2   : > { %5161 = vmatpush3.bf16.msra.mxu0 %v5160_v36 }
 0xd43   : > { %v4354_v10 = vpop.xlane.xlu0 %4353 }
 0xd44   : > { %v4355_v44 = vmul.f32 0.00390625, %v4354_v10 }
 0xd46   : > { %v4356_v57 = vadd.f32 1e-05, %v4355_v44 }
 0xd48   : > { %5536 = vrsqrt.f32 %v4356_v57 }
 0xd52   : > { %v5537_v53 = vpop.eup %5536 }
 0xd53   : > { %v4359_v56 = vmul.f32 %v5537_v53, %v8153_v38  ;;  %v4358_v39 = vmul.f32 %v5537_v53, %v8151_v32 }
 0xd55   : > { %v4373_v6 = vmul.f32 %v4369_v14, %v4359_v56  ;;  %v4372_v8 = vmul.f32 %v4365_v35, %v4358_v39 }
 0xd57   : > { %v4387_v9 = vadd.f32 %v4383_v27, %v4373_v6  ;;  %v4386_v1 = vadd.f32 %v4379_v31, %v4372_v8 }
 0xd59   : > { %v4430_v33 = vrot.slane %v4387_v9, 6  ;;  %v4429_v15 = vrot.slane %v4386_v1, 6 }
 0xd5b   : > { %4497 = vmatprep.mubr.f32.mxu0 %v4430_v33 }
 0xd5c   : > { %4498 = vmatmul.mubr.f32.vlgmr.msra.gmra.mrb[0].mxu0 %v4429_v15 }
 0xe2f   : > { %v5127_v24 = vpop.f32.mrb[0].mxu0 }
 0xe30   : > { %v5128_v51 = vpop.f32.mrb[1].mxu0 }
 0xe31   : > { %v5129_v42 = vadd.f32 %v5128_v51, %v5127_v24 }
 0xe33   : > { %v4500_v55 = vadd.f32 %v5129_v42, %v5079_v50 }
 0xe35   : > { %4503 = vst [vmem:[#allocation15] sm:$0x3] %v4500_v55 }
 0xe36 PF: > { %s5093_s28 = sshll.u32 %s5970_s17, 6  ;;  %s4535_s15 = sshll.u32 %s6257_s24, 4  ;;  %s4536_s15 = int_to_ptr.vmem [resolvable:$true] %s4535_s15 }
 0xe37   : > { %s8173_s26 = scalar_lea.hbm %s8273_s9, %s5093_s28  ;;  %s8178_s29 = scalar_lea.sflag [#allocation17], %s430_s18 }
 0xe38   : > { %s5740_s8 = scalar_lea.vmem %s4536_s15, 64  ;;  %p9424_p10 = scmp.ne.s32.totalorder %s8615_s22, 0 }
 0xe39   : > { %p5741_p0 = scmp.ne.s32.totalorder %s4536_s15, %s5740_s8  ;;  %s5893_s4 = smov [#allocation16]  }
 0xe3a   : > { %s5744_s6 = sshll.u32 %s5893_s4, 4  ;;  %s5745_s6 = int_to_ptr.vmem [resolvable:$false] %s5744_s6 }
 0xe3b   : > { %p5742_p2 = pnand %p5741_p0, %p9424_p10  ;;  %s5746_s30 = scalar_lea.vmem %s5745_s6, 128 }
 0xe3c   : > { %p5747_p9 = scmp.lt.s32.totalorder %s4536_s15, %s5745_s6  ;;  %p5748_p1 = scmp.lt.s32.totalorder %s5746_s30, %s5740_s8 }
 0xe3d   : > { %p5743_p6 = pneg %p5742_p2 }
 0xe3e   : > { %p5749_p13 = por %p5748_p1, %p5747_p9 }
 0xe40   : > { %p5750_p4 = pnand %p5749_p13, %p5743_p6 }
 0xe42   : > { %5753 = shalt.err (!%p5750_p4)
}
 0xe43   : > { %s5754_s18 = scalar_lea.hbm %s8173_s26, 64  ;;  %s5758_s12 = scalar_lea.hbm %s8273_s9, 192 }
 0xe44   : > { %p5755_p3 = scmp.ne.s32.totalorder %s8173_s26, %s5754_s18  ;;  %p5759_p12 = scmp.lt.u32.totalorder %s8173_s26, %s8273_s9 }
 0xe45   : > { %p5760_p5 = scmp.lt.u32.totalorder %s5758_s12, %s5754_s18  ;;  %p5762_p0 = scmp.lt.u32.totalorder %s5754_s18, %s8173_s26 }
 0xe46   : > { %p5756_p7 = pnand %p5755_p3, %p9424_p10 }
 0xe47   : > { %p5761_p11 = por %p5760_p5, %p5759_p12 }
 0xe48   : > { %p5757_p8 = pneg %p5756_p7 }
 0xe49   : > { %p5763_p2 = por %p5762_p0, %p5761_p11 }
 0xe4b   : > { %p5764_p6 = pnand %p5763_p2, %p5757_p8 }
 0xe4d   : > { %5767 = shalt.err (!%p5764_p6)
}
 0xe4e   : > { %5186 = dma.vmem_to_hbm [thread:$0]  (%p9424_p10), %s4536_s15, 64, %s8173_s26, %s8178_s29  }
 0xe4f   : > { %s5894_s25 = smov [#allocation15]   ;;  %s9425_s23 = sld [smem:[#allocation176_spill]] }
 0xe50   : > { %s4521_s13 = sshll.u32 %s5894_s25, 4  ;;  %s4549_s8 = sshll.u32 %s6259_s19, 4  ;;  %s4522_s13 = int_to_ptr.vmem [resolvable:$true] %s4521_s13  ;;  %s4550_s8 = int_to_ptr.vmem [resolvable:$true] %s4549_s8 }
 0xe51   : > { %s5768_s4 = scalar_lea.vmem %s4522_s13, 32  ;;  %p9426_p1 = scmp.eq.s32.totalorder %s5970_s17, 2 }
 0xe52   : > { %p5769_p9 = scmp.ne.s32.totalorder %s4522_s13, %s5768_s4  ;;  %p5775_p3 = scmp.lt.s32.totalorder %s4522_s13, %s4522_s13 }
 0xe53   : > { %p5776_p7 = scmp.lt.s32.totalorder %s5768_s4, %s5768_s4 }
 0xe54   : > { %p5770_p13 = pnand %p5769_p9, %p9426_p1 }
 0xe55   : > { %s8203_s27 = scalar_lea.hbm %s9425_s23, %s5093_s28  ;;  %p5777_p8 = por %p5776_p7, %p5775_p3 }
 0xe56   : > { %p5771_p4 = pneg %p5770_p13 }
 0xe58   : > { %p5778_p12 = pnand %p5777_p8, %p5771_p4 }
 0xe5a   : > { %5781 = shalt.err (!%p5778_p12)
}
 0xe5b   : > { %s9427_s6 = sld [smem:[#allocation175_spill]]  ;;  %p9428_p11 = pmov %p9426_p1 }
 0xe61   : > { %s5782_s30 = scalar_lea.hbm %s9427_s6, 32 }
 0xe62   : > { %p5783_p5 = scmp.ne.s32.totalorder %s9427_s6, %s5782_s30  ;;  %p5788_p6 = scmp.lt.u32.totalorder %s5782_s30, %s9427_s6 }
 0xe64   : > { %p5784_p0 = pnand %p5783_p5, %p9428_p11 }
 0xe66   : > { %p5785_p2 = pneg %p5784_p0 }
 0xe68   : > { %p5790_p9 = pnand %p5788_p6, %p5785_p2 }
 0xe6a   : > { %5793 = shalt.err (!%p5790_p9)
}
 0xe6b   : > { %5185 = dma.vmem_to_hbm [thread:$0]  (%p9426_p1), %s4522_s13, 32, %s9427_s6, [#allocation5]  }
 0xe6c   : > { %s5794_s20 = scalar_lea.vmem %s4550_s8, 64  ;;  %s5895_s24 = smov [#allocation18]  }
 0xe6d   : > { %p5795_p13 = scmp.ne.s32.totalorder %s4550_s8, %s5794_s20  ;;  %s5798_s25 = sshll.u32 %s5895_s24, 4  ;;  %s5799_s25 = int_to_ptr.vmem [resolvable:$false] %s5798_s25 }
 0xe6e   : > { %s5800_s11 = scalar_lea.vmem %s5799_s25, 128  ;;  %p5801_p7 = scmp.lt.s32.totalorder %s4550_s8, %s5799_s25 }
 0xe6f   : > { %p5796_p4 = pnand %p5795_p13, %p9424_p10  ;;  %p5802_p8 = scmp.lt.s32.totalorder %s5800_s11, %s5794_s20 }
 0xe71   : > { %p5797_p3 = pneg %p5796_p4  ;;  %p5803_p12 = por %p5802_p8, %p5801_p7 }
 0xe73   : > { %p5804_p5 = pnand %p5803_p12, %p5797_p3 }
 0xe75   : > { %5807 = shalt.err (!%p5804_p5)
}
 0xe76   : > { %s5808_s13 = scalar_lea.hbm %s8203_s27, 64  ;;  %s5812_s26 = scalar_lea.hbm %s9425_s23, 192 }
 0xe77   : > { %p5809_p11 = scmp.ne.s32.totalorder %s8203_s27, %s5808_s13  ;;  %p5813_p6 = scmp.lt.u32.totalorder %s8203_s27, %s9425_s23 }
 0xe78   : > { %p5814_p9 = scmp.lt.u32.totalorder %s5812_s26, %s5808_s13  ;;  %p5816_p13 = scmp.lt.u32.totalorder %s5808_s13, %s8203_s27 }
 0xe79   : > { %p5810_p0 = pnand %p5809_p11, %p9424_p10 }
 0xe7a   : > { %p5815_p1 = por %p5814_p9, %p5813_p6 }
 0xe7b   : > { %p5811_p2 = pneg %p5810_p0 }
 0xe7c   : > { %p5817_p4 = por %p5816_p13, %p5815_p1 }
 0xe7e   : > { %p5818_p3 = pnand %p5817_p4, %p5811_p2 }
 0xe80   : > { %5821 = shalt.err (!%p5818_p3)
}
 0xe81   : > { %5187 = dma.vmem_to_hbm [thread:$0]  (%p9424_p10), %s4550_s8, 64, %s8203_s27, %s8178_s29  }
 0xe82   : > { %p9429_p7 = scmp.eq.s32.totalorder %s5970_s17, 2 }
 0xe84   : > { %5855 = dma.done.wait (%p9429_p7), [#allocation5], 32   ;;  %p9430_p8 = pmov %p9429_p7 }
 0xe86   : > { %5857 = vsyncadd (%p9430_p8), [#allocation5], 4294967264 }
 0xe87 PF: > { %s9431_s18 = sld [smem:[#allocation26_spill]]  ;;  %p5233_p12 = scmp.ge.s32.totalorder %s5876_s16, 2 }
 0xe88   : > { %s9432_s28 = sadd.s32 4294967294, %s5876_s16  }
 0xe89   : > { %s4565_s19 = sand.u32 1, %s9432_s28  }
 0xe8a   : > { %s4566_s21 = scalar_lea.sflag [#allocation17], %s4565_s19 }
 0xe8d   : > { %p9433_p5 = scmp.ne.s32.totalorder %s9431_s18, 0 }
 0xe8f   : > { %p5216_p11 = pnand %p5233_p12, %p9433_p5 }
 0xe91   : > { %5859 = dma.done.wait (!%p5216_p11), %s4566_s21, 128  }
 0xe92   : > { %5861 = vsyncadd (!%p5216_p11), %s4566_s21, 4294967168  ;;  %s9434_s16 = sld [smem:[#allocation27_spill]]  ;;  %s9435_s22 = sld [smem:[#allocation25_spill]] }
 0xe93   : > { %s9436_s15 = sld [smem:[#allocation28_spill]]  ;;  %s9437_s13 = smov %s5868_s14 }
 0xe98   : > { %p30_p10 = scmp.ge.s32.totalorder %s9434_s16, 5   ;;  %s9438_s14 = smov %s9435_s22 }
 0xe9a   :  { %32 = sbr.rel (!%p30_p10) target bundleno = 16 (0x10), region = 173 }
 0xea1   :  { %4580 = vsyncpa [#allocation4], 1 }
 0xea2   :  { %4582 = vsyncpa [#allocation4 + $0x1], 1 }
 0xea3   :  { %4583 = vsyncpa [#allocation7], 1 }
 0xea4   :  { %4585 = vsyncpa [#allocation7 + $0x1], 1 }
 0xea5   :  { %4586 = vsyncpa [#allocation10], 1 }
 0xea6   :  { %4587 = vsyncpa [#allocation13], 1 }
 0xea7   :  { %4588 = vsyncpa [#allocation5], 1 }
 0xea8   :  { %4590 = vsyncpa [#allocation5 + $0x1], 1 }
 0xea9   :  { %4591 = vsyncpa [#allocation17], 1 }
 0xeaa   :  { %4593 = vsyncpa [#allocation17 + $0x1], 1 }

</bundles_post_ra>
